<compile_context>
chip_gen: v5e
topology: v5e:2x2
jax: 0.10.0
libtpu: 0.0.40
codegen_flags: <defaults>
</compile_context>

<pallas_src>
import functools

import numpy as np
import jax
import jax.numpy as jnp
from jax.experimental import pallas as pl
from jax.experimental.pallas import tpu as pltpu


# --------------------------------------------------------------------------- #
# Kernel
# --------------------------------------------------------------------------- #
def autoencoder_kernel(x_ref,
                       w1_ref, b1_ref,
                       w2_ref, b2_ref,
                       w3_ref, b3_ref,
                       w4_ref, b4_ref,
                       out_ref, *, compute_dtype):
    """Fused encoder+decoder MLP on one (bt, 41) batch tile.

    Natural row-major layout (batch on sublanes, features on lanes).  Weights
    are PyTorch-native (out, in); each Linear contracts the last dim of both
    operands (x @ w.T) so nothing is transposed/materialised.  Dot inputs are
    `compute_dtype`; accumulation, biases and tanh stay f32.
    """
    cd = compute_dtype

    def linear(h, w_ref, b_ref):
        y = jax.lax.dot_general(
            h, w_ref[...],
            dimension_numbers=(((1,), (1,)), ((), ())),   # contract feature dims
            preferred_element_type=jnp.float32)
        return y + b_ref[...]                              # b is (1, out), f32

    x = x_ref[...].astype(cd)                              # (bt, 41)
    h1 = jnp.tanh(linear(x, w1_ref, b1_ref))               # (bt, 16) f32
    z = jnp.tanh(linear(h1.astype(cd), w2_ref, b2_ref))    # (bt, n)  f32
    h2 = jnp.tanh(linear(z.astype(cd), w3_ref, b3_ref))    # (bt, 16) f32
    y = linear(h2.astype(cd), w4_ref, b4_ref)              # (bt, 41) f32
    out_ref[...] = y.astype(out_ref.dtype)


# --------------------------------------------------------------------------- #
# Tile selection
# --------------------------------------------------------------------------- #
def _tensorcores_per_chip():
    """Best-effort TC count (v7x has 2 TensorCores; v5e/v6e have 1)."""
    try:
        kind = jax.devices()[0].device_kind.lower()
    except Exception:  # pragma: no cover - defensive
        return 1
    return 2 if ("v7" in kind or "7x" in kind) else 1


def _pick_batch_tile(B, batch_tile, cores):
    """Batch tile (sublane dim).  Multiple of 128, or == B (full-dim block)."""
    bt = max(128, (int(batch_tile) // 128) * 128)
    if cores >= 2 and B > 256:
        # Keep >= 2 grid steps so both v7x TensorCores get work.
        half = -(-B // 2)
        half = -(-half // 128) * 128
        bt = min(bt, half)
    if bt >= B:
        # Single maximal tile (v5e/v6e: the grid is a serial loop, one step is
        # strictly better than manufacturing a second overhead-dominated step).
        bt = B
    return bt


# --------------------------------------------------------------------------- #
# Wrapper
# --------------------------------------------------------------------------- #
@functools.partial(jax.jit, static_argnames=("batch_tile", "compute_dtype", "out_dtype"))
def autoencoder_forward(x, params, batch_tile=4096, compute_dtype=None, out_dtype=None):
    """x: (B, 41).  params: PyTorch-layout weights w_i (out, in), biases b_i (out,).

    compute_dtype: dtype of the MXU dot inputs (default: bf16 if x is bf16 else f32).
    out_dtype:     dtype of the returned array (default: x.dtype).
    Accumulation / bias / tanh are always f32.
    """
    B, f_in = x.shape
    assert f_in == 41, "AutoEncoder expects 41 input features"
    n = params["w2"].shape[0]

    if compute_dtype is None:
        cd = np.dtype(jnp.bfloat16) if x.dtype == jnp.bfloat16 else np.dtype(jnp.float32)
    else:
        cd = np.dtype(compute_dtype)
    od = np.dtype(out_dtype) if out_dtype is not None else np.dtype(x.dtype)
    if od not in (np.dtype(jnp.float32), np.dtype(jnp.bfloat16)):
        od = np.dtype(jnp.float32)   # no f64 on TPU

    cores = _tensorcores_per_chip()
    bt = _pick_batch_tile(B, batch_tile, cores)
    grid = (pl.cdiv(B, bt),)         # last block ragged -> Pallas masks the store

    # Weights: tiny (<10 KB), cast once to the dot dtype, VMEM-resident every step.
    w1 = params["w1"].astype(cd)
    w2 = params["w2"].astype(cd)
    w3 = params["w3"].astype(cd)
    w4 = params["w4"].astype(cd)
    # Biases stay f32; 2-D (1, out) so they broadcast along the feature axis.
    b1 = params["b1"].reshape(1, -1).astype(jnp.float32)
    b2 = params["b2"].reshape(1, -1).astype(jnp.float32)
    b3 = params["b3"].reshape(1, -1).astype(jnp.float32)
    b4 = params["b4"].reshape(1, -1).astype(jnp.float32)
    # Note: the 8 weight/bias operands could be packed into one VMEM slab to
    # shave per-step DMA bookkeeping; skipped (marginal) to keep the code simple.

    w_bytes = sum(int(a.size) * np.dtype(a.dtype).itemsize
                  for a in (w1, w2, w3, w4, b1, b2, b3, b4))
    cost = pl.CostEstimate(
        flops=int(2 * B * (41 * 16 + 16 * n + n * 16 + 16 * 41)),
        transcendentals=int(B * (16 + n + 16)),
        bytes_accessed=int(B * 41 * (np.dtype(x.dtype).itemsize + od.itemsize) + w_bytes))

    def full_block(a):
        return pl.BlockSpec(a.shape, lambda i: (0, 0))

    out = pl.pallas_call(
        functools.partial(autoencoder_kernel, compute_dtype=cd),
        out_shape=jax.ShapeDtypeStruct((B, 41), od),
        grid_spec=pltpu.PrefetchScalarGridSpec(
            num_scalar_prefetch=0,
            grid=grid,
            in_specs=[
                pl.BlockSpec((bt, 41), lambda i: (i, 0)),     # x tile, natural layout
                full_block(w1), full_block(b1),
                full_block(w2), full_block(b2),
                full_block(w3), full_block(b3),
                full_block(w4), full_block(b4),
            ],
            out_specs=pl.BlockSpec((bt, 41), lambda i: (i, 0)),
        ),
        compiler_params=pltpu.CompilerParams(
            dimension_semantics=("parallel",),
            vmem_limit_bytes=48 * 1024 * 1024,   # large tiles fit on v5e/v6e/v7x
        ),
        cost_estimate=cost,
    )(x, w1, b1, w2, b2, w3, b3, w4, b4)
    return out


# --------------------------------------------------------------------------- #
# Params / reference
# --------------------------------------------------------------------------- #
def init_params(key, n):
    """PyTorch-Linear-style init, weights stored as (out_features, in_features)."""
    def linear(key, fan_in, fan_out):
        kw, kb = jax.random.split(key)
        bound = 1.0 / jnp.sqrt(fan_in)
        w = jax.random.uniform(kw, (fan_out, fan_in), jnp.float32, -bound, bound)
        b = jax.random.uniform(kb, (fan_out,), jnp.float32, -bound, bound)
        return w, b

    k1, k2, k3, k4 = jax.random.split(key, 4)
    w1, b1 = linear(k1, 41, 16)   # encoder Linear(41, 16)
    w2, b2 = linear(k2, 16, n)    # encoder Linear(16, n)
    w3, b3 = linear(k3, n, 16)    # decoder Linear(n, 16)
    w4, b4 = linear(k4, 16, 41)   # decoder Linear(16, 41)
    return dict(w1=w1, b1=b1, w2=w2, b2=b2, w3=w3, b3=b3, w4=w4, b4=b4)


def reference_forward(x, p):
    h = jnp.tanh(x @ p["w1"].T + p["b1"])
    z = jnp.tanh(h @ p["w2"].T + p["b2"])
    h2 = jnp.tanh(z @ p["w3"].T + p["b3"])
    return h2 @ p["w4"].T + p["b4"]


# --------------------------------------------------------------------------- #
# Demo / checks
# --------------------------------------------------------------------------- #
if __name__ == "__main__":
    key = jax.random.PRNGKey(0)
    k_param, k_x = jax.random.split(key)

    n = 8          # bottleneck size (the module's `n`)
    batch = 1024

    params = init_params(k_param, n)
    x = jax.random.normal(k_x, (batch, 41), dtype=jnp.float32)
    y_ref = reference_forward(x, params)

    # f32 path: natural (B, 41) layout in and out, no wrapper transpose/pad.
    y = jax.block_until_ready(autoencoder_forward(x, params))
    assert y.shape == (batch, 41) and y.dtype == jnp.float32
    assert jnp.allclose(y, y_ref, atol=1e-4, rtol=1e-4), "f32 mismatch vs JAX reference"

    # Ragged batch (not a tile multiple): handled by Pallas block masking, no jnp.pad.
    y_rag = jax.block_until_ready(autoencoder_forward(x[:1000], params, batch_tile=512))
    assert jnp.allclose(y_rag, y_ref[:1000], atol=1e-4, rtol=1e-4), "ragged batch mismatch"

    # Tiny batch -> a single full-batch block (no tile-shrinking loop).
    y_tiny = jax.block_until_ready(autoencoder_forward(x[:37], params))
    assert jnp.allclose(y_tiny, y_ref[:37], atol=1e-4, rtol=1e-4), "tiny batch mismatch"

    # bf16 bandwidth path (all generations: MXU takes bf16 inputs everywhere; tanh/bias
    # stay f32).  Input AND output are bf16 -> halves HBM bytes in this mem-bound kernel.
    xb = x.astype(jnp.bfloat16)
    yb = jax.block_until_ready(
        autoencoder_forward(xb, params, compute_dtype=jnp.bfloat16, out_dtype=jnp.bfloat16))
    assert yb.dtype == jnp.bfloat16
    pq = dict(params)
    for k in ("w1", "w2", "w3", "w4"):
        pq[k] = params[k].astype(jnp.bfloat16).astype(jnp.float32)
    y_ref_b = reference_forward(xb.astype(jnp.float32), pq)
    assert jnp.allclose(yb.astype(jnp.float32), y_ref_b, atol=7.5e-2, rtol=7.5e-2), \
        "bf16 path mismatch"

    print("KERNEL_OK")
</pallas_src>

<mosaic_0001>
module attributes {stable_mosaic.version = 11 : i64} {
  func.func @autoencoder_kernel(%arg0: i32, %arg1: memref<1024x41xf32, #tpu.memory_space<vmem>>, %arg2: memref<16x41xf32, #tpu.memory_space<vmem>>, %arg3: memref<1x16xf32, #tpu.memory_space<vmem>>, %arg4: memref<8x16xf32, #tpu.memory_space<vmem>>, %arg5: memref<1x8xf32, #tpu.memory_space<vmem>>, %arg6: memref<16x8xf32, #tpu.memory_space<vmem>>, %arg7: memref<1x16xf32, #tpu.memory_space<vmem>>, %arg8: memref<41x16xf32, #tpu.memory_space<vmem>>, %arg9: memref<1x41xf32, #tpu.memory_space<vmem>>, %arg10: memref<1024x41xf32, #tpu.memory_space<vmem>>) attributes {dimension_semantics = [#tpu.dimension_semantics<parallel>], iteration_bounds = array<i64: 1>, scalar_prefetch = 0 : i64, scratch_operands = 0 : i64, tpu.core_type = #tpu.core_type<tc>, window_params = [{transform_indices = @transform_0, window_bounds = array<i64: 1024, 41>}, {pipeline_mode = #tpu.pipeline_mode<synchronous>, transform_indices = @transform_1, window_bounds = array<i64: 16, 41>}, {pipeline_mode = #tpu.pipeline_mode<synchronous>, transform_indices = @transform_2, window_bounds = array<i64: 1, 16>}, {pipeline_mode = #tpu.pipeline_mode<synchronous>, transform_indices = @transform_3, window_bounds = array<i64: 8, 16>}, {pipeline_mode = #tpu.pipeline_mode<synchronous>, transform_indices = @transform_4, window_bounds = array<i64: 1, 8>}, {pipeline_mode = #tpu.pipeline_mode<synchronous>, transform_indices = @transform_5, window_bounds = array<i64: 16, 8>}, {pipeline_mode = #tpu.pipeline_mode<synchronous>, transform_indices = @transform_6, window_bounds = array<i64: 1, 16>}, {pipeline_mode = #tpu.pipeline_mode<synchronous>, transform_indices = @transform_7, window_bounds = array<i64: 41, 16>}, {pipeline_mode = #tpu.pipeline_mode<synchronous>, transform_indices = @transform_8, window_bounds = array<i64: 1, 41>}, {transform_indices = @transform_9, window_bounds = array<i64: 1024, 41>}]} {
    %c0 = arith.constant 0 : index
    %c0_0 = arith.constant 0 : index
    %0 = vector.load %arg1[%c0, %c0_0] : memref<1024x41xf32, #tpu.memory_space<vmem>>, vector<1024x41xf32>
    %c0_1 = arith.constant 0 : index
    %c0_2 = arith.constant 0 : index
    %1 = vector.load %arg2[%c0_1, %c0_2] : memref<16x41xf32, #tpu.memory_space<vmem>>, vector<16x41xf32>
    %cst = arith.constant dense<0.000000e+00> : vector<1024x16xf32>
    %2 = tpu.matmul %0, %1, %cst {dimension_numbers = #tpu.dot_dimension_numbers<[1], [1], [0], [0], [0, 0, 1, 0], [], []>} : vector<1024x41xf32>, vector<16x41xf32>, vector<1024x16xf32> -> vector<1024x16xf32>
    %c0_3 = arith.constant 0 : index
    %c0_4 = arith.constant 0 : index
    %3 = vector.load %arg3[%c0_3, %c0_4] : memref<1x16xf32, #tpu.memory_space<vmem>>, vector<1x16xf32>
    %4 = vector.broadcast %3 : vector<1x16xf32> to vector<1024x16xf32>
    %5 = arith.addf %2, %4 : vector<1024x16xf32>
    %6 = math.tanh %5 : vector<1024x16xf32>
    %c0_5 = arith.constant 0 : index
    %c0_6 = arith.constant 0 : index
    %7 = vector.load %arg4[%c0_5, %c0_6] : memref<8x16xf32, #tpu.memory_space<vmem>>, vector<8x16xf32>
    %cst_7 = arith.constant dense<0.000000e+00> : vector<1024x8xf32>
    %8 = tpu.matmul %6, %7, %cst_7 {dimension_numbers = #tpu.dot_dimension_numbers<[1], [1], [0], [0], [0, 0, 1, 0], [], []>} : vector<1024x16xf32>, vector<8x16xf32>, vector<1024x8xf32> -> vector<1024x8xf32>
    %c0_8 = arith.constant 0 : index
    %c0_9 = arith.constant 0 : index
    %9 = vector.load %arg5[%c0_8, %c0_9] : memref<1x8xf32, #tpu.memory_space<vmem>>, vector<1x8xf32>
    %10 = vector.broadcast %9 : vector<1x8xf32> to vector<1024x8xf32>
    %11 = arith.addf %8, %10 : vector<1024x8xf32>
    %12 = math.tanh %11 : vector<1024x8xf32>
    %c0_10 = arith.constant 0 : index
    %c0_11 = arith.constant 0 : index
    %13 = vector.load %arg6[%c0_10, %c0_11] : memref<16x8xf32, #tpu.memory_space<vmem>>, vector<16x8xf32>
    %cst_12 = arith.constant dense<0.000000e+00> : vector<1024x16xf32>
    %14 = tpu.matmul %12, %13, %cst_12 {dimension_numbers = #tpu.dot_dimension_numbers<[1], [1], [0], [0], [0, 0, 1, 0], [], []>} : vector<1024x8xf32>, vector<16x8xf32>, vector<1024x16xf32> -> vector<1024x16xf32>
    %c0_13 = arith.constant 0 : index
    %c0_14 = arith.constant 0 : index
    %15 = vector.load %arg7[%c0_13, %c0_14] : memref<1x16xf32, #tpu.memory_space<vmem>>, vector<1x16xf32>
    %16 = vector.broadcast %15 : vector<1x16xf32> to vector<1024x16xf32>
    %17 = arith.addf %14, %16 : vector<1024x16xf32>
    %18 = math.tanh %17 : vector<1024x16xf32>
    %c0_15 = arith.constant 0 : index
    %c0_16 = arith.constant 0 : index
    %19 = vector.load %arg8[%c0_15, %c0_16] : memref<41x16xf32, #tpu.memory_space<vmem>>, vector<41x16xf32>
    %cst_17 = arith.constant dense<0.000000e+00> : vector<1024x41xf32>
    %20 = tpu.matmul %18, %19, %cst_17 {dimension_numbers = #tpu.dot_dimension_numbers<[1], [1], [0], [0], [0, 0, 1, 0], [], []>} : vector<1024x16xf32>, vector<41x16xf32>, vector<1024x41xf32> -> vector<1024x41xf32>
    %c0_18 = arith.constant 0 : index
    %c0_19 = arith.constant 0 : index
    %21 = vector.load %arg9[%c0_18, %c0_19] : memref<1x41xf32, #tpu.memory_space<vmem>>, vector<1x41xf32>
    %22 = vector.broadcast %21 : vector<1x41xf32> to vector<1024x41xf32>
    %23 = arith.addf %20, %22 : vector<1024x41xf32>
    %c0_20 = arith.constant 0 : index
    %c0_21 = arith.constant 0 : index
    %24 = vector.load %arg10[%c0_20, %c0_21] : memref<1024x41xf32, #tpu.memory_space<vmem>>, vector<1024x41xf32>
    tpu.vector_store %arg10[%c0_20, %c0_21], %23 {strides = array<i32>} : memref<1024x41xf32, #tpu.memory_space<vmem>>, vector<1024x41xf32>,
    return
  }
  func.func @transform_0(%arg0: i32) -> (i32, i32) {
    %c0_i32 = arith.constant 0 : i32
    %c0_i32_0 = arith.constant 0 : i32
    return %arg0, %c0_i32 : i32, i32
  }
  func.func @transform_1(%arg0: i32) -> (i32, i32) {
    %c0_i32 = arith.constant 0 : i32
    %c0_i32_0 = arith.constant 0 : i32
    %c0_i32_1 = arith.constant 0 : i32
    return %c0_i32, %c0_i32_0 : i32, i32
  }
  func.func @transform_2(%arg0: i32) -> (i32, i32) {
    %c0_i32 = arith.constant 0 : i32
    %c0_i32_0 = arith.constant 0 : i32
    %c0_i32_1 = arith.constant 0 : i32
    return %c0_i32, %c0_i32_0 : i32, i32
  }
  func.func @transform_3(%arg0: i32) -> (i32, i32) {
    %c0_i32 = arith.constant 0 : i32
    %c0_i32_0 = arith.constant 0 : i32
    %c0_i32_1 = arith.constant 0 : i32
    return %c0_i32, %c0_i32_0 : i32, i32
  }
  func.func @transform_4(%arg0: i32) -> (i32, i32) {
    %c0_i32 = arith.constant 0 : i32
    %c0_i32_0 = arith.constant 0 : i32
    %c0_i32_1 = arith.constant 0 : i32
    return %c0_i32, %c0_i32_0 : i32, i32
  }
  func.func @transform_5(%arg0: i32) -> (i32, i32) {
    %c0_i32 = arith.constant 0 : i32
    %c0_i32_0 = arith.constant 0 : i32
    %c0_i32_1 = arith.constant 0 : i32
    return %c0_i32, %c0_i32_0 : i32, i32
  }
  func.func @transform_6(%arg0: i32) -> (i32, i32) {
    %c0_i32 = arith.constant 0 : i32
    %c0_i32_0 = arith.constant 0 : i32
    %c0_i32_1 = arith.constant 0 : i32
    return %c0_i32, %c0_i32_0 : i32, i32
  }
  func.func @transform_7(%arg0: i32) -> (i32, i32) {
    %c0_i32 = arith.constant 0 : i32
    %c0_i32_0 = arith.constant 0 : i32
    %c0_i32_1 = arith.constant 0 : i32
    return %c0_i32, %c0_i32_0 : i32, i32
  }
  func.func @transform_8(%arg0: i32) -> (i32, i32) {
    %c0_i32 = arith.constant 0 : i32
    %c0_i32_0 = arith.constant 0 : i32
    %c0_i32_1 = arith.constant 0 : i32
    return %c0_i32, %c0_i32_0 : i32, i32
  }
  func.func @transform_9(%arg0: i32) -> (i32, i32) {
    %c0_i32 = arith.constant 0 : i32
    %c0_i32_0 = arith.constant 0 : i32
    return %arg0, %c0_i32 : i32, i32
  }
}

</mosaic_0001>

<bundles_post_ra>
// kernel: autoencoder_forward.1
= control target key start
LH: loop header
LB: loop body
LE: loop exit
PB: predicated region body
PF: predicated region fallthrough
CT: control target
= control target key end

     0   :  { %vm166_vm0 = vcmask 334848   ;;  %vm1091_vm1 = vcmask 130048   ;;  %vm2014_vm2 = vcmask 64512   ;;  %s7307_s1 = inlined_call_operand.vmem [shape: f32[16,41], index: 1, kind: input, shape index: {}]   ;;  %s7308_s2 = inlined_call_operand.vmem [shape: f32[1,16], index: 2, kind: input, shape index: {}]   ;;  %s7309_s0 = inlined_call_operand.vmem [shape: f32[1024,41], index: 0, kind: input, shape index: {}]   ;;  %s7310_s3 = inlined_call_operand.vmem [shape: f32[8,16], index: 3, kind: input, shape index: {}]   ;;  %s7311_s4 = inlined_call_operand.vmem [shape: f32[1,8], index: 4, kind: input, shape index: {}]   ;;  %s7312_s5 = inlined_call_operand.vmem [shape: f32[16,8], index: 5, kind: input, shape index: {}]   ;;  %s7313_s6 = inlined_call_operand.vmem [shape: f32[1,16], index: 6, kind: input, shape index: {}]   ;;  %s7314_s7 = inlined_call_operand.vmem [shape: f32[41,16], index: 7, kind: input, shape index: {}]   ;;  %s7315_s8 = inlined_call_operand.vmem [shape: f32[1,41], index: 8, kind: input, shape index: {}]   ;;  %s7316_s9 = inlined_call_operand.vmem [shape: f32[1024,41], index: 9, kind: output, shape index: {}]  }
   0x1   :  { %v161_v0 = vld [vmem:[%s7307_s1 + $0x8] sm:$0xff]  ;;  %v160_v1 = vld [vmem:[%s7307_s1] sm:$0xff]  ;;  %v34_v4 = vld [vmem:[%s7309_s0 + $0x10] sm:$0xff] }
   0x2   :  { %3879 = vmatpush.xpose.msk.msra.mxu0 %vm166_vm0, %v161_v0  ;;  %v32_v2 = vld [vmem:[%s7309_s0] sm:$0xff]  ;;  %v33_v3 = vld [vmem:[%s7309_s0 + $0x8] sm:$0xff]  ;;  %v35_v5 = vld [vmem:[%s7309_s0 + $0x18] sm:$0xff] }
   0x3   :  { %v36_v6 = vld [vmem:[%s7309_s0 + $0x20] sm:$0xff]  ;;  %v37_v7 = vld [vmem:[%s7309_s0 + $0x28] sm:$0xff]  ;;  %v38_v8 = vld [vmem:[%s7309_s0 + $0x30] sm:$0xff] }
   0x4   :  { %v39_v9 = vld [vmem:[%s7309_s0 + $0x38] sm:$0xff]  ;;  %v40_v10 = vld [vmem:[%s7309_s0 + $0x40] sm:$0xff]  ;;  %v41_v11 = vld [vmem:[%s7309_s0 + $0x48] sm:$0xff] }
   0x5   :  { %v42_v12 = vld [vmem:[%s7309_s0 + $0x50] sm:$0xff]  ;;  %v43_v13 = vld [vmem:[%s7309_s0 + $0x58] sm:$0xff]  ;;  %v44_v14 = vld [vmem:[%s7309_s0 + $0x60] sm:$0xff] }
   0x6   :  { %3880 = vmatpush.xpose.msk.msra.mxu0 %vm166_vm0, %v160_v1  ;;  %v1086_v15 = vld [vmem:[%s7310_s3] sm:$0xff]  ;;  %v45_v16 = vld [vmem:[%s7309_s0 + $0x68] sm:$0xff]  ;;  %v46_v17 = vld [vmem:[%s7309_s0 + $0x70] sm:$0xff] }
   0x7   :  { %4009 = vmatpush.xpose.msk.msra.mxu1 %vm1091_vm1, %v1086_v15  ;;  %v47_v18 = vld [vmem:[%s7309_s0 + $0x78] sm:$0xff]  ;;  %v5324_v19 = vld [vmem:[%s7308_s2] ss:$0 sm:$0xff]  ;;  %v49_v24 = vld [vmem:[%s7309_s0 + $0x88] sm:$0xff] }
   0x8   :  { %v48_v21 = vld [vmem:[%s7309_s0 + $0x80] sm:$0xff]  ;;  %v50_v28 = vld [vmem:[%s7309_s0 + $0x90] sm:$0xff]  ;;  %v51_v32 = vld [vmem:[%s7309_s0 + $0x98] sm:$0xff] }
   0x9   :  { %3881 = vmatmul.msk.f32.vlgmr.msra.gmra.mxu0 %vm166_vm0, %v32_v2  ;;  %v52_v36 = vld [vmem:[%s7309_s0 + $0xa0] sm:$0xff]  ;;  %v53_v40 = vld [vmem:[%s7309_s0 + $0xa8] sm:$0xff]  ;;  %v54_v44 = vld [vmem:[%s7309_s0 + $0xb0] sm:$0xff] }
   0xa   :  { %v55_v48 = vld [vmem:[%s7309_s0 + $0xb8] sm:$0xff]  ;;  %v56_v52 = vld [vmem:[%s7309_s0 + $0xc0] sm:$0xff]  ;;  %v57_v56 = vld [vmem:[%s7309_s0 + $0xc8] sm:$0xff] }
   0xb   :  { %v58_v60 = vld [vmem:[%s7309_s0 + $0xd0] sm:$0xff]  ;;  %v59_v0 = vld [vmem:[%s7309_s0 + $0xd8] sm:$0xff] }
  0x11   :  { %3882 = vmatmul.msk.f32.gmra.mxu0 %vm166_vm0, %v33_v3 }
  0x19   :  { %3883 = vmatmul.msk.f32.gmra.mxu0 %vm166_vm0, %v34_v4  ;;  %v60_v4 = vld [vmem:[%s7309_s0 + $0xe0] sm:$0xff] }
  0x21   :  { %3884 = vmatmul.msk.f32.gmra.mxu0 %vm166_vm0, %v35_v5 }
  0x29   :  { %3885 = vmatmul.msk.f32.gmra.mxu0 %vm166_vm0, %v36_v6 }
  0x31   :  { %3886 = vmatmul.msk.f32.gmra.mxu0 %vm166_vm0, %v37_v7 }
  0x39   :  { %3887 = vmatmul.msk.f32.gmra.mxu0 %vm166_vm0, %v38_v8  ;;  %v61_v8 = vld [vmem:[%s7309_s0 + $0xe8] sm:$0xff] }
  0x41   :  { %3888 = vmatmul.msk.f32.gmra.mxu0 %vm166_vm0, %v39_v9 }
  0x49   :  { %3889 = vmatmul.msk.f32.gmra.mxu0 %vm166_vm0, %v40_v10 }
  0x51   :  { %3890 = vmatmul.msk.f32.gmra.mxu0 %vm166_vm0, %v41_v11  ;;  %v2009_v11 = vld [vmem:[%s7312_s5 + $0x8] sm:$0xff] }
  0x52   :  { %4138 = vmatpush.xpose.msk.msra.mxu2 %vm2014_vm2, %v2009_v11 }
  0x59   :  { %3891 = vmatmul.msk.f32.gmra.mxu0 %vm166_vm0, %v42_v12  ;;  %v2008_v12 = vld [vmem:[%s7312_s5] sm:$0xff] }
  0x5a   :  { %4139 = vmatpush.xpose.msk.msra.mxu2 %vm2014_vm2, %v2008_v12 }
  0x61   :  { %3892 = vmatmul.msk.f32.gmra.mxu0 %vm166_vm0, %v43_v13 }
  0x69   :  { %3893 = vmatmul.msk.f32.gmra.mxu0 %vm166_vm0, %v44_v14  ;;  %v62_v14 = vld [vmem:[%s7309_s0 + $0xf0] sm:$0xff] }
  0x71   :  { %3894 = vmatmul.msk.f32.gmra.mxu0 %vm166_vm0, %v45_v16 }
  0x79   :  { %3895 = vmatmul.msk.f32.gmra.mxu0 %vm166_vm0, %v46_v17 }
  0x81   :  { %3896 = vmatmul.msk.f32.gmra.mxu0 %vm166_vm0, %v47_v18  ;;  %v63_v18 = vld [vmem:[%s7309_s0 + $0xf8] sm:$0xff] }
  0x86   :  { %v574_v20 = vpop.f32.mrf.mxu0 }
  0x87   :  { %v575_v22 = vadd.f32 %v5324_v19, %v574_v20 }
  0x89   :  { %4412 = vtanh.f32 %v575_v22  ;;  %3897 = vmatmul.msk.f32.gmra.mxu0 %vm166_vm0, %v48_v21 }
  0x8e   :  { %v577_v23 = vpop.f32.mrf.mxu0 }
  0x8f   :  { %v4413_v25 = vpop.eup %4412  ;;  %v578_v26 = vadd.f32 %v5324_v19, %v577_v23  ;;  %v64_v23 = vld [vmem:[%s7309_s0 + $0x100] sm:$0xff] }
  0x90   :  { %4010 = vmatmul.msk.f32.vlgmr.msra.gmra.mxu1 %vm1091_vm1, %v4413_v25 }
  0x91   :  { %4414 = vtanh.f32 %v578_v26  ;;  %3898 = vmatmul.msk.f32.gmra.mxu0 %vm166_vm0, %v49_v24  ;;  %v5438_v26 = vld [vmem:[%s7311_s4] ss:$0 sm:$0xff] }
  0x96   :  { %v580_v27 = vpop.f32.mrf.mxu0 }
  0x97   :  { %v4415_v29 = vpop.eup %4414  ;;  %v581_v30 = vadd.f32 %v5324_v19, %v580_v27 }
  0x98   :  { %4011 = vmatmul.msk.f32.gmra.mxu1 %vm1091_vm1, %v4415_v29 }
  0x99   :  { %4416 = vtanh.f32 %v581_v30  ;;  %3899 = vmatmul.msk.f32.gmra.mxu0 %vm166_vm0, %v50_v28  ;;  %v65_v30 = vld [vmem:[%s7309_s0 + $0x108] sm:$0xff] }
  0x9e   :  { %v583_v31 = vpop.f32.mrf.mxu0 }
  0x9f   :  { %v4417_v33 = vpop.eup %4416  ;;  %v584_v34 = vadd.f32 %v5324_v19, %v583_v31 }
  0xa0   :  { %4012 = vmatmul.msk.f32.gmra.mxu1 %vm1091_vm1, %v4417_v33 }
  0xa1   :  { %4418 = vtanh.f32 %v584_v34  ;;  %3900 = vmatmul.msk.f32.gmra.mxu0 %vm166_vm0, %v51_v32 }
  0xa6   :  { %v586_v35 = vpop.f32.mrf.mxu0 }
  0xa7   :  { %v4419_v37 = vpop.eup %4418  ;;  %v587_v38 = vadd.f32 %v5324_v19, %v586_v35 }
  0xa8   :  { %4013 = vmatmul.msk.f32.gmra.mxu1 %vm1091_vm1, %v4419_v37  ;;  %v66_v37 = vld [vmem:[%s7309_s0 + $0x110] sm:$0xff] }
  0xa9   :  { %4420 = vtanh.f32 %v587_v38  ;;  %3901 = vmatmul.msk.f32.gmra.mxu0 %vm166_vm0, %v52_v36 }
  0xae   :  { %v589_v39 = vpop.f32.mrf.mxu0 }
  0xaf   :  { %v4421_v41 = vpop.eup %4420  ;;  %v590_v42 = vadd.f32 %v5324_v19, %v589_v39 }
  0xb0   :  { %4014 = vmatmul.msk.f32.gmra.mxu1 %vm1091_vm1, %v4421_v41 }
  0xb1   :  { %4422 = vtanh.f32 %v590_v42  ;;  %3902 = vmatmul.msk.f32.gmra.mxu0 %vm166_vm0, %v53_v40 }
  0xb6   :  { %v592_v43 = vpop.f32.mrf.mxu0 }
  0xb7   :  { %v4423_v45 = vpop.eup %4422  ;;  %v593_v46 = vadd.f32 %v5324_v19, %v592_v43 }
  0xb8   :  { %4015 = vmatmul.msk.f32.gmra.mxu1 %vm1091_vm1, %v4423_v45 }
  0xb9   :  { %4424 = vtanh.f32 %v593_v46  ;;  %3903 = vmatmul.msk.f32.gmra.mxu0 %vm166_vm0, %v54_v44  ;;  %v67_v44 = vld [vmem:[%s7309_s0 + $0x118] sm:$0xff] }
  0xbe   :  { %v595_v47 = vpop.f32.mrf.mxu0 }
  0xbf   :  { %v4425_v49 = vpop.eup %4424  ;;  %v596_v50 = vadd.f32 %v5324_v19, %v595_v47 }
  0xc0   :  { %4016 = vmatmul.msk.f32.gmra.mxu1 %vm1091_vm1, %v4425_v49 }
  0xc1   :  { %4426 = vtanh.f32 %v596_v50  ;;  %3904 = vmatmul.msk.f32.gmra.mxu0 %vm166_vm0, %v55_v48 }
  0xc6   :  { %v598_v51 = vpop.f32.mrf.mxu0 }
  0xc7   :  { %v4427_v53 = vpop.eup %4426  ;;  %v599_v54 = vadd.f32 %v5324_v19, %v598_v51  ;;  %v68_v51 = vld [vmem:[%s7309_s0 + $0x120] sm:$0xff] }
  0xc8   :  { %4017 = vmatmul.msk.f32.gmra.mxu1 %vm1091_vm1, %v4427_v53 }
  0xc9   :  { %4428 = vtanh.f32 %v599_v54  ;;  %3905 = vmatmul.msk.f32.gmra.mxu0 %vm166_vm0, %v56_v52 }
  0xce   :  { %v601_v55 = vpop.f32.mrf.mxu0 }
  0xcf   :  { %v4429_v57 = vpop.eup %4428  ;;  %v602_v58 = vadd.f32 %v5324_v19, %v601_v55 }
  0xd0   :  { %4018 = vmatmul.msk.f32.gmra.mxu1 %vm1091_vm1, %v4429_v57 }
  0xd1   :  { %4430 = vtanh.f32 %v602_v58  ;;  %3906 = vmatmul.msk.f32.gmra.mxu0 %vm166_vm0, %v57_v56  ;;  %v69_v58 = vld [vmem:[%s7309_s0 + $0x128] sm:$0xff] }
  0xd6   :  { %v604_v59 = vpop.f32.mrf.mxu0 }
  0xd7   :  { %v4431_v61 = vpop.eup %4430  ;;  %v605_v62 = vadd.f32 %v5324_v19, %v604_v59 }
  0xd8   :  { %4019 = vmatmul.msk.f32.gmra.mxu1 %vm1091_vm1, %v4431_v61 }
  0xd9   :  { %4432 = vtanh.f32 %v605_v62  ;;  %3907 = vmatmul.msk.f32.gmra.mxu0 %vm166_vm0, %v58_v60 }
  0xde   :  { %v607_v63 = vpop.f32.mrf.mxu0 }
  0xdf   :  { %v4433_v1 = vpop.eup %4432  ;;  %v608_v2 = vadd.f32 %v5324_v19, %v607_v63 }
  0xe0   :  { %4020 = vmatmul.msk.f32.gmra.mxu1 %vm1091_vm1, %v4433_v1  ;;  %v70_v1 = vld [vmem:[%s7309_s0 + $0x130] sm:$0xff] }
  0xe1   :  { %4434 = vtanh.f32 %v608_v2  ;;  %3908 = vmatmul.msk.f32.gmra.mxu0 %vm166_vm0, %v59_v0 }
  0xe6   :  { %v610_v3 = vpop.f32.mrf.mxu0 }
  0xe7   :  { %v4435_v5 = vpop.eup %4434  ;;  %v611_v6 = vadd.f32 %v5324_v19, %v610_v3 }
  0xe8   :  { %4021 = vmatmul.msk.f32.gmra.mxu1 %vm1091_vm1, %v4435_v5 }
  0xe9   :  { %4436 = vtanh.f32 %v611_v6  ;;  %3909 = vmatmul.msk.f32.gmra.mxu0 %vm166_vm0, %v60_v4 }
  0xee   :  { %v613_v7 = vpop.f32.mrf.mxu0 }
  0xef   :  { %v4437_v9 = vpop.eup %4436  ;;  %v614_v10 = vadd.f32 %v5324_v19, %v613_v7 }
  0xf0   :  { %4022 = vmatmul.msk.f32.gmra.mxu1 %vm1091_vm1, %v4437_v9 }
  0xf1   :  { %4438 = vtanh.f32 %v614_v10  ;;  %3910 = vmatmul.msk.f32.gmra.mxu0 %vm166_vm0, %v61_v8  ;;  %v71_v8 = vld [vmem:[%s7309_s0 + $0x138] sm:$0xff] }
  0xf6   :  { %v616_v13 = vpop.f32.mrf.mxu0 }
  0xf7   :  { %v4439_v15 = vpop.eup %4438  ;;  %v617_v16 = vadd.f32 %v5324_v19, %v616_v13 }
  0xf8   :  { %4023 = vmatmul.msk.f32.gmra.mxu1 %vm1091_vm1, %v4439_v15  ;;  %v72_v15 = vld [vmem:[%s7309_s0 + $0x140] sm:$0xff] }
  0xf9   :  { %4440 = vtanh.f32 %v617_v16  ;;  %3911 = vmatmul.msk.f32.gmra.mxu0 %vm166_vm0, %v62_v14 }
  0xfe   :  { %v619_v17 = vpop.f32.mrf.mxu0 }
  0xff   :  { %v4441_v20 = vpop.eup %4440  ;;  %v620_v21 = vadd.f32 %v5324_v19, %v619_v17 }
 0x100   :  { %4024 = vmatmul.msk.f32.gmra.mxu1 %vm1091_vm1, %v4441_v20 }
 0x101   :  { %4442 = vtanh.f32 %v620_v21  ;;  %3912 = vmatmul.msk.f32.gmra.mxu0 %vm166_vm0, %v63_v18 }
 0x106   :  { %v622_v22 = vpop.f32.mrf.mxu0 }
 0x107   :  { %v4443_v24 = vpop.eup %4442  ;;  %v623_v25 = vadd.f32 %v5324_v19, %v622_v22 }
 0x108   :  { %4025 = vmatmul.msk.f32.gmra.mxu1 %vm1091_vm1, %v4443_v24 }
 0x109   :  { %4444 = vtanh.f32 %v623_v25  ;;  %3913 = vmatmul.msk.f32.gmra.mxu0 %vm166_vm0, %v64_v23  ;;  %v73_v23 = vld [vmem:[%s7309_s0 + $0x148] sm:$0xff] }
 0x10d   :  { %v1496_v27 = vpop.f32.mrf.mxu1 }
 0x10e   :  { %v1497_v28 = vadd.f32 %v5438_v26, %v1496_v27  ;;  %v625_v29 = vpop.f32.mrf.mxu0 }
 0x10f   :  { %v4445_v31 = vpop.eup %4444  ;;  %v626_v32 = vadd.f32 %v5324_v19, %v625_v29 }
 0x110   :  { %4446 = vtanh.f32 %v1497_v28  ;;  %4026 = vmatmul.msk.f32.gmra.mxu1 %vm1091_vm1, %v4445_v31  ;;  %v74_v31 = vld [vmem:[%s7309_s0 + $0x150] sm:$0xff] }
 0x111   :  { %4448 = vtanh.f32 %v626_v32  ;;  %3914 = vmatmul.msk.f32.gmra.mxu0 %vm166_vm0, %v65_v30 }
 0x115   :  { %v1499_v33 = vpop.f32.mrf.mxu1 }
 0x116   :  { %v4447_v34 = vpop.eup %4446  ;;  %v1500_v35 = vadd.f32 %v5438_v26, %v1499_v33  ;;  %v628_v36 = vpop.f32.mrf.mxu0 }
 0x117   :  { %v4449_v38 = vpop.eup %4448  ;;  %v629_v39 = vadd.f32 %v5324_v19, %v628_v36  ;;  %4140 = vmatmul.msk.f32.vlgmr.msra.gmra.mxu2 %vm2014_vm2, %v4447_v34 }
 0x118   :  { %4450 = vtanh.f32 %v1500_v35  ;;  %4027 = vmatmul.msk.f32.gmra.mxu1 %vm1091_vm1, %v4449_v38  ;;  %v75_v38 = vld [vmem:[%s7309_s0 + $0x158] sm:$0xff] }
 0x119   :  { %4452 = vtanh.f32 %v629_v39  ;;  %3915 = vmatmul.msk.f32.gmra.mxu0 %vm166_vm0, %v66_v37 }
 0x11d   :  { %v1502_v40 = vpop.f32.mrf.mxu1 }
 0x11e   :  { %v4451_v41 = vpop.eup %4450  ;;  %v1503_v42 = vadd.f32 %v5438_v26, %v1502_v40  ;;  %v631_v43 = vpop.f32.mrf.mxu0 }
 0x11f   :  { %v4453_v45 = vpop.eup %4452  ;;  %v632_v46 = vadd.f32 %v5324_v19, %v631_v43  ;;  %4141 = vmatmul.msk.f32.gmra.mxu2 %vm2014_vm2, %v4451_v41 }
 0x120   :  { %4454 = vtanh.f32 %v1503_v42  ;;  %4028 = vmatmul.msk.f32.gmra.mxu1 %vm1091_vm1, %v4453_v45  ;;  %v76_v45 = vld [vmem:[%s7309_s0 + $0x160] sm:$0xff] }
 0x121   :  { %4456 = vtanh.f32 %v632_v46  ;;  %3916 = vmatmul.msk.f32.gmra.mxu0 %vm166_vm0, %v67_v44 }
 0x125   :  { %v1505_v47 = vpop.f32.mrf.mxu1 }
 0x126   :  { %v4455_v48 = vpop.eup %4454  ;;  %v1506_v49 = vadd.f32 %v5438_v26, %v1505_v47  ;;  %v634_v50 = vpop.f32.mrf.mxu0 }
 0x127   :  { %v4457_v52 = vpop.eup %4456  ;;  %v635_v53 = vadd.f32 %v5324_v19, %v634_v50  ;;  %4142 = vmatmul.msk.f32.gmra.mxu2 %vm2014_vm2, %v4455_v48 }
 0x128   :  { %4458 = vtanh.f32 %v1506_v49  ;;  %4029 = vmatmul.msk.f32.gmra.mxu1 %vm1091_vm1, %v4457_v52  ;;  %v77_v52 = vld [vmem:[%s7309_s0 + $0x168] sm:$0xff] }
 0x129   :  { %4460 = vtanh.f32 %v635_v53  ;;  %3917 = vmatmul.msk.f32.gmra.mxu0 %vm166_vm0, %v68_v51 }
 0x12d   :  { %v1508_v54 = vpop.f32.mrf.mxu1 }
 0x12e   :  { %v4459_v55 = vpop.eup %4458  ;;  %v1509_v56 = vadd.f32 %v5438_v26, %v1508_v54  ;;  %v637_v57 = vpop.f32.mrf.mxu0 }
 0x12f   :  { %v4461_v59 = vpop.eup %4460  ;;  %v638_v60 = vadd.f32 %v5324_v19, %v637_v57  ;;  %4143 = vmatmul.msk.f32.gmra.mxu2 %vm2014_vm2, %v4459_v55  ;;  %v2939_v55 = vld [vmem:[%s7314_s7 + $0x28] sm:$0x1] }
 0x130   :  { %4462 = vtanh.f32 %v1509_v56  ;;  %4030 = vmatmul.msk.f32.gmra.mxu1 %vm1091_vm1, %v4461_v59  ;;  %4402 = vmatpush.xpose.msk.msra.mxu3 %vm1091_vm1, %v2939_v55 }
 0x131   :  { %4464 = vtanh.f32 %v638_v60  ;;  %3918 = vmatmul.msk.f32.gmra.mxu0 %vm166_vm0, %v69_v58  ;;  %4268 = vmatpush.xpose.msk.msrb.mxu1 %vm1091_vm1, %v2939_v55  ;;  %v78_v60 = vld [vmem:[%s7309_s0 + $0x170] sm:$0xff] }
 0x135   :  { %v1511_v61 = vpop.f32.mrf.mxu1 }
 0x136   :  { %v4463_v62 = vpop.eup %4462  ;;  %v1512_v63 = vadd.f32 %v5438_v26, %v1511_v61  ;;  %v640_v0 = vpop.f32.mrf.mxu0 }
 0x137   :  { %v4465_v2 = vpop.eup %4464  ;;  %v641_v3 = vadd.f32 %v5324_v19, %v640_v0  ;;  %4144 = vmatmul.msk.f32.gmra.mxu2 %vm2014_vm2, %v4463_v62  ;;  %v2937_v0 = vld [vmem:[%s7314_s7 + $0x18] sm:$0xff] }
 0x138   :  { %4466 = vtanh.f32 %v1512_v63  ;;  %4031 = vmatmul.msk.f32.gmra.mxu1 %vm1091_vm1, %v4465_v2  ;;  %v2938_v63 = vld [vmem:[%s7314_s7 + $0x20] sm:$0xff] }
 0x139   :  { %4468 = vtanh.f32 %v641_v3  ;;  %3919 = vmatmul.msk.f32.gmra.mxu0 %vm166_vm0, %v70_v1  ;;  %4403 = vmatpush.xpose.msk.msra.mxu3 %vm1091_vm1, %v2938_v63 }
 0x13a   :  { %4269 = vmatpush.xpose.msk.msrb.mxu1 %vm1091_vm1, %v2938_v63 }
 0x13d   :  { %v1514_v4 = vpop.f32.mrf.mxu1  ;;  %4404 = vmatpush.xpose.msk.msra.mxu3 %vm1091_vm1, %v2937_v0 }
 0x13e   :  { %v4467_v5 = vpop.eup %4466  ;;  %v1515_v6 = vadd.f32 %v5438_v26, %v1514_v4  ;;  %v643_v7 = vpop.f32.mrf.mxu0  ;;  %4270 = vmatpush.xpose.msk.msrb.mxu1 %vm1091_vm1, %v2937_v0 }
 0x13f   :  { %v4469_v9 = vpop.eup %4468  ;;  %v644_v10 = vadd.f32 %v5324_v19, %v643_v7  ;;  %4145 = vmatmul.msk.f32.gmra.mxu2 %vm2014_vm2, %v4467_v5  ;;  %v79_v5 = vld [vmem:[%s7309_s0 + $0x178] sm:$0xff] }
 0x140   :  { %4470 = vtanh.f32 %v1515_v6  ;;  %4032 = vmatmul.msk.f32.gmra.mxu1 %vm1091_vm1, %v4469_v9  ;;  %v2935_v9 = vld [vmem:[%s7314_s7 + $0x8] sm:$0xff] }
 0x141   :  { %4472 = vtanh.f32 %v644_v10  ;;  %3920 = vmatmul.msk.f32.gmra.mxu0 %vm166_vm0, %v71_v8  ;;  %v2936_v8 = vld [vmem:[%s7314_s7 + $0x10] sm:$0xff] }
 0x142   :  { %4405 = vmatpush.xpose.msk.msra.mxu3 %vm1091_vm1, %v2936_v8  ;;  %4271 = vmatpush.xpose.msk.msrb.mxu1 %vm1091_vm1, %v2936_v8 }
 0x145   :  { %v1517_v11 = vpop.f32.mrf.mxu1 }
 0x146   :  { %v4471_v12 = vpop.eup %4470  ;;  %v1518_v13 = vadd.f32 %v5438_v26, %v1517_v11  ;;  %v646_v14 = vpop.f32.mrf.mxu0  ;;  %4406 = vmatpush.xpose.msk.msra.mxu3 %vm1091_vm1, %v2935_v9  ;;  %4272 = vmatpush.xpose.msk.msrb.mxu1 %vm1091_vm1, %v2935_v9 }
 0x147   :  { %v4473_v16 = vpop.eup %4472  ;;  %v647_v17 = vadd.f32 %v5324_v19, %v646_v14  ;;  %4146 = vmatmul.msk.f32.gmra.mxu2 %vm2014_vm2, %v4471_v12  ;;  %v80_v14 = vld [vmem:[%s7309_s0 + $0x180] sm:$0xff] }
 0x148   :  { %4474 = vtanh.f32 %v1518_v13  ;;  %4033 = vmatmul.msk.f32.gmra.mxu1 %vm1091_vm1, %v4473_v16 }
 0x149   :  { %4476 = vtanh.f32 %v647_v17  ;;  %3921 = vmatmul.msk.f32.gmra.mxu0 %vm166_vm0, %v72_v15  ;;  %v2934_v17 = vld [vmem:[%s7314_s7] sm:$0xff] }
 0x14a   :  { %4407 = vmatpush.xpose.msk.msra.mxu3 %vm1091_vm1, %v2934_v17  ;;  %4273 = vmatpush.xpose.msk.msrb.mxu1 %vm1091_vm1, %v2934_v17 }
 0x14d   :  { %v1520_v18 = vpop.f32.mrf.mxu1 }
 0x14e   :  { %v4475_v20 = vpop.eup %4474  ;;  %v1521_v21 = vadd.f32 %v5438_v26, %v1520_v18  ;;  %v649_v22 = vpop.f32.mrf.mxu0 }
 0x14f   :  { %v4477_v24 = vpop.eup %4476  ;;  %v650_v25 = vadd.f32 %v5324_v19, %v649_v22  ;;  %4147 = vmatmul.msk.f32.gmra.mxu2 %vm2014_vm2, %v4475_v20 }
 0x150   :  { %4478 = vtanh.f32 %v1521_v21  ;;  %4034 = vmatmul.msk.f32.gmra.mxu1 %vm1091_vm1, %v4477_v24 }
 0x151   :  { %4480 = vtanh.f32 %v650_v25  ;;  %3922 = vmatmul.msk.f32.gmra.mxu0 %vm166_vm0, %v73_v23  ;;  %v81_v23 = vld [vmem:[%s7309_s0 + $0x188] sm:$0xff] }
 0x155   :  { %v1523_v27 = vpop.f32.mrf.mxu1 }
 0x156   :  { %v4479_v28 = vpop.eup %4478  ;;  %v1524_v29 = vadd.f32 %v5438_v26, %v1523_v27  ;;  %v652_v30 = vpop.f32.mrf.mxu0 }
 0x157   :  { %v4481_v32 = vpop.eup %4480  ;;  %v653_v33 = vadd.f32 %v5324_v19, %v652_v30  ;;  %4148 = vmatmul.msk.f32.gmra.mxu2 %vm2014_vm2, %v4479_v28 }
 0x158   :  { %4482 = vtanh.f32 %v1524_v29  ;;  %4035 = vmatmul.msk.f32.gmra.mxu1 %vm1091_vm1, %v4481_v32 }
 0x159   :  { %4484 = vtanh.f32 %v653_v33  ;;  %3923 = vmatmul.msk.f32.gmra.mxu0 %vm166_vm0, %v74_v31  ;;  %v82_v31 = vld [vmem:[%s7309_s0 + $0x190] sm:$0xff] }
 0x15d   :  { %v1526_v34 = vpop.f32.mrf.mxu1 }
 0x15e   :  { %v4483_v35 = vpop.eup %4482  ;;  %v1527_v36 = vadd.f32 %v5438_v26, %v1526_v34  ;;  %v655_v37 = vpop.f32.mrf.mxu0 }
 0x15f   :  { %v4485_v39 = vpop.eup %4484  ;;  %v656_v40 = vadd.f32 %v5324_v19, %v655_v37  ;;  %4149 = vmatmul.msk.f32.gmra.mxu2 %vm2014_vm2, %v4483_v35 }
 0x160   :  { %4486 = vtanh.f32 %v1527_v36  ;;  %4036 = vmatmul.msk.f32.gmra.mxu1 %vm1091_vm1, %v4485_v39  ;;  %v83_v39 = vld [vmem:[%s7309_s0 + $0x198] sm:$0xff] }
 0x161   :  { %4488 = vtanh.f32 %v656_v40  ;;  %3924 = vmatmul.msk.f32.gmra.mxu0 %vm166_vm0, %v75_v38 }
 0x165   :  { %v1529_v41 = vpop.f32.mrf.mxu1 }
 0x166   :  { %v4487_v42 = vpop.eup %4486  ;;  %v1530_v43 = vadd.f32 %v5438_v26, %v1529_v41  ;;  %v658_v44 = vpop.f32.mrf.mxu0 }
 0x167   :  { %v4489_v46 = vpop.eup %4488  ;;  %v659_v47 = vadd.f32 %v5324_v19, %v658_v44  ;;  %4150 = vmatmul.msk.f32.gmra.mxu2 %vm2014_vm2, %v4487_v42  ;;  %v5625_v42 = vld [vmem:[%s7313_s6] ss:$0 sm:$0xff] }
 0x168   :  { %4490 = vtanh.f32 %v1530_v43  ;;  %4037 = vmatmul.msk.f32.gmra.mxu1 %vm1091_vm1, %v4489_v46 }
 0x169   :  { %4492 = vtanh.f32 %v659_v47  ;;  %3925 = vmatmul.msk.f32.gmra.mxu0 %vm166_vm0, %v76_v45 }
 0x16d   :  { %v1532_v48 = vpop.f32.mrf.mxu1 }
 0x16e   :  { %v4491_v49 = vpop.eup %4490  ;;  %v1533_v50 = vadd.f32 %v5438_v26, %v1532_v48  ;;  %v661_v51 = vpop.f32.mrf.mxu0 }
 0x16f   :  { %v4493_v53 = vpop.eup %4492  ;;  %v662_v54 = vadd.f32 %v5324_v19, %v661_v51  ;;  %4151 = vmatmul.msk.f32.gmra.mxu2 %vm2014_vm2, %v4491_v49  ;;  %v84_v49 = vld [vmem:[%s7309_s0 + $0x1a0] sm:$0xff] }
 0x170   :  { %4494 = vtanh.f32 %v1533_v50  ;;  %4038 = vmatmul.msk.f32.gmra.mxu1 %vm1091_vm1, %v4493_v53 }
 0x171   :  { %4496 = vtanh.f32 %v662_v54  ;;  %3926 = vmatmul.msk.f32.gmra.mxu0 %vm166_vm0, %v77_v52 }
 0x175   :  { %v1535_v56 = vpop.f32.mrf.mxu1 }
 0x176   :  { %v4495_v57 = vpop.eup %4494  ;;  %v1536_v58 = vadd.f32 %v5438_v26, %v1535_v56  ;;  %v664_v59 = vpop.f32.mrf.mxu0 }
 0x177   :  { %v4497_v61 = vpop.eup %4496  ;;  %v665_v62 = vadd.f32 %v5324_v19, %v664_v59  ;;  %4152 = vmatmul.msk.f32.gmra.mxu2 %vm2014_vm2, %v4495_v57  ;;  %v85_v59 = vld [vmem:[%s7309_s0 + $0x1a8] sm:$0xff] }
 0x178   :  { %4498 = vtanh.f32 %v1536_v58  ;;  %4039 = vmatmul.msk.f32.gmra.mxu1 %vm1091_vm1, %v4497_v61 }
 0x179   :  { %4500 = vtanh.f32 %v665_v62  ;;  %3927 = vmatmul.msk.f32.gmra.mxu0 %vm166_vm0, %v78_v60 }
 0x17d   :  { %v1538_v1 = vpop.f32.mrf.mxu1 }
 0x17e   :  { %v4499_v2 = vpop.eup %4498  ;;  %v1539_v3 = vadd.f32 %v5438_v26, %v1538_v1  ;;  %v667_v4 = vpop.f32.mrf.mxu0 }
 0x17f   :  { %v4501_v6 = vpop.eup %4500  ;;  %v668_v7 = vadd.f32 %v5324_v19, %v667_v4  ;;  %4153 = vmatmul.msk.f32.gmra.mxu2 %vm2014_vm2, %v4499_v2 }
 0x180   :  { %4502 = vtanh.f32 %v1539_v3  ;;  %4040 = vmatmul.msk.f32.gmra.mxu1 %vm1091_vm1, %v4501_v6 }
 0x181   :  { %4504 = vtanh.f32 %v668_v7  ;;  %3928 = vmatmul.msk.f32.gmra.mxu0 %vm166_vm0, %v79_v5  ;;  %v86_v5 = vld [vmem:[%s7309_s0 + $0x1b0] sm:$0xff] }
 0x185   :  { %v1541_v10 = vpop.f32.mrf.mxu1 }
 0x186   :  { %v4503_v11 = vpop.eup %4502  ;;  %v1542_v12 = vadd.f32 %v5438_v26, %v1541_v10  ;;  %v670_v13 = vpop.f32.mrf.mxu0 }
 0x187   :  { %v4505_v15 = vpop.eup %4504  ;;  %v671_v16 = vadd.f32 %v5324_v19, %v670_v13  ;;  %4154 = vmatmul.msk.f32.gmra.mxu2 %vm2014_vm2, %v4503_v11 }
 0x188   :  { %4506 = vtanh.f32 %v1542_v12  ;;  %4041 = vmatmul.msk.f32.gmra.mxu1 %vm1091_vm1, %v4505_v15  ;;  %v87_v15 = vld [vmem:[%s7309_s0 + $0x1b8] sm:$0xff] }
 0x189   :  { %4508 = vtanh.f32 %v671_v16  ;;  %3929 = vmatmul.msk.f32.gmra.mxu0 %vm166_vm0, %v80_v14 }
 0x18d   :  { %v1544_v18 = vpop.f32.mrf.mxu1 }
 0x18e   :  { %v4507_v20 = vpop.eup %4506  ;;  %v1545_v21 = vadd.f32 %v5438_v26, %v1544_v18  ;;  %v673_v22 = vpop.f32.mrf.mxu0 }
 0x18f   :  { %v4509_v24 = vpop.eup %4508  ;;  %v674_v25 = vadd.f32 %v5324_v19, %v673_v22  ;;  %4155 = vmatmul.msk.f32.gmra.mxu2 %vm2014_vm2, %v4507_v20 }
 0x190   :  { %4510 = vtanh.f32 %v1545_v21  ;;  %4042 = vmatmul.msk.f32.gmra.mxu1 %vm1091_vm1, %v4509_v24 }
 0x191   :  { %4512 = vtanh.f32 %v674_v25  ;;  %3930 = vmatmul.msk.f32.gmra.mxu0 %vm166_vm0, %v81_v23 }
 0x195   :  { %v1547_v27 = vpop.f32.mrf.mxu1 }
 0x196   :  { %v4511_v28 = vpop.eup %4510  ;;  %v1548_v29 = vadd.f32 %v5438_v26, %v1547_v27  ;;  %v676_v30 = vpop.f32.mrf.mxu0  ;;  %v88_v27 = vld [vmem:[%s7309_s0 + $0x1c0] sm:$0xff] }
 0x197   :  { %v4513_v32 = vpop.eup %4512  ;;  %v677_v33 = vadd.f32 %v5324_v19, %v676_v30  ;;  %4156 = vmatmul.msk.f32.gmra.mxu2 %vm2014_vm2, %v4511_v28 }
 0x198   :  { %4514 = vtanh.f32 %v1548_v29  ;;  %4043 = vmatmul.msk.f32.gmra.mxu1 %vm1091_vm1, %v4513_v32 }
 0x199   :  { %4516 = vtanh.f32 %v677_v33  ;;  %3931 = vmatmul.msk.f32.gmra.mxu0 %vm166_vm0, %v82_v31 }
 0x19a   :  { %v5613_v34 = vpop.f32.mrf.mxu2 }
 0x19d   :  { %v1550_v35 = vpop.f32.mrf.mxu1 }
 0x19e   :  { %v4515_v36 = vpop.eup %4514  ;;  %v1551_v37 = vadd.f32 %v5438_v26, %v1550_v35  ;;  %v679_v38 = vpop.f32.mrf.mxu0 }
 0x19f   :  { %v4517_v40 = vpop.eup %4516  ;;  %v680_v41 = vadd.f32 %v5324_v19, %v679_v38  ;;  %4157 = vmatmul.msk.f32.gmra.mxu2 %vm2014_vm2, %v4515_v36  ;;  %v89_v38 = vld [vmem:[%s7309_s0 + $0x1c8] sm:$0xff] }
 0x1a0   :  { %4518 = vtanh.f32 %v1551_v37  ;;  %4044 = vmatmul.msk.f32.gmra.mxu1 %vm1091_vm1, %v4517_v40 }
 0x1a1   :  { %4520 = vtanh.f32 %v680_v41  ;;  %3932 = vmatmul.msk.f32.gmra.mxu0 %vm166_vm0, %v83_v39 }
 0x1a2   :  { %v2425_v43 = vpop.f32.mrf.mxu2 }
 0x1a3   :  { %v2426_v44 = vadd.f32 %v5625_v42, %v2425_v43 }
 0x1a5   :  { %4522 = vtanh.f32 %v2426_v44  ;;  %v1553_v45 = vpop.f32.mrf.mxu1 }
 0x1a6   :  { %v4519_v46 = vpop.eup %4518  ;;  %v1554_v47 = vadd.f32 %v5438_v26, %v1553_v45  ;;  %v682_v48 = vpop.f32.mrf.mxu0 }
 0x1a7   :  { %v4521_v50 = vpop.eup %4520  ;;  %v683_v51 = vadd.f32 %v5324_v19, %v682_v48  ;;  %4158 = vmatmul.msk.f32.gmra.mxu2 %vm2014_vm2, %v4519_v46 }
 0x1a8   :  { %4524 = vtanh.f32 %v1554_v47  ;;  %4045 = vmatmul.msk.f32.gmra.mxu1 %vm1091_vm1, %v4521_v50 }
 0x1a9   :  { %4526 = vtanh.f32 %v683_v51  ;;  %3933 = vmatmul.msk.f32.gmra.mxu0 %vm166_vm0, %v84_v49  ;;  %v90_v49 = vld [vmem:[%s7309_s0 + $0x1d0] sm:$0xff] }
 0x1aa   :  { %v2428_v52 = vpop.f32.mrf.mxu2 }
 0x1ab   :  { %v4523_v53 = vpop.eup %4522  ;;  %v2429_v54 = vadd.f32 %v5625_v42, %v2428_v52 }
 0x1ac   :  { %4275 = vmatmul.msk.f32.vlgmr.msra.gmra.mxu3 %vm1091_vm1, %v4523_v53 }
 0x1ad   :  { %4528 = vtanh.f32 %v2429_v54  ;;  %v1556_v55 = vpop.f32.mrf.mxu1 }
 0x1ae   :  { %v4525_v56 = vpop.eup %4524  ;;  %v1557_v57 = vadd.f32 %v5438_v26, %v1556_v55  ;;  %v685_v58 = vpop.f32.mrf.mxu0 }
 0x1af   :  { %v4527_v60 = vpop.eup %4526  ;;  %v686_v61 = vadd.f32 %v5324_v19, %v685_v58  ;;  %4159 = vmatmul.msk.f32.gmra.mxu2 %vm2014_vm2, %v4525_v56 }
 0x1b0   :  { %4530 = vtanh.f32 %v1557_v57  ;;  %4046 = vmatmul.msk.f32.gmra.mxu1 %vm1091_vm1, %v4527_v60 }
 0x1b1   :  { %4532 = vtanh.f32 %v686_v61  ;;  %3934 = vmatmul.msk.f32.gmra.mxu0 %vm166_vm0, %v85_v59  ;;  %v91_v59 = vld [vmem:[%s7309_s0 + $0x1d8] sm:$0xff] }
 0x1b2   :  { %v2431_v62 = vpop.f32.mrf.mxu2 }
 0x1b3   :  { %v4529_v63 = vpop.eup %4528  ;;  %v2432_v0 = vadd.f32 %v5625_v42, %v2431_v62 }
 0x1b4   :  { %4276 = vmatmul.msk.f32.gmra.mxu3 %vm1091_vm1, %v4529_v63 }
 0x1b5   :  { %4534 = vtanh.f32 %v2432_v0  ;;  %v1559_v1 = vpop.f32.mrf.mxu1 }
 0x1b6   :  { %v4531_v2 = vpop.eup %4530  ;;  %v1560_v3 = vadd.f32 %v5438_v26, %v1559_v1  ;;  %v688_v4 = vpop.f32.mrf.mxu0 }
 0x1b7   :  { %v4533_v6 = vpop.eup %4532  ;;  %v689_v7 = vadd.f32 %v5324_v19, %v688_v4  ;;  %4160 = vmatmul.msk.f32.gmra.mxu2 %vm2014_vm2, %v4531_v2  ;;  %v92_v4 = vld [vmem:[%s7309_s0 + $0x1e0] sm:$0xff] }
 0x1b8   :  { %4536 = vtanh.f32 %v1560_v3  ;;  %4047 = vmatmul.msk.f32.gmra.mxu1 %vm1091_vm1, %v4533_v6  ;;  %v5716_v6 = vld [vmem:[%s7308_s2] ss:$0 sm:$0xff] }
 0x1b9   :  { %4538 = vtanh.f32 %v689_v7  ;;  %3935 = vmatmul.msk.f32.gmra.mxu0 %vm166_vm0, %v86_v5 }
 0x1ba   :  { %v2434_v8 = vpop.f32.mrf.mxu2 }
 0x1bb   :  { %v4535_v9 = vpop.eup %4534  ;;  %v2435_v10 = vadd.f32 %v5625_v42, %v2434_v8 }
 0x1bc   :  { %4277 = vmatmul.msk.f32.gmra.mxu3 %vm1091_vm1, %v4535_v9 }
 0x1bd   :  { %4540 = vtanh.f32 %v2435_v10  ;;  %v1562_v11 = vpop.f32.mrf.mxu1 }
 0x1be   :  { %v4537_v12 = vpop.eup %4536  ;;  %v1563_v13 = vadd.f32 %v5438_v26, %v1562_v11  ;;  %v691_v14 = vpop.f32.mrf.mxu0 }
 0x1bf   :  { %v4539_v16 = vpop.eup %4538  ;;  %v692_v17 = vadd.f32 %v5324_v19, %v691_v14  ;;  %4161 = vmatmul.msk.f32.gmra.mxu2 %vm2014_vm2, %v4537_v12 }
 0x1c0   :  { %4542 = vtanh.f32 %v1563_v13  ;;  %4048 = vmatmul.msk.f32.gmra.mxu1 %vm1091_vm1, %v4539_v16 }
 0x1c1   :  { %4544 = vtanh.f32 %v692_v17  ;;  %3936 = vmatmul.msk.f32.gmra.mxu0 %vm166_vm0, %v87_v15  ;;  %v93_v15 = vld [vmem:[%s7309_s0 + $0x1e8] sm:$0xff] }
 0x1c2   :  { %v2437_v18 = vpop.f32.mrf.mxu2 }
 0x1c3   :  { %v4541_v20 = vpop.eup %4540  ;;  %v2438_v21 = vadd.f32 %v5625_v42, %v2437_v18 }
 0x1c4   :  { %4278 = vmatmul.msk.f32.gmra.mxu3 %vm1091_vm1, %v4541_v20 }
 0x1c5   :  { %4546 = vtanh.f32 %v2438_v21  ;;  %v1565_v22 = vpop.f32.mrf.mxu1 }
 0x1c6   :  { %v4543_v23 = vpop.eup %4542  ;;  %v1566_v24 = vadd.f32 %v5438_v26, %v1565_v22  ;;  %v694_v25 = vpop.f32.mrf.mxu0 }
 0x1c7   :  { %v4545_v28 = vpop.eup %4544  ;;  %v695_v29 = vadd.f32 %v5324_v19, %v694_v25  ;;  %4162 = vmatmul.msk.f32.gmra.mxu2 %vm2014_vm2, %v4543_v23 }
 0x1c8   :  { %4548 = vtanh.f32 %v1566_v24  ;;  %4049 = vmatmul.msk.f32.gmra.mxu1 %vm1091_vm1, %v4545_v28 }
 0x1c9   :  { %4550 = vtanh.f32 %v695_v29  ;;  %3937 = vmatmul.msk.f32.gmra.mxu0 %vm166_vm0, %v88_v27  ;;  %v94_v27 = vld [vmem:[%s7309_s0 + $0x1f0] sm:$0xff] }
 0x1ca   :  { %v2440_v30 = vpop.f32.mrf.mxu2 }
 0x1cb   :  { %v4547_v31 = vpop.eup %4546  ;;  %v2441_v32 = vadd.f32 %v5625_v42, %v2440_v30 }
 0x1cc   :  { %4279 = vmatmul.msk.f32.gmra.mxu3 %vm1091_vm1, %v4547_v31 }
 0x1cd   :  { %4552 = vtanh.f32 %v2441_v32  ;;  %v1568_v33 = vpop.f32.mrf.mxu1 }
 0x1ce   :  { %v4549_v35 = vpop.eup %4548  ;;  %v1569_v36 = vadd.f32 %v5438_v26, %v1568_v33  ;;  %v697_v37 = vpop.f32.mrf.mxu0 }
 0x1cf   :  { %v4551_v39 = vpop.eup %4550  ;;  %v698_v40 = vadd.f32 %v5324_v19, %v697_v37  ;;  %4163 = vmatmul.msk.f32.gmra.mxu2 %vm2014_vm2, %v4549_v35 }
 0x1d0   :  { %4554 = vtanh.f32 %v1569_v36  ;;  %4050 = vmatmul.msk.f32.gmra.mxu1 %vm1091_vm1, %v4551_v39 }
 0x1d1   :  { %4556 = vtanh.f32 %v698_v40  ;;  %3938 = vmatmul.msk.f32.gmra.mxu0 %vm166_vm0, %v89_v38  ;;  %v95_v38 = vld [vmem:[%s7309_s0 + $0x1f8] sm:$0xff] }
 0x1d2   :  { %v2443_v41 = vpop.f32.mrf.mxu2 }
 0x1d3   :  { %v4553_v43 = vpop.eup %4552  ;;  %v2444_v44 = vadd.f32 %v5625_v42, %v2443_v41 }
 0x1d4   :  { %4280 = vmatmul.msk.f32.gmra.mxu3 %vm1091_vm1, %v4553_v43 }
 0x1d5   :  { %4558 = vtanh.f32 %v2444_v44  ;;  %v1571_v45 = vpop.f32.mrf.mxu1 }
 0x1d6   :  { %v4555_v46 = vpop.eup %4554  ;;  %v1572_v47 = vadd.f32 %v5438_v26, %v1571_v45  ;;  %v700_v48 = vpop.f32.mrf.mxu0 }
 0x1d7   :  { %v4557_v50 = vpop.eup %4556  ;;  %v701_v51 = vadd.f32 %v5324_v19, %v700_v48  ;;  %4164 = vmatmul.msk.f32.gmra.mxu2 %vm2014_vm2, %v4555_v46 }
 0x1d8   :  { %4560 = vtanh.f32 %v1572_v47  ;;  %4051 = vmatmul.msk.f32.gmra.mxu1 %vm1091_vm1, %v4557_v50 }
 0x1d9   :  { %4562 = vtanh.f32 %v701_v51  ;;  %3939 = vmatmul.msk.f32.gmra.mxu0 %vm166_vm0, %v90_v49  ;;  %v96_v49 = vld [vmem:[%s7309_s0 + $0x200] sm:$0xff] }
 0x1da   :  { %v2446_v52 = vpop.f32.mrf.mxu2 }
 0x1db   :  { %v4559_v53 = vpop.eup %4558  ;;  %v2447_v54 = vadd.f32 %v5625_v42, %v2446_v52 }
 0x1dc   :  { %4281 = vmatmul.msk.f32.gmra.mxu3 %vm1091_vm1, %v4559_v53 }
 0x1dd   :  { %4564 = vtanh.f32 %v2447_v54  ;;  %v1574_v55 = vpop.f32.mrf.mxu1 }
 0x1de   :  { %v4561_v56 = vpop.eup %4560  ;;  %v1575_v57 = vadd.f32 %v5438_v26, %v1574_v55  ;;  %v703_v58 = vpop.f32.mrf.mxu0 }
 0x1df   :  { %v4563_v60 = vpop.eup %4562  ;;  %v704_v61 = vadd.f32 %v5324_v19, %v703_v58  ;;  %4165 = vmatmul.msk.f32.gmra.mxu2 %vm2014_vm2, %v4561_v56 }
 0x1e0   :  { %4566 = vtanh.f32 %v1575_v57  ;;  %4052 = vmatmul.msk.f32.gmra.mxu1 %vm1091_vm1, %v4563_v60 }
 0x1e1   :  { %4568 = vtanh.f32 %v704_v61  ;;  %3940 = vmatmul.msk.f32.gmra.mxu0 %vm166_vm0, %v91_v59  ;;  %v97_v59 = vld [vmem:[%s7309_s0 + $0x208] sm:$0xff] }
 0x1e2   :  { %v2449_v62 = vpop.f32.mrf.mxu2 }
 0x1e3   :  { %v4565_v63 = vpop.eup %4564  ;;  %v2450_v0 = vadd.f32 %v5625_v42, %v2449_v62 }
 0x1e4   :  { %4282 = vmatmul.msk.f32.gmra.mxu3 %vm1091_vm1, %v4565_v63 }
 0x1e5   :  { %4570 = vtanh.f32 %v2450_v0  ;;  %v1577_v1 = vpop.f32.mrf.mxu1 }
 0x1e6   :  { %v4567_v2 = vpop.eup %4566  ;;  %v1578_v3 = vadd.f32 %v5438_v26, %v1577_v1  ;;  %v706_v19 = vpop.f32.mrf.mxu0 }
 0x1e7   :  { %v4569_v5 = vpop.eup %4568  ;;  %v707_v7 = vadd.f32 %v5716_v6, %v706_v19  ;;  %4166 = vmatmul.msk.f32.gmra.mxu2 %vm2014_vm2, %v4567_v2 }
 0x1e8   :  { %4572 = vtanh.f32 %v1578_v3  ;;  %4053 = vmatmul.msk.f32.gmra.mxu1 %vm1091_vm1, %v4569_v5 }
 0x1e9   :  { %4574 = vtanh.f32 %v707_v7  ;;  %3941 = vmatmul.msk.f32.gmra.mxu0 %vm166_vm0, %v92_v4  ;;  %v98_v4 = vld [vmem:[%s7309_s0 + $0x210] sm:$0xff] }
 0x1ea   :  { %v2452_v8 = vpop.f32.mrf.mxu2 }
 0x1eb   :  { %v4571_v9 = vpop.eup %4570  ;;  %v2453_v10 = vadd.f32 %v5625_v42, %v2452_v8 }
 0x1ec   :  { %4283 = vmatmul.msk.f32.gmra.mxu3 %vm1091_vm1, %v4571_v9 }
 0x1ed   :  { %4576 = vtanh.f32 %v2453_v10  ;;  %v1580_v11 = vpop.f32.mrf.mxu1 }
 0x1ee   :  { %v4573_v12 = vpop.eup %4572  ;;  %v1581_v13 = vadd.f32 %v5438_v26, %v1580_v11  ;;  %v709_v14 = vpop.f32.mrf.mxu0 }
 0x1ef   :  { %v4575_v16 = vpop.eup %4574  ;;  %v710_v17 = vadd.f32 %v5716_v6, %v709_v14  ;;  %4167 = vmatmul.msk.f32.gmra.mxu2 %vm2014_vm2, %v4573_v12  ;;  %v5787_v12 = vld [vmem:[%s7311_s4] ss:$0 sm:$0xff] }
 0x1f0   :  { %4578 = vtanh.f32 %v1581_v13  ;;  %4054 = vmatmul.msk.f32.gmra.mxu1 %vm1091_vm1, %v4575_v16 }
 0x1f1   :  { %4580 = vtanh.f32 %v710_v17  ;;  %3942 = vmatmul.msk.f32.gmra.mxu0 %vm166_vm0, %v93_v15  ;;  %v99_v15 = vld [vmem:[%s7309_s0 + $0x218] sm:$0xff] }
 0x1f2   :  { %v2455_v18 = vpop.f32.mrf.mxu2 }
 0x1f3   :  { %v4577_v20 = vpop.eup %4576  ;;  %v2456_v21 = vadd.f32 %v5625_v42, %v2455_v18 }
 0x1f4   :  { %4284 = vmatmul.msk.f32.gmra.mxu3 %vm1091_vm1, %v4577_v20 }
 0x1f5   :  { %4582 = vtanh.f32 %v2456_v21  ;;  %v1583_v22 = vpop.f32.mrf.mxu1 }
 0x1f6   :  { %v4579_v23 = vpop.eup %4578  ;;  %v1584_v24 = vadd.f32 %v5438_v26, %v1583_v22  ;;  %v712_v25 = vpop.f32.mrf.mxu0 }
 0x1f7   :  { %v4581_v28 = vpop.eup %4580  ;;  %v713_v29 = vadd.f32 %v5716_v6, %v712_v25  ;;  %4168 = vmatmul.msk.f32.gmra.mxu2 %vm2014_vm2, %v4579_v23 }
 0x1f8   :  { %4584 = vtanh.f32 %v1584_v24  ;;  %4055 = vmatmul.msk.f32.gmra.mxu1 %vm1091_vm1, %v4581_v28 }
 0x1f9   :  { %4586 = vtanh.f32 %v713_v29  ;;  %3943 = vmatmul.msk.f32.gmra.mxu0 %vm166_vm0, %v94_v27  ;;  %v100_v27 = vld [vmem:[%s7309_s0 + $0x220] sm:$0xff] }
 0x1fa   :  { %v2458_v30 = vpop.f32.mrf.mxu2 }
 0x1fb   :  { %v4583_v31 = vpop.eup %4582  ;;  %v2459_v32 = vadd.f32 %v5625_v42, %v2458_v30 }
 0x1fc   :  { %4285 = vmatmul.msk.f32.gmra.mxu3 %vm1091_vm1, %v4583_v31 }
 0x1fd   :  { %4588 = vtanh.f32 %v2459_v32  ;;  %v1586_v33 = vpop.f32.mrf.mxu1 }
 0x1fe   :  { %v4585_v35 = vpop.eup %4584  ;;  %v1587_v36 = vadd.f32 %v5438_v26, %v1586_v33  ;;  %v715_v37 = vpop.f32.mrf.mxu0  ;;  %v5812_v33 = vld [vmem:[%s7315_s8] ss:$0 sm:$0xff] }
 0x1ff   :  { %v4587_v39 = vpop.eup %4586  ;;  %v716_v40 = vadd.f32 %v5716_v6, %v715_v37  ;;  %4169 = vmatmul.msk.f32.gmra.mxu2 %vm2014_vm2, %v4585_v35 }
 0x200   :  { %4590 = vtanh.f32 %v1587_v36  ;;  %4056 = vmatmul.msk.f32.gmra.mxu1 %vm1091_vm1, %v4587_v39  ;;  %v101_v39 = vld [vmem:[%s7309_s0 + $0x228] sm:$0xff] }
 0x201   :  { %4592 = vtanh.f32 %v716_v40  ;;  %3944 = vmatmul.msk.f32.gmra.mxu0 %vm166_vm0, %v95_v38 }
 0x202   :  { %v2461_v41 = vpop.f32.mrf.mxu2 }
 0x203   :  { %v4589_v43 = vpop.eup %4588  ;;  %v2462_v44 = vadd.f32 %v5625_v42, %v2461_v41 }
 0x204   :  { %4286 = vmatmul.msk.f32.gmra.mxu3 %vm1091_vm1, %v4589_v43 }
 0x205   :  { %4594 = vtanh.f32 %v2462_v44  ;;  %v1589_v45 = vpop.f32.mrf.mxu1 }
 0x206   :  { %v4591_v46 = vpop.eup %4590  ;;  %v1590_v47 = vadd.f32 %v5438_v26, %v1589_v45  ;;  %v718_v48 = vpop.f32.mrf.mxu0 }
 0x207   :  { %v4593_v50 = vpop.eup %4592  ;;  %v719_v51 = vadd.f32 %v5716_v6, %v718_v48  ;;  %4170 = vmatmul.msk.f32.gmra.mxu2 %vm2014_vm2, %v4591_v46 }
 0x208   :  { %4596 = vtanh.f32 %v1590_v47  ;;  %4057 = vmatmul.msk.f32.gmra.mxu1 %vm1091_vm1, %v4593_v50 }
 0x209   :  { %4598 = vtanh.f32 %v719_v51  ;;  %3945 = vmatmul.msk.f32.gmra.mxu0 %vm166_vm0, %v96_v49 }
 0x20a   :  { %v2464_v52 = vpop.f32.mrf.mxu2 }
 0x20b   :  { %v4595_v53 = vpop.eup %4594  ;;  %v2465_v54 = vadd.f32 %v5625_v42, %v2464_v52  ;;  %v102_v52 = vld [vmem:[%s7309_s0 + $0x230] sm:$0xff] }
 0x20c   :  { %4287 = vmatmul.msk.f32.gmra.mxu3 %vm1091_vm1, %v4595_v53 }
 0x20d   :  { %4600 = vtanh.f32 %v2465_v54  ;;  %v1592_v55 = vpop.f32.mrf.mxu1 }
 0x20e   :  { %v4597_v56 = vpop.eup %4596  ;;  %v1593_v57 = vadd.f32 %v5438_v26, %v1592_v55  ;;  %v721_v58 = vpop.f32.mrf.mxu0 }
 0x20f   :  { %v4599_v60 = vpop.eup %4598  ;;  %v722_v61 = vadd.f32 %v5716_v6, %v721_v58  ;;  %4171 = vmatmul.msk.f32.gmra.mxu2 %vm2014_vm2, %v4597_v56 }
 0x210   :  { %4602 = vtanh.f32 %v1593_v57  ;;  %4058 = vmatmul.msk.f32.gmra.mxu1 %vm1091_vm1, %v4599_v60 }
 0x211   :  { %4604 = vtanh.f32 %v722_v61  ;;  %3946 = vmatmul.msk.f32.gmra.mxu0 %vm166_vm0, %v97_v59 }
 0x212   :  { %v2467_v62 = vpop.f32.mrf.mxu2 }
 0x213   :  { %v4601_v63 = vpop.eup %4600  ;;  %v2468_v0 = vadd.f32 %v5625_v42, %v2467_v62 }
 0x214   :  { %4288 = vmatmul.msk.f32.gmra.mxu3 %vm1091_vm1, %v4601_v63 }
 0x215   :  { %4606 = vtanh.f32 %v2468_v0  ;;  %v1595_v1 = vpop.f32.mrf.mxu1  ;;  %v103_v0 = vld [vmem:[%s7309_s0 + $0x238] sm:$0xff] }
 0x216   :  { %v4603_v2 = vpop.eup %4602  ;;  %v1596_v3 = vadd.f32 %v5438_v26, %v1595_v1  ;;  %v724_v19 = vpop.f32.mrf.mxu0 }
 0x217   :  { %v4605_v5 = vpop.eup %4604  ;;  %v725_v7 = vadd.f32 %v5716_v6, %v724_v19  ;;  %4172 = vmatmul.msk.f32.gmra.mxu2 %vm2014_vm2, %v4603_v2 }
 0x218   :  { %4608 = vtanh.f32 %v1596_v3  ;;  %4059 = vmatmul.msk.f32.gmra.mxu1 %vm1091_vm1, %v4605_v5 }
 0x219   :  { %4610 = vtanh.f32 %v725_v7  ;;  %3947 = vmatmul.msk.f32.gmra.mxu0 %vm166_vm0, %v98_v4 }
 0x21a   :  { %v2470_v8 = vpop.f32.mrf.mxu2 }
 0x21b   :  { %v4607_v9 = vpop.eup %4606  ;;  %v2471_v26 = vadd.f32 %v5625_v42, %v2470_v8 }
 0x21c   :  { %4289 = vmatmul.msk.f32.gmra.mxu3 %vm1091_vm1, %v4607_v9 }
 0x21d   :  { %4612 = vtanh.f32 %v2471_v26  ;;  %v1598_v10 = vpop.f32.mrf.mxu1 }
 0x21e   :  { %v4609_v11 = vpop.eup %4608  ;;  %v1599_v13 = vadd.f32 %v5787_v12, %v1598_v10  ;;  %v727_v14 = vpop.f32.mrf.mxu0 }
 0x21f   :  { %v4611_v16 = vpop.eup %4610  ;;  %v728_v17 = vadd.f32 %v5716_v6, %v727_v14  ;;  %4173 = vmatmul.msk.f32.gmra.mxu2 %vm2014_vm2, %v4609_v11  ;;  %v104_v11 = vld [vmem:[%s7309_s0 + $0x240] sm:$0xff] }
 0x220   :  { %4614 = vtanh.f32 %v1599_v13  ;;  %4060 = vmatmul.msk.f32.gmra.mxu1 %vm1091_vm1, %v4611_v16 }
 0x221   :  { %4616 = vtanh.f32 %v728_v17  ;;  %3948 = vmatmul.msk.f32.gmra.mxu0 %vm166_vm0, %v99_v15 }
 0x222   :  { %v2473_v18 = vpop.f32.mrf.mxu2 }
 0x223   :  { %v4613_v20 = vpop.eup %4612  ;;  %v2474_v21 = vadd.f32 %v5625_v42, %v2473_v18 }
 0x224   :  { %4290 = vmatmul.msk.f32.gmra.mxu3 %vm1091_vm1, %v4613_v20 }
 0x225   :  { %4618 = vtanh.f32 %v2474_v21  ;;  %v1601_v22 = vpop.f32.mrf.mxu1 }
 0x226   :  { %v4615_v23 = vpop.eup %4614  ;;  %v1602_v24 = vadd.f32 %v5787_v12, %v1601_v22  ;;  %v730_v25 = vpop.f32.mrf.mxu0 }
 0x227   :  { %v4617_v28 = vpop.eup %4616  ;;  %v731_v29 = vadd.f32 %v5716_v6, %v730_v25  ;;  %4174 = vmatmul.msk.f32.gmra.mxu2 %vm2014_vm2, %v4615_v23  ;;  %v105_v25 = vld [vmem:[%s7309_s0 + $0x248] sm:$0xff] }
 0x228   :  { %4620 = vtanh.f32 %v1602_v24  ;;  %4061 = vmatmul.msk.f32.gmra.mxu1 %vm1091_vm1, %v4617_v28 }
 0x229   :  { %4622 = vtanh.f32 %v731_v29  ;;  %3949 = vmatmul.msk.f32.gmra.mxu0 %vm166_vm0, %v100_v27 }
 0x22a   :  { %v2476_v30 = vpop.f32.mrf.mxu2 }
 0x22b   :  { %v4619_v31 = vpop.eup %4618  ;;  %v2477_v32 = vadd.f32 %v5625_v42, %v2476_v30 }
 0x22c   :  { %4291 = vmatmul.msk.f32.gmra.mxu3 %vm1091_vm1, %v4619_v31 }
 0x22d   :  { %4624 = vtanh.f32 %v2477_v32  ;;  %v1604_v35 = vpop.f32.mrf.mxu1 }
 0x22e   :  { %v4621_v36 = vpop.eup %4620  ;;  %v1605_v37 = vadd.f32 %v5787_v12, %v1604_v35  ;;  %v733_v38 = vpop.f32.mrf.mxu0 }
 0x22f   :  { %v4623_v40 = vpop.eup %4622  ;;  %v734_v41 = vadd.f32 %v5716_v6, %v733_v38  ;;  %4175 = vmatmul.msk.f32.gmra.mxu2 %vm2014_vm2, %v4621_v36  ;;  %v3366_v43 = vpop.f32.mrf.mxu3 }
 0x230   :  { %4626 = vtanh.f32 %v1605_v37  ;;  %v3367_v44 = vadd.f32 %v5812_v33, %v3366_v43  ;;  %4062 = vmatmul.msk.f32.gmra.mxu1 %vm1091_vm1, %v4623_v40  ;;  %v106_v40 = vld [vmem:[%s7309_s0 + $0x250] sm:$0xff] }
 0x231   :  { %4628 = vtanh.f32 %v734_v41  ;;  %3950 = vmatmul.msk.f32.gmra.mxu0 %vm166_vm0, %v101_v39 }
 0x232   :  { %3748 = vst.msk [vmem:[%s7316_s9 + $0x8] sm:$0xff] %vm166_vm0, %v3367_v44  ;;  %v2479_v45 = vpop.f32.mrf.mxu2 }
 0x233   :  { %v4625_v46 = vpop.eup %4624  ;;  %v2480_v47 = vadd.f32 %v5625_v42, %v2479_v45 }
 0x234   :  { %4292 = vmatmul.msk.f32.gmra.mxu3 %vm1091_vm1, %v4625_v46 }
 0x235   :  { %4630 = vtanh.f32 %v2480_v47  ;;  %v1607_v48 = vpop.f32.mrf.mxu1 }
 0x236   :  { %v4627_v49 = vpop.eup %4626  ;;  %v1608_v50 = vadd.f32 %v5787_v12, %v1607_v48  ;;  %v736_v51 = vpop.f32.mrf.mxu0 }
 0x237   :  { %v4629_v53 = vpop.eup %4628  ;;  %v737_v54 = vadd.f32 %v5716_v6, %v736_v51  ;;  %4176 = vmatmul.msk.f32.gmra.mxu2 %vm2014_vm2, %v4627_v49  ;;  %v3369_v55 = vpop.f32.mrf.mxu3 }
 0x238   :  { %4632 = vtanh.f32 %v1608_v50  ;;  %v3370_v56 = vadd.f32 %v5812_v33, %v3369_v55  ;;  %4063 = vmatmul.msk.f32.gmra.mxu1 %vm1091_vm1, %v4629_v53  ;;  %v107_v53 = vld [vmem:[%s7309_s0 + $0x258] sm:$0xff] }
 0x239   :  { %4634 = vtanh.f32 %v737_v54  ;;  %3951 = vmatmul.msk.f32.gmra.mxu0 %vm166_vm0, %v102_v52 }
 0x23a   :  { %3749 = vst.msk [vmem:[%s7316_s9 + $0x10] sm:$0xff] %vm166_vm0, %v3370_v56  ;;  %v2482_v57 = vpop.f32.mrf.mxu2 }
 0x23b   :  { %v4631_v58 = vpop.eup %4630  ;;  %v2483_v59 = vadd.f32 %v5625_v42, %v2482_v57 }
 0x23c   :  { %4293 = vmatmul.msk.f32.gmra.mxu3 %vm1091_vm1, %v4631_v58 }
 0x23d   :  { %4636 = vtanh.f32 %v2483_v59  ;;  %v1610_v60 = vpop.f32.mrf.mxu1 }
 0x23e   :  { %v4633_v61 = vpop.eup %4632  ;;  %v1611_v62 = vadd.f32 %v5787_v12, %v1610_v60  ;;  %v739_v63 = vpop.f32.mrf.mxu0 }
 0x23f   :  { %v4635_v1 = vpop.eup %4634  ;;  %v740_v2 = vadd.f32 %v5716_v6, %v739_v63  ;;  %4177 = vmatmul.msk.f32.gmra.mxu2 %vm2014_vm2, %v4633_v61  ;;  %v3372_v3 = vpop.f32.mrf.mxu3 }
 0x240   :  { %4638 = vtanh.f32 %v1611_v62  ;;  %v3373_v19 = vadd.f32 %v5812_v33, %v3372_v3  ;;  %4064 = vmatmul.msk.f32.gmra.mxu1 %vm1091_vm1, %v4635_v1  ;;  %v108_v1 = vld [vmem:[%s7309_s0 + $0x260] sm:$0xff] }
 0x241   :  { %4640 = vtanh.f32 %v740_v2  ;;  %3952 = vmatmul.msk.f32.gmra.mxu0 %vm166_vm0, %v103_v0 }
 0x242   :  { %3750 = vst.msk [vmem:[%s7316_s9 + $0x18] sm:$0xff] %vm166_vm0, %v3373_v19  ;;  %v2485_v4 = vpop.f32.mrf.mxu2 }
 0x243   :  { %v4637_v5 = vpop.eup %4636  ;;  %v2486_v7 = vadd.f32 %v5625_v42, %v2485_v4 }
 0x244   :  { %4294 = vmatmul.msk.f32.gmra.mxu3 %vm1091_vm1, %v4637_v5 }
 0x245   :  { %4642 = vtanh.f32 %v2486_v7  ;;  %v1613_v8 = vpop.f32.mrf.mxu1 }
 0x246   :  { %v4639_v9 = vpop.eup %4638  ;;  %v1614_v26 = vadd.f32 %v5787_v12, %v1613_v8  ;;  %v742_v10 = vpop.f32.mrf.mxu0 }
 0x247   :  { %v4641_v13 = vpop.eup %4640  ;;  %v743_v14 = vadd.f32 %v5716_v6, %v742_v10  ;;  %4178 = vmatmul.msk.f32.gmra.mxu2 %vm2014_vm2, %v4639_v9  ;;  %v3375_v15 = vpop.f32.mrf.mxu3 }
 0x248   :  { %4644 = vtanh.f32 %v1614_v26  ;;  %v3376_v16 = vadd.f32 %v5812_v33, %v3375_v15  ;;  %4065 = vmatmul.msk.f32.gmra.mxu1 %vm1091_vm1, %v4641_v13  ;;  %v109_v13 = vld [vmem:[%s7309_s0 + $0x268] sm:$0xff] }
 0x249   :  { %4646 = vtanh.f32 %v743_v14  ;;  %3953 = vmatmul.msk.f32.gmra.mxu0 %vm166_vm0, %v104_v11 }
 0x24a   :  { %3751 = vst.msk [vmem:[%s7316_s9 + $0x20] sm:$0xff] %vm166_vm0, %v3376_v16  ;;  %v2488_v17 = vpop.f32.mrf.mxu2 }
 0x24b   :  { %v4643_v18 = vpop.eup %4642  ;;  %v2489_v20 = vadd.f32 %v5625_v42, %v2488_v17 }
 0x24c   :  { %4295 = vmatmul.msk.f32.gmra.mxu3 %vm1091_vm1, %v4643_v18 }
 0x24d   :  { %4648 = vtanh.f32 %v2489_v20  ;;  %v1616_v21 = vpop.f32.mrf.mxu1 }
 0x24e   :  { %v4645_v22 = vpop.eup %4644  ;;  %v1617_v23 = vadd.f32 %v5787_v12, %v1616_v21  ;;  %v745_v24 = vpop.f32.mrf.mxu0 }
 0x24f   :  { %v4647_v27 = vpop.eup %4646  ;;  %v746_v28 = vadd.f32 %v5716_v6, %v745_v24  ;;  %4179 = vmatmul.msk.f32.gmra.mxu2 %vm2014_vm2, %v4645_v22  ;;  %v3378_v29 = vpop.f32.mrf.mxu3 }
 0x250   :  { %4650 = vtanh.f32 %v1617_v23  ;;  %v3379_v30 = vadd.f32 %v5812_v33, %v3378_v29  ;;  %4066 = vmatmul.msk.f32.gmra.mxu1 %vm1091_vm1, %v4647_v27  ;;  %v110_v27 = vld [vmem:[%s7309_s0 + $0x270] sm:$0xff] }
 0x251   :  { %4652 = vtanh.f32 %v746_v28  ;;  %3954 = vmatmul.msk.f32.gmra.mxu0 %vm166_vm0, %v105_v25 }
 0x252   :  { %3752 = vst.msk [vmem:[%s7316_s9 + $0x28] sm:$0xff] %vm166_vm0, %v3379_v30  ;;  %v2491_v31 = vpop.f32.mrf.mxu2 }
 0x253   :  { %v4649_v32 = vpop.eup %4648  ;;  %v2492_v35 = vadd.f32 %v5625_v42, %v2491_v31 }
 0x254   :  { %4296 = vmatmul.msk.f32.gmra.mxu3 %vm1091_vm1, %v4649_v32 }
 0x255   :  { %4654 = vtanh.f32 %v2492_v35  ;;  %v1619_v36 = vpop.f32.mrf.mxu1 }
 0x256   :  { %v4651_v37 = vpop.eup %4650  ;;  %v1620_v38 = vadd.f32 %v5787_v12, %v1619_v36  ;;  %v748_v39 = vpop.f32.mrf.mxu0 }
 0x257   :  { %v4653_v41 = vpop.eup %4652  ;;  %v749_v43 = vadd.f32 %v5716_v6, %v748_v39  ;;  %4180 = vmatmul.msk.f32.gmra.mxu2 %vm2014_vm2, %v4651_v37  ;;  %v3381_v44 = vpop.f32.mrf.mxu3 }
 0x258   :  { %4656 = vtanh.f32 %v1620_v38  ;;  %v3382_v45 = vadd.f32 %v5812_v33, %v3381_v44  ;;  %4067 = vmatmul.msk.f32.gmra.mxu1 %vm1091_vm1, %v4653_v41  ;;  %v111_v41 = vld [vmem:[%s7309_s0 + $0x278] sm:$0xff] }
 0x259   :  { %4658 = vtanh.f32 %v749_v43  ;;  %3955 = vmatmul.msk.f32.gmra.mxu0 %vm166_vm0, %v106_v40 }
 0x25a   :  { %3753 = vst.msk [vmem:[%s7316_s9 + $0x30] sm:$0xff] %vm166_vm0, %v3382_v45  ;;  %v2494_v46 = vpop.f32.mrf.mxu2 }
 0x25b   :  { %v4655_v47 = vpop.eup %4654  ;;  %v2495_v48 = vadd.f32 %v5625_v42, %v2494_v46 }
 0x25c   :  { %4297 = vmatmul.msk.f32.gmra.mxu3 %vm1091_vm1, %v4655_v47 }
 0x25d   :  { %4660 = vtanh.f32 %v2495_v48  ;;  %v1622_v49 = vpop.f32.mrf.mxu1  ;;  %v5980_v48 = vld [vmem:[%s7313_s6] ss:$0 sm:$0xff] }
 0x25e   :  { %v4657_v50 = vpop.eup %4656  ;;  %v1623_v51 = vadd.f32 %v5787_v12, %v1622_v49  ;;  %v751_v52 = vpop.f32.mrf.mxu0 }
 0x25f   :  { %v4659_v54 = vpop.eup %4658  ;;  %v752_v55 = vadd.f32 %v5716_v6, %v751_v52  ;;  %4181 = vmatmul.msk.f32.gmra.mxu2 %vm2014_vm2, %v4657_v50  ;;  %v3384_v56 = vpop.f32.mrf.mxu3 }
 0x260   :  { %4662 = vtanh.f32 %v1623_v51  ;;  %v3385_v57 = vadd.f32 %v5812_v33, %v3384_v56  ;;  %4068 = vmatmul.msk.f32.gmra.mxu1 %vm1091_vm1, %v4659_v54  ;;  %v112_v54 = vld [vmem:[%s7309_s0 + $0x280] sm:$0xff] }
 0x261   :  { %4664 = vtanh.f32 %v752_v55  ;;  %3956 = vmatmul.msk.f32.gmra.mxu0 %vm166_vm0, %v107_v53 }
 0x262   :  { %3754 = vst.msk [vmem:[%s7316_s9 + $0x38] sm:$0xff] %vm166_vm0, %v3385_v57  ;;  %v2497_v58 = vpop.f32.mrf.mxu2 }
 0x263   :  { %v4661_v59 = vpop.eup %4660  ;;  %v2498_v60 = vadd.f32 %v5625_v42, %v2497_v58 }
 0x264   :  { %4298 = vmatmul.msk.f32.gmra.mxu3 %vm1091_vm1, %v4661_v59 }
 0x265   :  { %4666 = vtanh.f32 %v2498_v60  ;;  %v1625_v61 = vpop.f32.mrf.mxu1 }
 0x266   :  { %v4663_v62 = vpop.eup %4662  ;;  %v1626_v63 = vadd.f32 %v5787_v12, %v1625_v61  ;;  %v754_v0 = vpop.f32.mrf.mxu0 }
 0x267   :  { %v4665_v2 = vpop.eup %4664  ;;  %v755_v3 = vadd.f32 %v5716_v6, %v754_v0  ;;  %4182 = vmatmul.msk.f32.gmra.mxu2 %vm2014_vm2, %v4663_v62  ;;  %v3387_v19 = vpop.f32.mrf.mxu3 }
 0x268   :  { %4668 = vtanh.f32 %v1626_v63  ;;  %v3388_v4 = vadd.f32 %v5812_v33, %v3387_v19  ;;  %4069 = vmatmul.msk.f32.gmra.mxu1 %vm1091_vm1, %v4665_v2  ;;  %v113_v2 = vld [vmem:[%s7309_s0 + $0x288] sm:$0xff] }
 0x269   :  { %4670 = vtanh.f32 %v755_v3  ;;  %3957 = vmatmul.msk.f32.gmra.mxu0 %vm166_vm0, %v108_v1 }
 0x26a   :  { %3755 = vst.msk [vmem:[%s7316_s9 + $0x40] sm:$0xff] %vm166_vm0, %v3388_v4  ;;  %v2500_v5 = vpop.f32.mrf.mxu2 }
 0x26b   :  { %v4667_v7 = vpop.eup %4666  ;;  %v2501_v8 = vadd.f32 %v5625_v42, %v2500_v5 }
 0x26c   :  { %4299 = vmatmul.msk.f32.gmra.mxu3 %vm1091_vm1, %v4667_v7 }
 0x26d   :  { %4672 = vtanh.f32 %v2501_v8  ;;  %v1628_v9 = vpop.f32.mrf.mxu1 }
 0x26e   :  { %v4669_v26 = vpop.eup %4668  ;;  %v1629_v10 = vadd.f32 %v5787_v12, %v1628_v9  ;;  %v757_v11 = vpop.f32.mrf.mxu0 }
 0x26f   :  { %v4671_v14 = vpop.eup %4670  ;;  %v758_v15 = vadd.f32 %v5716_v6, %v757_v11  ;;  %4183 = vmatmul.msk.f32.gmra.mxu2 %vm2014_vm2, %v4669_v26  ;;  %v3390_v16 = vpop.f32.mrf.mxu3 }
 0x270   :  { %4674 = vtanh.f32 %v1629_v10  ;;  %v3391_v17 = vadd.f32 %v5812_v33, %v3390_v16  ;;  %4070 = vmatmul.msk.f32.gmra.mxu1 %vm1091_vm1, %v4671_v14  ;;  %v114_v14 = vld [vmem:[%s7309_s0 + $0x290] sm:$0xff] }
 0x271   :  { %4676 = vtanh.f32 %v758_v15  ;;  %3958 = vmatmul.msk.f32.gmra.mxu0 %vm166_vm0, %v109_v13 }
 0x272   :  { %3756 = vst.msk [vmem:[%s7316_s9 + $0x48] sm:$0xff] %vm166_vm0, %v3391_v17  ;;  %v2503_v18 = vpop.f32.mrf.mxu2 }
 0x273   :  { %v4673_v20 = vpop.eup %4672  ;;  %v2504_v21 = vadd.f32 %v5625_v42, %v2503_v18 }
 0x274   :  { %4300 = vmatmul.msk.f32.gmra.mxu3 %vm1091_vm1, %v4673_v20 }
 0x275   :  { %4678 = vtanh.f32 %v2504_v21  ;;  %v1631_v22 = vpop.f32.mrf.mxu1 }
 0x276   :  { %v4675_v23 = vpop.eup %4674  ;;  %v1632_v24 = vadd.f32 %v5787_v12, %v1631_v22  ;;  %v760_v25 = vpop.f32.mrf.mxu0 }
 0x277   :  { %v4677_v28 = vpop.eup %4676  ;;  %v761_v29 = vadd.f32 %v5716_v6, %v760_v25  ;;  %4184 = vmatmul.msk.f32.gmra.mxu2 %vm2014_vm2, %v4675_v23  ;;  %v3393_v30 = vpop.f32.mrf.mxu3 }
 0x278   :  { %4680 = vtanh.f32 %v1632_v24  ;;  %v3394_v31 = vadd.f32 %v5812_v33, %v3393_v30  ;;  %4071 = vmatmul.msk.f32.gmra.mxu1 %vm1091_vm1, %v4677_v28  ;;  %v115_v28 = vld [vmem:[%s7309_s0 + $0x298] sm:$0xff] }
 0x279   :  { %4682 = vtanh.f32 %v761_v29  ;;  %3959 = vmatmul.msk.f32.gmra.mxu0 %vm166_vm0, %v110_v27 }
 0x27a   :  { %3757 = vst.msk [vmem:[%s7316_s9 + $0x50] sm:$0xff] %vm166_vm0, %v3394_v31  ;;  %v2506_v32 = vpop.f32.mrf.mxu2 }
 0x27b   :  { %v4679_v35 = vpop.eup %4678  ;;  %v2507_v36 = vadd.f32 %v5625_v42, %v2506_v32 }
 0x27c   :  { %4301 = vmatmul.msk.f32.gmra.mxu3 %vm1091_vm1, %v4679_v35 }
 0x27d   :  { %4684 = vtanh.f32 %v2507_v36  ;;  %v1634_v37 = vpop.f32.mrf.mxu1 }
 0x27e   :  { %v4681_v38 = vpop.eup %4680  ;;  %v1635_v39 = vadd.f32 %v5787_v12, %v1634_v37  ;;  %v763_v40 = vpop.f32.mrf.mxu0 }
 0x27f   :  { %v4683_v43 = vpop.eup %4682  ;;  %v764_v44 = vadd.f32 %v5716_v6, %v763_v40  ;;  %4185 = vmatmul.msk.f32.gmra.mxu2 %vm2014_vm2, %v4681_v38  ;;  %v3396_v45 = vpop.f32.mrf.mxu3 }
 0x280   :  { %4686 = vtanh.f32 %v1635_v39  ;;  %v3397_v42 = vadd.f32 %v5812_v33, %v3396_v45  ;;  %4072 = vmatmul.msk.f32.gmra.mxu1 %vm1091_vm1, %v4683_v43  ;;  %v116_v43 = vld [vmem:[%s7309_s0 + $0x2a0] sm:$0xff] }
 0x281   :  { %4688 = vtanh.f32 %v764_v44  ;;  %3960 = vmatmul.msk.f32.gmra.mxu0 %vm166_vm0, %v111_v41 }
 0x282   :  { %3758 = vst.msk [vmem:[%s7316_s9 + $0x58] sm:$0xff] %vm166_vm0, %v3397_v42  ;;  %v2509_v46 = vpop.f32.mrf.mxu2 }
 0x283   :  { %v4685_v47 = vpop.eup %4684  ;;  %v2510_v49 = vadd.f32 %v5980_v48, %v2509_v46 }
 0x284   :  { %4302 = vmatmul.msk.f32.gmra.mxu3 %vm1091_vm1, %v4685_v47 }
 0x285   :  { %4690 = vtanh.f32 %v2510_v49  ;;  %v1637_v50 = vpop.f32.mrf.mxu1 }
 0x286   :  { %v4687_v51 = vpop.eup %4686  ;;  %v1638_v52 = vadd.f32 %v5787_v12, %v1637_v50  ;;  %v766_v53 = vpop.f32.mrf.mxu0 }
 0x287   :  { %v4689_v55 = vpop.eup %4688  ;;  %v767_v56 = vadd.f32 %v5716_v6, %v766_v53  ;;  %4186 = vmatmul.msk.f32.gmra.mxu2 %vm2014_vm2, %v4687_v51  ;;  %v3399_v57 = vpop.f32.mrf.mxu3 }
 0x288   :  { %4692 = vtanh.f32 %v1638_v52  ;;  %v3400_v58 = vadd.f32 %v5812_v33, %v3399_v57  ;;  %4073 = vmatmul.msk.f32.gmra.mxu1 %vm1091_vm1, %v4689_v55  ;;  %v117_v55 = vld [vmem:[%s7309_s0 + $0x2a8] sm:$0xff] }
 0x289   :  { %4694 = vtanh.f32 %v767_v56  ;;  %3961 = vmatmul.msk.f32.gmra.mxu0 %vm166_vm0, %v112_v54 }
 0x28a   :  { %3759 = vst.msk [vmem:[%s7316_s9 + $0x60] sm:$0xff] %vm166_vm0, %v3400_v58  ;;  %v2512_v59 = vpop.f32.mrf.mxu2 }
 0x28b   :  { %v4691_v60 = vpop.eup %4690  ;;  %v2513_v61 = vadd.f32 %v5980_v48, %v2512_v59 }
 0x28c   :  { %4303 = vmatmul.msk.f32.gmra.mxu3 %vm1091_vm1, %v4691_v60 }
 0x28d   :  { %4696 = vtanh.f32 %v2513_v61  ;;  %v1640_v62 = vpop.f32.mrf.mxu1 }
 0x28e   :  { %v4693_v63 = vpop.eup %4692  ;;  %v1641_v0 = vadd.f32 %v5787_v12, %v1640_v62  ;;  %v769_v1 = vpop.f32.mrf.mxu0 }
 0x28f   :  { %v4695_v3 = vpop.eup %4694  ;;  %v770_v19 = vadd.f32 %v5716_v6, %v769_v1  ;;  %4187 = vmatmul.msk.f32.gmra.mxu2 %vm2014_vm2, %v4693_v63  ;;  %v3402_v4 = vpop.f32.mrf.mxu3 }
 0x290   :  { %4698 = vtanh.f32 %v1641_v0  ;;  %v3403_v5 = vadd.f32 %v5812_v33, %v3402_v4  ;;  %4074 = vmatmul.msk.f32.gmra.mxu1 %vm1091_vm1, %v4695_v3  ;;  %v118_v3 = vld [vmem:[%s7309_s0 + $0x2b0] sm:$0xff] }
 0x291   :  { %4700 = vtanh.f32 %v770_v19  ;;  %3962 = vmatmul.msk.f32.gmra.mxu0 %vm166_vm0, %v113_v2 }
 0x292   :  { %3760 = vst.msk [vmem:[%s7316_s9 + $0x68] sm:$0xff] %vm166_vm0, %v3403_v5  ;;  %v2515_v7 = vpop.f32.mrf.mxu2 }
 0x293   :  { %v4697_v8 = vpop.eup %4696  ;;  %v2516_v9 = vadd.f32 %v5980_v48, %v2515_v7 }
 0x294   :  { %4304 = vmatmul.msk.f32.gmra.mxu3 %vm1091_vm1, %v4697_v8 }
 0x295   :  { %4702 = vtanh.f32 %v2516_v9  ;;  %v1643_v26 = vpop.f32.mrf.mxu1 }
 0x296   :  { %v4699_v10 = vpop.eup %4698  ;;  %v1644_v11 = vadd.f32 %v5787_v12, %v1643_v26  ;;  %v772_v13 = vpop.f32.mrf.mxu0 }
 0x297   :  { %v4701_v15 = vpop.eup %4700  ;;  %v773_v16 = vadd.f32 %v5716_v6, %v772_v13  ;;  %4188 = vmatmul.msk.f32.gmra.mxu2 %vm2014_vm2, %v4699_v10  ;;  %v3405_v17 = vpop.f32.mrf.mxu3 }
 0x298   :  { %4704 = vtanh.f32 %v1644_v11  ;;  %v3406_v18 = vadd.f32 %v5812_v33, %v3405_v17  ;;  %4075 = vmatmul.msk.f32.gmra.mxu1 %vm1091_vm1, %v4701_v15 }
 0x299   :  { %4706 = vtanh.f32 %v773_v16  ;;  %3963 = vmatmul.msk.f32.gmra.mxu0 %vm166_vm0, %v114_v14  ;;  %v119_v14 = vld [vmem:[%s7309_s0 + $0x2b8] sm:$0xff]  ;;  %v6096_v16 = vld [vmem:[%s7308_s2] ss:$0 sm:$0xff] }
 0x29a   :  { %3761 = vst.msk [vmem:[%s7316_s9 + $0x70] sm:$0xff] %vm166_vm0, %v3406_v18  ;;  %v2518_v20 = vpop.f32.mrf.mxu2 }
 0x29b   :  { %v4703_v21 = vpop.eup %4702  ;;  %v2519_v22 = vadd.f32 %v5980_v48, %v2518_v20 }
 0x29c   :  { %4305 = vmatmul.msk.f32.gmra.mxu3 %vm1091_vm1, %v4703_v21 }
 0x29d   :  { %4708 = vtanh.f32 %v2519_v22  ;;  %v1646_v23 = vpop.f32.mrf.mxu1 }
 0x29e   :  { %v4705_v24 = vpop.eup %4704  ;;  %v1647_v25 = vadd.f32 %v5787_v12, %v1646_v23  ;;  %v775_v27 = vpop.f32.mrf.mxu0 }
 0x29f   :  { %v4707_v29 = vpop.eup %4706  ;;  %v776_v30 = vadd.f32 %v5716_v6, %v775_v27  ;;  %4189 = vmatmul.msk.f32.gmra.mxu2 %vm2014_vm2, %v4705_v24  ;;  %v3408_v31 = vpop.f32.mrf.mxu3 }
 0x2a0   :  { %4710 = vtanh.f32 %v1647_v25  ;;  %v3409_v32 = vadd.f32 %v5812_v33, %v3408_v31  ;;  %4076 = vmatmul.msk.f32.gmra.mxu1 %vm1091_vm1, %v4707_v29  ;;  %v120_v29 = vld [vmem:[%s7309_s0 + $0x2c0] sm:$0xff] }
 0x2a1   :  { %4712 = vtanh.f32 %v776_v30  ;;  %3964 = vmatmul.msk.f32.gmra.mxu0 %vm166_vm0, %v115_v28 }
 0x2a2   :  { %3762 = vst.msk [vmem:[%s7316_s9 + $0x78] sm:$0xff] %vm166_vm0, %v3409_v32  ;;  %v2521_v35 = vpop.f32.mrf.mxu2 }
 0x2a3   :  { %v4709_v36 = vpop.eup %4708  ;;  %v2522_v37 = vadd.f32 %v5980_v48, %v2521_v35 }
 0x2a4   :  { %4306 = vmatmul.msk.f32.gmra.mxu3 %vm1091_vm1, %v4709_v36 }
 0x2a5   :  { %4714 = vtanh.f32 %v2522_v37  ;;  %v1649_v38 = vpop.f32.mrf.mxu1 }
 0x2a6   :  { %v4711_v39 = vpop.eup %4710  ;;  %v1650_v40 = vadd.f32 %v5787_v12, %v1649_v38  ;;  %v778_v41 = vpop.f32.mrf.mxu0 }
 0x2a7   :  { %v4713_v44 = vpop.eup %4712  ;;  %v779_v45 = vadd.f32 %v5716_v6, %v778_v41  ;;  %4190 = vmatmul.msk.f32.gmra.mxu2 %vm2014_vm2, %v4711_v39  ;;  %v3411_v42 = vpop.f32.mrf.mxu3 }
 0x2a8   :  { %4716 = vtanh.f32 %v1650_v40  ;;  %v3412_v46 = vadd.f32 %v5812_v33, %v3411_v42  ;;  %4077 = vmatmul.msk.f32.gmra.mxu1 %vm1091_vm1, %v4713_v44  ;;  %v121_v44 = vld [vmem:[%s7309_s0 + $0x2c8] sm:$0xff] }
 0x2a9   :  { %4718 = vtanh.f32 %v779_v45  ;;  %3965 = vmatmul.msk.f32.gmra.mxu0 %vm166_vm0, %v116_v43 }
 0x2aa   :  { %3763 = vst.msk [vmem:[%s7316_s9 + $0x80] sm:$0xff] %vm166_vm0, %v3412_v46  ;;  %v2524_v47 = vpop.f32.mrf.mxu2 }
 0x2ab   :  { %v4715_v49 = vpop.eup %4714  ;;  %v2525_v50 = vadd.f32 %v5980_v48, %v2524_v47 }
 0x2ac   :  { %4307 = vmatmul.msk.f32.gmra.mxu3 %vm1091_vm1, %v4715_v49 }
 0x2ad   :  { %4720 = vtanh.f32 %v2525_v50  ;;  %v1652_v51 = vpop.f32.mrf.mxu1 }
 0x2ae   :  { %v4717_v52 = vpop.eup %4716  ;;  %v1653_v53 = vadd.f32 %v5787_v12, %v1652_v51  ;;  %v781_v54 = vpop.f32.mrf.mxu0 }
 0x2af   :  { %v4719_v56 = vpop.eup %4718  ;;  %v782_v57 = vadd.f32 %v5716_v6, %v781_v54  ;;  %4191 = vmatmul.msk.f32.gmra.mxu2 %vm2014_vm2, %v4717_v52  ;;  %v3414_v58 = vpop.f32.mrf.mxu3 }
 0x2b0   :  { %4722 = vtanh.f32 %v1653_v53  ;;  %v3415_v59 = vadd.f32 %v5812_v33, %v3414_v58  ;;  %4078 = vmatmul.msk.f32.gmra.mxu1 %vm1091_vm1, %v4719_v56  ;;  %v122_v56 = vld [vmem:[%s7309_s0 + $0x2d0] sm:$0xff] }
 0x2b1   :  { %4724 = vtanh.f32 %v782_v57  ;;  %3966 = vmatmul.msk.f32.gmra.mxu0 %vm166_vm0, %v117_v55 }
 0x2b2   :  { %3764 = vst.msk [vmem:[%s7316_s9 + $0x88] sm:$0xff] %vm166_vm0, %v3415_v59  ;;  %v2527_v60 = vpop.f32.mrf.mxu2 }
 0x2b3   :  { %v4721_v61 = vpop.eup %4720  ;;  %v2528_v62 = vadd.f32 %v5980_v48, %v2527_v60 }
 0x2b4   :  { %4308 = vmatmul.msk.f32.gmra.mxu3 %vm1091_vm1, %v4721_v61 }
 0x2b5   :  { %4726 = vtanh.f32 %v2528_v62  ;;  %v1655_v63 = vpop.f32.mrf.mxu1 }
 0x2b6   :  { %v4723_v0 = vpop.eup %4722  ;;  %v1656_v1 = vadd.f32 %v5787_v12, %v1655_v63  ;;  %v784_v2 = vpop.f32.mrf.mxu0 }
 0x2b7   :  { %v4725_v19 = vpop.eup %4724  ;;  %v785_v4 = vadd.f32 %v5716_v6, %v784_v2  ;;  %4192 = vmatmul.msk.f32.gmra.mxu2 %vm2014_vm2, %v4723_v0  ;;  %v3417_v5 = vpop.f32.mrf.mxu3 }
 0x2b8   :  { %4728 = vtanh.f32 %v1656_v1  ;;  %v3418_v7 = vadd.f32 %v5812_v33, %v3417_v5  ;;  %4079 = vmatmul.msk.f32.gmra.mxu1 %vm1091_vm1, %v4725_v19  ;;  %v123_v19 = vld [vmem:[%s7309_s0 + $0x2d8] sm:$0xff] }
 0x2b9   :  { %4730 = vtanh.f32 %v785_v4  ;;  %3967 = vmatmul.msk.f32.gmra.mxu0 %vm166_vm0, %v118_v3 }
 0x2ba   :  { %3765 = vst.msk [vmem:[%s7316_s9 + $0x90] sm:$0xff] %vm166_vm0, %v3418_v7  ;;  %v2530_v8 = vpop.f32.mrf.mxu2 }
 0x2bb   :  { %v4727_v9 = vpop.eup %4726  ;;  %v2531_v6 = vadd.f32 %v5980_v48, %v2530_v8 }
 0x2bc   :  { %4309 = vmatmul.msk.f32.gmra.mxu3 %vm1091_vm1, %v4727_v9 }
 0x2bd   :  { %4732 = vtanh.f32 %v2531_v6  ;;  %v1658_v26 = vpop.f32.mrf.mxu1 }
 0x2be   :  { %v4729_v10 = vpop.eup %4728  ;;  %v1659_v11 = vadd.f32 %v5787_v12, %v1658_v26  ;;  %v787_v13 = vpop.f32.mrf.mxu0 }
 0x2bf   :  { %v4731_v15 = vpop.eup %4730  ;;  %v788_v17 = vadd.f32 %v6096_v16, %v787_v13  ;;  %4193 = vmatmul.msk.f32.gmra.mxu2 %vm2014_vm2, %v4729_v10  ;;  %v3420_v18 = vpop.f32.mrf.mxu3 }
 0x2c0   :  { %4734 = vtanh.f32 %v1659_v11  ;;  %v3421_v20 = vadd.f32 %v5812_v33, %v3420_v18  ;;  %4080 = vmatmul.msk.f32.gmra.mxu1 %vm1091_vm1, %v4731_v15  ;;  %v124_v15 = vld [vmem:[%s7309_s0 + $0x2e0] sm:$0xff] }
 0x2c1   :  { %4736 = vtanh.f32 %v788_v17  ;;  %3968 = vmatmul.msk.f32.gmra.mxu0 %vm166_vm0, %v119_v14 }
 0x2c2   :  { %3766 = vst.msk [vmem:[%s7316_s9 + $0x98] sm:$0xff] %vm166_vm0, %v3421_v20  ;;  %v2533_v21 = vpop.f32.mrf.mxu2 }
 0x2c3   :  { %v4733_v22 = vpop.eup %4732  ;;  %v2534_v23 = vadd.f32 %v5980_v48, %v2533_v21 }
 0x2c4   :  { %4310 = vmatmul.msk.f32.gmra.mxu3 %vm1091_vm1, %v4733_v22 }
 0x2c5   :  { %4738 = vtanh.f32 %v2534_v23  ;;  %v1661_v24 = vpop.f32.mrf.mxu1 }
 0x2c6   :  { %v4735_v25 = vpop.eup %4734  ;;  %v1662_v27 = vadd.f32 %v5787_v12, %v1661_v24  ;;  %v790_v28 = vpop.f32.mrf.mxu0 }
 0x2c7   :  { %v4737_v30 = vpop.eup %4736  ;;  %v791_v31 = vadd.f32 %v6096_v16, %v790_v28  ;;  %4194 = vmatmul.msk.f32.gmra.mxu2 %vm2014_vm2, %v4735_v25  ;;  %v3423_v32 = vpop.f32.mrf.mxu3 }
 0x2c8   :  { %4740 = vtanh.f32 %v1662_v27  ;;  %v3424_v35 = vadd.f32 %v5812_v33, %v3423_v32  ;;  %4081 = vmatmul.msk.f32.gmra.mxu1 %vm1091_vm1, %v4737_v30  ;;  %v6187_v27 = vld [vmem:[%s7311_s4] ss:$0 sm:$0xff]  ;;  %v125_v30 = vld [vmem:[%s7309_s0 + $0x2e8] sm:$0xff] }
 0x2c9   :  { %4742 = vtanh.f32 %v791_v31  ;;  %3969 = vmatmul.msk.f32.gmra.mxu0 %vm166_vm0, %v120_v29 }
 0x2ca   :  { %3767 = vst.msk [vmem:[%s7316_s9 + $0xa0] sm:$0xff] %vm166_vm0, %v3424_v35  ;;  %v2536_v36 = vpop.f32.mrf.mxu2 }
 0x2cb   :  { %v4739_v37 = vpop.eup %4738  ;;  %v2537_v38 = vadd.f32 %v5980_v48, %v2536_v36 }
 0x2cc   :  { %4311 = vmatmul.msk.f32.gmra.mxu3 %vm1091_vm1, %v4739_v37 }
 0x2cd   :  { %4744 = vtanh.f32 %v2537_v38  ;;  %v1664_v39 = vpop.f32.mrf.mxu1 }
 0x2ce   :  { %v4741_v40 = vpop.eup %4740  ;;  %v1665_v41 = vadd.f32 %v5787_v12, %v1664_v39  ;;  %v793_v43 = vpop.f32.mrf.mxu0 }
 0x2cf   :  { %v4743_v45 = vpop.eup %4742  ;;  %v794_v42 = vadd.f32 %v6096_v16, %v793_v43  ;;  %4195 = vmatmul.msk.f32.gmra.mxu2 %vm2014_vm2, %v4741_v40  ;;  %v3426_v46 = vpop.f32.mrf.mxu3 }
 0x2d0   :  { %4746 = vtanh.f32 %v1665_v41  ;;  %v3427_v47 = vadd.f32 %v5812_v33, %v3426_v46  ;;  %4082 = vmatmul.msk.f32.gmra.mxu1 %vm1091_vm1, %v4743_v45 }
 0x2d1   :  { %4748 = vtanh.f32 %v794_v42  ;;  %3970 = vmatmul.msk.f32.gmra.mxu0 %vm166_vm0, %v121_v44  ;;  %v126_v44 = vld [vmem:[%s7309_s0 + $0x2f0] sm:$0xff] }
 0x2d2   :  { %3768 = vst.msk [vmem:[%s7316_s9 + $0xa8] sm:$0xff] %vm166_vm0, %v3427_v47  ;;  %v2539_v49 = vpop.f32.mrf.mxu2  ;;  %v6213_v47 = vld [vmem:[%s7315_s8] ss:$0 sm:$0xff] }
 0x2d3   :  { %v4745_v50 = vpop.eup %4744  ;;  %v2540_v51 = vadd.f32 %v5980_v48, %v2539_v49 }
 0x2d4   :  { %4312 = vmatmul.msk.f32.gmra.mxu3 %vm1091_vm1, %v4745_v50 }
 0x2d5   :  { %4750 = vtanh.f32 %v2540_v51  ;;  %v1667_v52 = vpop.f32.mrf.mxu1 }
 0x2d6   :  { %v4747_v53 = vpop.eup %4746  ;;  %v1668_v54 = vadd.f32 %v5787_v12, %v1667_v52  ;;  %v796_v55 = vpop.f32.mrf.mxu0 }
 0x2d7   :  { %v4749_v57 = vpop.eup %4748  ;;  %v797_v58 = vadd.f32 %v6096_v16, %v796_v55  ;;  %4196 = vmatmul.msk.f32.gmra.mxu2 %vm2014_vm2, %v4747_v53  ;;  %v3429_v59 = vpop.f32.mrf.mxu3 }
 0x2d8   :  { %4752 = vtanh.f32 %v1668_v54  ;;  %v3430_v60 = vadd.f32 %v5812_v33, %v3429_v59  ;;  %4083 = vmatmul.msk.f32.gmra.mxu1 %vm1091_vm1, %v4749_v57  ;;  %v127_v57 = vld [vmem:[%s7309_s0 + $0x2f8] sm:$0xff] }
 0x2d9   :  { %4754 = vtanh.f32 %v797_v58  ;;  %3971 = vmatmul.msk.f32.gmra.mxu0 %vm166_vm0, %v122_v56 }
 0x2da   :  { %3769 = vst.msk [vmem:[%s7316_s9 + $0xb0] sm:$0xff] %vm166_vm0, %v3430_v60  ;;  %v2542_v61 = vpop.f32.mrf.mxu2 }
 0x2db   :  { %v4751_v62 = vpop.eup %4750  ;;  %v2543_v63 = vadd.f32 %v5980_v48, %v2542_v61 }
 0x2dc   :  { %4313 = vmatmul.msk.f32.gmra.mxu3 %vm1091_vm1, %v4751_v62 }
 0x2dd   :  { %4756 = vtanh.f32 %v2543_v63  ;;  %v1670_v0 = vpop.f32.mrf.mxu1 }
 0x2de   :  { %v4753_v1 = vpop.eup %4752  ;;  %v1671_v2 = vadd.f32 %v5787_v12, %v1670_v0  ;;  %v799_v3 = vpop.f32.mrf.mxu0 }
 0x2df   :  { %v4755_v4 = vpop.eup %4754  ;;  %v800_v5 = vadd.f32 %v6096_v16, %v799_v3  ;;  %4197 = vmatmul.msk.f32.gmra.mxu2 %vm2014_vm2, %v4753_v1  ;;  %v3432_v7 = vpop.f32.mrf.mxu3 }
 0x2e0   :  { %4758 = vtanh.f32 %v1671_v2  ;;  %v3433_v8 = vadd.f32 %v5812_v33, %v3432_v7  ;;  %4084 = vmatmul.msk.f32.gmra.mxu1 %vm1091_vm1, %v4755_v4  ;;  %v128_v4 = vld [vmem:[%s7309_s0 + $0x300] sm:$0xff] }
 0x2e1   :  { %4760 = vtanh.f32 %v800_v5  ;;  %3972 = vmatmul.msk.f32.gmra.mxu0 %vm166_vm0, %v123_v19 }
 0x2e2   :  { %3770 = vst.msk [vmem:[%s7316_s9 + $0xb8] sm:$0xff] %vm166_vm0, %v3433_v8  ;;  %v2545_v9 = vpop.f32.mrf.mxu2 }
 0x2e3   :  { %v4757_v6 = vpop.eup %4756  ;;  %v2546_v26 = vadd.f32 %v5980_v48, %v2545_v9 }
 0x2e4   :  { %4314 = vmatmul.msk.f32.gmra.mxu3 %vm1091_vm1, %v4757_v6 }
 0x2e5   :  { %4762 = vtanh.f32 %v2546_v26  ;;  %v1673_v10 = vpop.f32.mrf.mxu1 }
 0x2e6   :  { %v4759_v11 = vpop.eup %4758  ;;  %v1674_v13 = vadd.f32 %v5787_v12, %v1673_v10  ;;  %v802_v14 = vpop.f32.mrf.mxu0 }
 0x2e7   :  { %v4761_v17 = vpop.eup %4760  ;;  %v803_v18 = vadd.f32 %v6096_v16, %v802_v14  ;;  %4198 = vmatmul.msk.f32.gmra.mxu2 %vm2014_vm2, %v4759_v11  ;;  %v3435_v20 = vpop.f32.mrf.mxu3 }
 0x2e8   :  { %4764 = vtanh.f32 %v1674_v13  ;;  %v3436_v21 = vadd.f32 %v5812_v33, %v3435_v20  ;;  %4085 = vmatmul.msk.f32.gmra.mxu1 %vm1091_vm1, %v4761_v17  ;;  %v129_v17 = vld [vmem:[%s7309_s0 + $0x308] sm:$0xff] }
 0x2e9   :  { %4766 = vtanh.f32 %v803_v18  ;;  %3973 = vmatmul.msk.f32.gmra.mxu0 %vm166_vm0, %v124_v15 }
 0x2ea   :  { %3771 = vst.msk [vmem:[%s7316_s9 + $0xc0] sm:$0xff] %vm166_vm0, %v3436_v21  ;;  %v2548_v12 = vpop.f32.mrf.mxu2 }
 0x2eb   :  { %v4763_v22 = vpop.eup %4762  ;;  %v2549_v23 = vadd.f32 %v5980_v48, %v2548_v12 }
 0x2ec   :  { %4315 = vmatmul.msk.f32.gmra.mxu3 %vm1091_vm1, %v4763_v22 }
 0x2ed   :  { %4768 = vtanh.f32 %v2549_v23  ;;  %v1676_v24 = vpop.f32.mrf.mxu1 }
 0x2ee   :  { %v4765_v25 = vpop.eup %4764  ;;  %v1677_v28 = vadd.f32 %v6187_v27, %v1676_v24  ;;  %v805_v29 = vpop.f32.mrf.mxu0 }
 0x2ef   :  { %v4767_v31 = vpop.eup %4766  ;;  %v806_v32 = vadd.f32 %v6096_v16, %v805_v29  ;;  %4199 = vmatmul.msk.f32.gmra.mxu2 %vm2014_vm2, %v4765_v25  ;;  %v3438_v35 = vpop.f32.mrf.mxu3 }
 0x2f0   :  { %4770 = vtanh.f32 %v1677_v28  ;;  %v3439_v36 = vadd.f32 %v5812_v33, %v3438_v35  ;;  %4086 = vmatmul.msk.f32.gmra.mxu1 %vm1091_vm1, %v4767_v31  ;;  %v130_v31 = vld [vmem:[%s7309_s0 + $0x310] sm:$0xff] }
 0x2f1   :  { %4772 = vtanh.f32 %v806_v32  ;;  %3974 = vmatmul.msk.f32.gmra.mxu0 %vm166_vm0, %v125_v30 }
 0x2f2   :  { %3772 = vst.msk [vmem:[%s7316_s9 + $0xc8] sm:$0xff] %vm166_vm0, %v3439_v36  ;;  %v2551_v37 = vpop.f32.mrf.mxu2 }
 0x2f3   :  { %v4769_v38 = vpop.eup %4768  ;;  %v2552_v39 = vadd.f32 %v5980_v48, %v2551_v37 }
 0x2f4   :  { %4316 = vmatmul.msk.f32.gmra.mxu3 %vm1091_vm1, %v4769_v38 }
 0x2f5   :  { %4774 = vtanh.f32 %v2552_v39  ;;  %v1679_v40 = vpop.f32.mrf.mxu1 }
 0x2f6   :  { %v4771_v41 = vpop.eup %4770  ;;  %v1680_v33 = vadd.f32 %v6187_v27, %v1679_v40  ;;  %v808_v43 = vpop.f32.mrf.mxu0 }
 0x2f7   :  { %v4773_v45 = vpop.eup %4772  ;;  %v809_v42 = vadd.f32 %v6096_v16, %v808_v43  ;;  %4200 = vmatmul.msk.f32.gmra.mxu2 %vm2014_vm2, %v4771_v41  ;;  %v3441_v46 = vpop.f32.mrf.mxu3 }
 0x2f8   :  { %4776 = vtanh.f32 %v1680_v33  ;;  %v3442_v49 = vadd.f32 %v6213_v47, %v3441_v46  ;;  %4087 = vmatmul.msk.f32.gmra.mxu1 %vm1091_vm1, %v4773_v45  ;;  %v131_v45 = vld [vmem:[%s7309_s0 + $0x318] sm:$0xff] }
 0x2f9   :  { %4778 = vtanh.f32 %v809_v42  ;;  %3975 = vmatmul.msk.f32.gmra.mxu0 %vm166_vm0, %v126_v44 }
 0x2fa   :  { %3773 = vst.msk [vmem:[%s7316_s9 + $0xd0] sm:$0xff] %vm166_vm0, %v3442_v49  ;;  %v2554_v50 = vpop.f32.mrf.mxu2 }
 0x2fb   :  { %v4775_v51 = vpop.eup %4774  ;;  %v2555_v52 = vadd.f32 %v5980_v48, %v2554_v50 }
 0x2fc   :  { %4317 = vmatmul.msk.f32.gmra.mxu3 %vm1091_vm1, %v4775_v51 }
 0x2fd   :  { %4780 = vtanh.f32 %v2555_v52  ;;  %v1682_v53 = vpop.f32.mrf.mxu1 }
 0x2fe   :  { %v4777_v54 = vpop.eup %4776  ;;  %v1683_v55 = vadd.f32 %v6187_v27, %v1682_v53  ;;  %v811_v56 = vpop.f32.mrf.mxu0 }
 0x2ff   :  { %v4779_v58 = vpop.eup %4778  ;;  %v812_v59 = vadd.f32 %v6096_v16, %v811_v56  ;;  %4201 = vmatmul.msk.f32.gmra.mxu2 %vm2014_vm2, %v4777_v54  ;;  %v3444_v60 = vpop.f32.mrf.mxu3 }
 0x300   :  { %4782 = vtanh.f32 %v1683_v55  ;;  %v3445_v61 = vadd.f32 %v6213_v47, %v3444_v60  ;;  %4088 = vmatmul.msk.f32.gmra.mxu1 %vm1091_vm1, %v4779_v58  ;;  %v132_v58 = vld [vmem:[%s7309_s0 + $0x320] sm:$0xff] }
 0x301   :  { %4784 = vtanh.f32 %v812_v59  ;;  %3976 = vmatmul.msk.f32.gmra.mxu0 %vm166_vm0, %v127_v57 }
 0x302   :  { %3774 = vst.msk [vmem:[%s7316_s9 + $0xd8] sm:$0xff] %vm166_vm0, %v3445_v61  ;;  %v2557_v62 = vpop.f32.mrf.mxu2 }
 0x303   :  { %v4781_v63 = vpop.eup %4780  ;;  %v2558_v0 = vadd.f32 %v5980_v48, %v2557_v62 }
 0x304   :  { %4318 = vmatmul.msk.f32.gmra.mxu3 %vm1091_vm1, %v4781_v63 }
 0x305   :  { %4786 = vtanh.f32 %v2558_v0  ;;  %v1685_v1 = vpop.f32.mrf.mxu1 }
 0x306   :  { %v4783_v2 = vpop.eup %4782  ;;  %v1686_v3 = vadd.f32 %v6187_v27, %v1685_v1  ;;  %v814_v19 = vpop.f32.mrf.mxu0 }
 0x307   :  { %v4785_v5 = vpop.eup %4784  ;;  %v815_v7 = vadd.f32 %v6096_v16, %v814_v19  ;;  %4202 = vmatmul.msk.f32.gmra.mxu2 %vm2014_vm2, %v4783_v2  ;;  %v3447_v8 = vpop.f32.mrf.mxu3 }
 0x308   :  { %4788 = vtanh.f32 %v1686_v3  ;;  %v3448_v9 = vadd.f32 %v6213_v47, %v3447_v8  ;;  %4089 = vmatmul.msk.f32.gmra.mxu1 %vm1091_vm1, %v4785_v5  ;;  %v133_v5 = vld [vmem:[%s7309_s0 + $0x328] sm:$0xff] }
 0x309   :  { %4790 = vtanh.f32 %v815_v7  ;;  %3977 = vmatmul.msk.f32.gmra.mxu0 %vm166_vm0, %v128_v4 }
 0x30a   :  { %3775 = vst.msk [vmem:[%s7316_s9 + $0xe0] sm:$0xff] %vm166_vm0, %v3448_v9  ;;  %v2560_v6 = vpop.f32.mrf.mxu2 }
 0x30b   :  { %v4787_v26 = vpop.eup %4786  ;;  %v2561_v10 = vadd.f32 %v5980_v48, %v2560_v6 }
 0x30c   :  { %4319 = vmatmul.msk.f32.gmra.mxu3 %vm1091_vm1, %v4787_v26 }
 0x30d   :  { %4792 = vtanh.f32 %v2561_v10  ;;  %v1688_v11 = vpop.f32.mrf.mxu1 }
 0x30e   :  { %v4789_v13 = vpop.eup %4788  ;;  %v1689_v14 = vadd.f32 %v6187_v27, %v1688_v11  ;;  %v817_v15 = vpop.f32.mrf.mxu0 }
 0x30f   :  { %v4791_v18 = vpop.eup %4790  ;;  %v818_v20 = vadd.f32 %v6096_v16, %v817_v15  ;;  %4203 = vmatmul.msk.f32.gmra.mxu2 %vm2014_vm2, %v4789_v13  ;;  %v3450_v21 = vpop.f32.mrf.mxu3 }
 0x310   :  { %4794 = vtanh.f32 %v1689_v14  ;;  %v3451_v12 = vadd.f32 %v6213_v47, %v3450_v21  ;;  %4090 = vmatmul.msk.f32.gmra.mxu1 %vm1091_vm1, %v4791_v18  ;;  %v134_v18 = vld [vmem:[%s7309_s0 + $0x330] sm:$0xff] }
 0x311   :  { %4796 = vtanh.f32 %v818_v20  ;;  %3978 = vmatmul.msk.f32.gmra.mxu0 %vm166_vm0, %v129_v17 }
 0x312   :  { %3776 = vst.msk [vmem:[%s7316_s9 + $0xe8] sm:$0xff] %vm166_vm0, %v3451_v12  ;;  %v2563_v22 = vpop.f32.mrf.mxu2 }
 0x313   :  { %v4793_v23 = vpop.eup %4792  ;;  %v2564_v24 = vadd.f32 %v5980_v48, %v2563_v22 }
 0x314   :  { %4320 = vmatmul.msk.f32.gmra.mxu3 %vm1091_vm1, %v4793_v23 }
 0x315   :  { %4798 = vtanh.f32 %v2564_v24  ;;  %v1691_v25 = vpop.f32.mrf.mxu1 }
 0x316   :  { %v4795_v28 = vpop.eup %4794  ;;  %v1692_v29 = vadd.f32 %v6187_v27, %v1691_v25  ;;  %v820_v30 = vpop.f32.mrf.mxu0 }
 0x317   :  { %v4797_v32 = vpop.eup %4796  ;;  %v821_v35 = vadd.f32 %v6096_v16, %v820_v30  ;;  %4204 = vmatmul.msk.f32.gmra.mxu2 %vm2014_vm2, %v4795_v28  ;;  %v3453_v36 = vpop.f32.mrf.mxu3 }
 0x318   :  { %4800 = vtanh.f32 %v1692_v29  ;;  %v3454_v37 = vadd.f32 %v6213_v47, %v3453_v36  ;;  %4091 = vmatmul.msk.f32.gmra.mxu1 %vm1091_vm1, %v4797_v32  ;;  %v135_v32 = vld [vmem:[%s7309_s0 + $0x338] sm:$0xff] }
 0x319   :  { %4802 = vtanh.f32 %v821_v35  ;;  %3979 = vmatmul.msk.f32.gmra.mxu0 %vm166_vm0, %v130_v31 }
 0x31a   :  { %3777 = vst.msk [vmem:[%s7316_s9 + $0xf0] sm:$0xff] %vm166_vm0, %v3454_v37  ;;  %v2566_v38 = vpop.f32.mrf.mxu2 }
 0x31b   :  { %v4799_v39 = vpop.eup %4798  ;;  %v2567_v40 = vadd.f32 %v5980_v48, %v2566_v38 }
 0x31c   :  { %4321 = vmatmul.msk.f32.gmra.mxu3 %vm1091_vm1, %v4799_v39 }
 0x31d   :  { %4804 = vtanh.f32 %v2567_v40  ;;  %v1694_v41 = vpop.f32.mrf.mxu1 }
 0x31e   :  { %v4801_v33 = vpop.eup %4800  ;;  %v1695_v43 = vadd.f32 %v6187_v27, %v1694_v41  ;;  %v823_v44 = vpop.f32.mrf.mxu0 }
 0x31f   :  { %v4803_v42 = vpop.eup %4802  ;;  %v824_v46 = vadd.f32 %v6096_v16, %v823_v44  ;;  %4205 = vmatmul.msk.f32.gmra.mxu2 %vm2014_vm2, %v4801_v33  ;;  %v3456_v49 = vpop.f32.mrf.mxu3 }
 0x320   :  { %4806 = vtanh.f32 %v1695_v43  ;;  %v3457_v50 = vadd.f32 %v6213_v47, %v3456_v49  ;;  %4092 = vmatmul.msk.f32.gmra.mxu1 %vm1091_vm1, %v4803_v42  ;;  %v136_v42 = vld [vmem:[%s7309_s0 + $0x340] sm:$0xff] }
 0x321   :  { %4808 = vtanh.f32 %v824_v46  ;;  %3980 = vmatmul.msk.f32.gmra.mxu0 %vm166_vm0, %v131_v45 }
 0x322   :  { %3778 = vst.msk [vmem:[%s7316_s9 + $0xf8] sm:$0xff] %vm166_vm0, %v3457_v50  ;;  %v2569_v51 = vpop.f32.mrf.mxu2 }
 0x323   :  { %v4805_v52 = vpop.eup %4804  ;;  %v2570_v53 = vadd.f32 %v5980_v48, %v2569_v51 }
 0x324   :  { %4322 = vmatmul.msk.f32.gmra.mxu3 %vm1091_vm1, %v4805_v52 }
 0x325   :  { %4810 = vtanh.f32 %v2570_v53  ;;  %v1697_v54 = vpop.f32.mrf.mxu1 }
 0x326   :  { %v4807_v55 = vpop.eup %4806  ;;  %v1698_v56 = vadd.f32 %v6187_v27, %v1697_v54  ;;  %v826_v57 = vpop.f32.mrf.mxu0 }
 0x327   :  { %v4809_v59 = vpop.eup %4808  ;;  %v827_v60 = vadd.f32 %v6096_v16, %v826_v57  ;;  %4206 = vmatmul.msk.f32.gmra.mxu2 %vm2014_vm2, %v4807_v55  ;;  %v3459_v61 = vpop.f32.mrf.mxu3 }
 0x328   :  { %4812 = vtanh.f32 %v1698_v56  ;;  %v3460_v62 = vadd.f32 %v6213_v47, %v3459_v61  ;;  %4093 = vmatmul.msk.f32.gmra.mxu1 %vm1091_vm1, %v4809_v59  ;;  %v137_v59 = vld [vmem:[%s7309_s0 + $0x348] sm:$0xff] }
 0x329   :  { %4814 = vtanh.f32 %v827_v60  ;;  %3981 = vmatmul.msk.f32.gmra.mxu0 %vm166_vm0, %v132_v58 }
 0x32a   :  { %3779 = vst.msk [vmem:[%s7316_s9 + $0x100] sm:$0xff] %vm166_vm0, %v3460_v62  ;;  %v2572_v63 = vpop.f32.mrf.mxu2 }
 0x32b   :  { %v4811_v0 = vpop.eup %4810  ;;  %v2573_v1 = vadd.f32 %v5980_v48, %v2572_v63 }
 0x32c   :  { %4323 = vmatmul.msk.f32.gmra.mxu3 %vm1091_vm1, %v4811_v0 }
 0x32d   :  { %4816 = vtanh.f32 %v2573_v1  ;;  %v1700_v2 = vpop.f32.mrf.mxu1  ;;  %v6390_v1 = vld [vmem:[%s7313_s6] ss:$0 sm:$0xff] }
 0x32e   :  { %v4813_v3 = vpop.eup %4812  ;;  %v1701_v19 = vadd.f32 %v6187_v27, %v1700_v2  ;;  %v829_v4 = vpop.f32.mrf.mxu0 }
 0x32f   :  { %v4815_v7 = vpop.eup %4814  ;;  %v830_v8 = vadd.f32 %v6096_v16, %v829_v4  ;;  %4207 = vmatmul.msk.f32.gmra.mxu2 %vm2014_vm2, %v4813_v3  ;;  %v3462_v9 = vpop.f32.mrf.mxu3 }
 0x330   :  { %4818 = vtanh.f32 %v1701_v19  ;;  %v3463_v6 = vadd.f32 %v6213_v47, %v3462_v9  ;;  %4094 = vmatmul.msk.f32.gmra.mxu1 %vm1091_vm1, %v4815_v7  ;;  %v138_v7 = vld [vmem:[%s7309_s0 + $0x350] sm:$0xff] }
 0x331   :  { %4820 = vtanh.f32 %v830_v8  ;;  %3982 = vmatmul.msk.f32.gmra.mxu0 %vm166_vm0, %v133_v5 }
 0x332   :  { %3780 = vst.msk [vmem:[%s7316_s9 + $0x108] sm:$0xff] %vm166_vm0, %v3463_v6  ;;  %v2575_v26 = vpop.f32.mrf.mxu2 }
 0x333   :  { %v4817_v10 = vpop.eup %4816  ;;  %v2576_v11 = vadd.f32 %v5980_v48, %v2575_v26 }
 0x334   :  { %4324 = vmatmul.msk.f32.gmra.mxu3 %vm1091_vm1, %v4817_v10 }
 0x335   :  { %4822 = vtanh.f32 %v2576_v11  ;;  %v1703_v13 = vpop.f32.mrf.mxu1 }
 0x336   :  { %v4819_v14 = vpop.eup %4818  ;;  %v1704_v15 = vadd.f32 %v6187_v27, %v1703_v13  ;;  %v832_v17 = vpop.f32.mrf.mxu0 }
 0x337   :  { %v4821_v20 = vpop.eup %4820  ;;  %v833_v21 = vadd.f32 %v6096_v16, %v832_v17  ;;  %4208 = vmatmul.msk.f32.gmra.mxu2 %vm2014_vm2, %v4819_v14  ;;  %v3465_v12 = vpop.f32.mrf.mxu3 }
 0x338   :  { %4824 = vtanh.f32 %v1704_v15  ;;  %v3466_v22 = vadd.f32 %v6213_v47, %v3465_v12  ;;  %4095 = vmatmul.msk.f32.gmra.mxu1 %vm1091_vm1, %v4821_v20  ;;  %v139_v20 = vld [vmem:[%s7309_s0 + $0x358] sm:$0xff] }
 0x339   :  { %4826 = vtanh.f32 %v833_v21  ;;  %3983 = vmatmul.msk.f32.gmra.mxu0 %vm166_vm0, %v134_v18 }
 0x33a   :  { %3781 = vst.msk [vmem:[%s7316_s9 + $0x110] sm:$0xff] %vm166_vm0, %v3466_v22  ;;  %v2578_v23 = vpop.f32.mrf.mxu2 }
 0x33b   :  { %v4823_v24 = vpop.eup %4822  ;;  %v2579_v25 = vadd.f32 %v5980_v48, %v2578_v23 }
 0x33c   :  { %4325 = vmatmul.msk.f32.gmra.mxu3 %vm1091_vm1, %v4823_v24 }
 0x33d   :  { %4828 = vtanh.f32 %v2579_v25  ;;  %v1706_v28 = vpop.f32.mrf.mxu1 }
 0x33e   :  { %v4825_v29 = vpop.eup %4824  ;;  %v1707_v30 = vadd.f32 %v6187_v27, %v1706_v28  ;;  %v835_v31 = vpop.f32.mrf.mxu0 }
 0x33f   :  { %v4827_v35 = vpop.eup %4826  ;;  %v836_v36 = vadd.f32 %v6096_v16, %v835_v31  ;;  %4209 = vmatmul.msk.f32.gmra.mxu2 %vm2014_vm2, %v4825_v29  ;;  %v3468_v37 = vpop.f32.mrf.mxu3 }
 0x340   :  { %4830 = vtanh.f32 %v1707_v30  ;;  %v3469_v38 = vadd.f32 %v6213_v47, %v3468_v37  ;;  %4096 = vmatmul.msk.f32.gmra.mxu1 %vm1091_vm1, %v4827_v35  ;;  %v140_v35 = vld [vmem:[%s7309_s0 + $0x360] sm:$0xff] }
 0x341   :  { %4832 = vtanh.f32 %v836_v36  ;;  %3984 = vmatmul.msk.f32.gmra.mxu0 %vm166_vm0, %v135_v32 }
 0x342   :  { %3782 = vst.msk [vmem:[%s7316_s9 + $0x118] sm:$0xff] %vm166_vm0, %v3469_v38  ;;  %v2581_v39 = vpop.f32.mrf.mxu2 }
 0x343   :  { %v4829_v40 = vpop.eup %4828  ;;  %v2582_v41 = vadd.f32 %v5980_v48, %v2581_v39 }
 0x344   :  { %4326 = vmatmul.msk.f32.gmra.mxu3 %vm1091_vm1, %v4829_v40 }
 0x345   :  { %4834 = vtanh.f32 %v2582_v41  ;;  %v1709_v33 = vpop.f32.mrf.mxu1 }
 0x346   :  { %v4831_v43 = vpop.eup %4830  ;;  %v1710_v44 = vadd.f32 %v6187_v27, %v1709_v33  ;;  %v838_v45 = vpop.f32.mrf.mxu0 }
 0x347   :  { %v4833_v46 = vpop.eup %4832  ;;  %v839_v49 = vadd.f32 %v6096_v16, %v838_v45  ;;  %4210 = vmatmul.msk.f32.gmra.mxu2 %vm2014_vm2, %v4831_v43  ;;  %v3471_v50 = vpop.f32.mrf.mxu3 }
 0x348   :  { %4836 = vtanh.f32 %v1710_v44  ;;  %v3472_v51 = vadd.f32 %v6213_v47, %v3471_v50  ;;  %4097 = vmatmul.msk.f32.gmra.mxu1 %vm1091_vm1, %v4833_v46  ;;  %v141_v46 = vld [vmem:[%s7309_s0 + $0x368] sm:$0xff] }
 0x349   :  { %4838 = vtanh.f32 %v839_v49  ;;  %3985 = vmatmul.msk.f32.gmra.mxu0 %vm166_vm0, %v136_v42 }
 0x34a   :  { %3783 = vst.msk [vmem:[%s7316_s9 + $0x120] sm:$0xff] %vm166_vm0, %v3472_v51  ;;  %v2584_v52 = vpop.f32.mrf.mxu2 }
 0x34b   :  { %v4835_v53 = vpop.eup %4834  ;;  %v2585_v54 = vadd.f32 %v5980_v48, %v2584_v52 }
 0x34c   :  { %4327 = vmatmul.msk.f32.gmra.mxu3 %vm1091_vm1, %v4835_v53 }
 0x34d   :  { %4840 = vtanh.f32 %v2585_v54  ;;  %v1712_v55 = vpop.f32.mrf.mxu1 }
 0x34e   :  { %v4837_v56 = vpop.eup %4836  ;;  %v1713_v57 = vadd.f32 %v6187_v27, %v1712_v55  ;;  %v841_v58 = vpop.f32.mrf.mxu0 }
 0x34f   :  { %v4839_v60 = vpop.eup %4838  ;;  %v842_v61 = vadd.f32 %v6096_v16, %v841_v58  ;;  %4211 = vmatmul.msk.f32.gmra.mxu2 %vm2014_vm2, %v4837_v56  ;;  %v3474_v62 = vpop.f32.mrf.mxu3 }
 0x350   :  { %4842 = vtanh.f32 %v1713_v57  ;;  %v3475_v48 = vadd.f32 %v6213_v47, %v3474_v62  ;;  %4098 = vmatmul.msk.f32.gmra.mxu1 %vm1091_vm1, %v4839_v60  ;;  %v142_v60 = vld [vmem:[%s7309_s0 + $0x370] sm:$0xff] }
 0x351   :  { %4844 = vtanh.f32 %v842_v61  ;;  %3986 = vmatmul.msk.f32.gmra.mxu0 %vm166_vm0, %v137_v59 }
 0x352   :  { %3784 = vst.msk [vmem:[%s7316_s9 + $0x128] sm:$0xff] %vm166_vm0, %v3475_v48  ;;  %v2587_v63 = vpop.f32.mrf.mxu2 }
 0x353   :  { %v4841_v0 = vpop.eup %4840  ;;  %v2588_v2 = vadd.f32 %v6390_v1, %v2587_v63 }
 0x354   :  { %4328 = vmatmul.msk.f32.gmra.mxu3 %vm1091_vm1, %v4841_v0 }
 0x355   :  { %4846 = vtanh.f32 %v2588_v2  ;;  %v1715_v3 = vpop.f32.mrf.mxu1 }
 0x356   :  { %v4843_v19 = vpop.eup %4842  ;;  %v1716_v4 = vadd.f32 %v6187_v27, %v1715_v3  ;;  %v844_v5 = vpop.f32.mrf.mxu0 }
 0x357   :  { %v4845_v8 = vpop.eup %4844  ;;  %v845_v9 = vadd.f32 %v6096_v16, %v844_v5  ;;  %4212 = vmatmul.msk.f32.gmra.mxu2 %vm2014_vm2, %v4843_v19  ;;  %v3477_v6 = vpop.f32.mrf.mxu3 }
 0x358   :  { %4848 = vtanh.f32 %v1716_v4  ;;  %v3478_v26 = vadd.f32 %v6213_v47, %v3477_v6  ;;  %4099 = vmatmul.msk.f32.gmra.mxu1 %vm1091_vm1, %v4845_v8  ;;  %v143_v8 = vld [vmem:[%s7309_s0 + $0x378] sm:$0xff] }
 0x359   :  { %4850 = vtanh.f32 %v845_v9  ;;  %3987 = vmatmul.msk.f32.gmra.mxu0 %vm166_vm0, %v138_v7 }
 0x35a   :  { %3785 = vst.msk [vmem:[%s7316_s9 + $0x130] sm:$0xff] %vm166_vm0, %v3478_v26  ;;  %v2590_v10 = vpop.f32.mrf.mxu2 }
 0x35b   :  { %v4847_v11 = vpop.eup %4846  ;;  %v2591_v13 = vadd.f32 %v6390_v1, %v2590_v10 }
 0x35c   :  { %4329 = vmatmul.msk.f32.gmra.mxu3 %vm1091_vm1, %v4847_v11 }
 0x35d   :  { %4852 = vtanh.f32 %v2591_v13  ;;  %v1718_v14 = vpop.f32.mrf.mxu1 }
 0x35e   :  { %v4849_v15 = vpop.eup %4848  ;;  %v1719_v17 = vadd.f32 %v6187_v27, %v1718_v14  ;;  %v847_v18 = vpop.f32.mrf.mxu0 }
 0x35f   :  { %v4851_v21 = vpop.eup %4850  ;;  %v848_v12 = vadd.f32 %v6096_v16, %v847_v18  ;;  %4213 = vmatmul.msk.f32.gmra.mxu2 %vm2014_vm2, %v4849_v15  ;;  %v3480_v22 = vpop.f32.mrf.mxu3 }
 0x360   :  { %4854 = vtanh.f32 %v1719_v17  ;;  %v3481_v23 = vadd.f32 %v6213_v47, %v3480_v22  ;;  %4100 = vmatmul.msk.f32.gmra.mxu1 %vm1091_vm1, %v4851_v21  ;;  %v144_v21 = vld [vmem:[%s7309_s0 + $0x380] sm:$0xff] }
 0x361   :  { %4856 = vtanh.f32 %v848_v12  ;;  %3988 = vmatmul.msk.f32.gmra.mxu0 %vm166_vm0, %v139_v20 }
 0x362   :  { %3786 = vst.msk [vmem:[%s7316_s9 + $0x138] sm:$0xff] %vm166_vm0, %v3481_v23  ;;  %v2593_v24 = vpop.f32.mrf.mxu2 }
 0x363   :  { %v4853_v25 = vpop.eup %4852  ;;  %v2594_v28 = vadd.f32 %v6390_v1, %v2593_v24 }
 0x364   :  { %4330 = vmatmul.msk.f32.gmra.mxu3 %vm1091_vm1, %v4853_v25 }
 0x365   :  { %4858 = vtanh.f32 %v2594_v28  ;;  %v1721_v29 = vpop.f32.mrf.mxu1 }
 0x366   :  { %v4855_v30 = vpop.eup %4854  ;;  %v1722_v31 = vadd.f32 %v6187_v27, %v1721_v29  ;;  %v850_v32 = vpop.f32.mrf.mxu0 }
 0x367   :  { %v4857_v36 = vpop.eup %4856  ;;  %v851_v37 = vadd.f32 %v6096_v16, %v850_v32  ;;  %4214 = vmatmul.msk.f32.gmra.mxu2 %vm2014_vm2, %v4855_v30  ;;  %v3483_v38 = vpop.f32.mrf.mxu3 }
 0x368   :  { %4860 = vtanh.f32 %v1722_v31  ;;  %v3484_v39 = vadd.f32 %v6213_v47, %v3483_v38  ;;  %4101 = vmatmul.msk.f32.gmra.mxu1 %vm1091_vm1, %v4857_v36 }
 0x369   :  { %4862 = vtanh.f32 %v851_v37  ;;  %3989 = vmatmul.msk.f32.gmra.mxu0 %vm166_vm0, %v140_v35  ;;  %v145_v35 = vld [vmem:[%s7309_s0 + $0x388] sm:$0xff]  ;;  %v6506_v37 = vld [vmem:[%s7308_s2] ss:$0 sm:$0xff] }
 0x36a   :  { %3787 = vst.msk [vmem:[%s7316_s9 + $0x140] sm:$0xff] %vm166_vm0, %v3484_v39  ;;  %v2596_v40 = vpop.f32.mrf.mxu2 }
 0x36b   :  { %v4859_v41 = vpop.eup %4858  ;;  %v2597_v33 = vadd.f32 %v6390_v1, %v2596_v40 }
 0x36c   :  { %4331 = vmatmul.msk.f32.gmra.mxu3 %vm1091_vm1, %v4859_v41 }
 0x36d   :  { %4864 = vtanh.f32 %v2597_v33  ;;  %v1724_v43 = vpop.f32.mrf.mxu1 }
 0x36e   :  { %v4861_v44 = vpop.eup %4860  ;;  %v1725_v45 = vadd.f32 %v6187_v27, %v1724_v43  ;;  %v853_v42 = vpop.f32.mrf.mxu0 }
 0x36f   :  { %v4863_v49 = vpop.eup %4862  ;;  %v854_v50 = vadd.f32 %v6096_v16, %v853_v42  ;;  %4215 = vmatmul.msk.f32.gmra.mxu2 %vm2014_vm2, %v4861_v44  ;;  %v3486_v51 = vpop.f32.mrf.mxu3 }
 0x370   :  { %4866 = vtanh.f32 %v1725_v45  ;;  %v3487_v52 = vadd.f32 %v6213_v47, %v3486_v51  ;;  %4102 = vmatmul.msk.f32.gmra.mxu1 %vm1091_vm1, %v4863_v49  ;;  %v146_v49 = vld [vmem:[%s7309_s0 + $0x390] sm:$0xff] }
 0x371   :  { %4868 = vtanh.f32 %v854_v50  ;;  %3990 = vmatmul.msk.f32.gmra.mxu0 %vm166_vm0, %v141_v46 }
 0x372   :  { %3788 = vst.msk [vmem:[%s7316_s9 + $0x148] sm:$0xff] %vm166_vm0, %v3487_v52  ;;  %v2599_v53 = vpop.f32.mrf.mxu2 }
 0x373   :  { %v4865_v54 = vpop.eup %4864  ;;  %v2600_v55 = vadd.f32 %v6390_v1, %v2599_v53 }
 0x374   :  { %4332 = vmatmul.msk.f32.gmra.mxu3 %vm1091_vm1, %v4865_v54 }
 0x375   :  { %4870 = vtanh.f32 %v2600_v55  ;;  %v1727_v56 = vpop.f32.mrf.mxu1 }
 0x376   :  { %v4867_v57 = vpop.eup %4866  ;;  %v1728_v58 = vadd.f32 %v6187_v27, %v1727_v56  ;;  %v856_v59 = vpop.f32.mrf.mxu0 }
 0x377   :  { %v4869_v61 = vpop.eup %4868  ;;  %v857_v62 = vadd.f32 %v6096_v16, %v856_v59  ;;  %4216 = vmatmul.msk.f32.gmra.mxu2 %vm2014_vm2, %v4867_v57  ;;  %v3489_v48 = vpop.f32.mrf.mxu3 }
 0x378   :  { %4872 = vtanh.f32 %v1728_v58  ;;  %v3490_v63 = vadd.f32 %v6213_v47, %v3489_v48  ;;  %4103 = vmatmul.msk.f32.gmra.mxu1 %vm1091_vm1, %v4869_v61  ;;  %v147_v61 = vld [vmem:[%s7309_s0 + $0x398] sm:$0xff] }
 0x379   :  { %4874 = vtanh.f32 %v857_v62  ;;  %3991 = vmatmul.msk.f32.gmra.mxu0 %vm166_vm0, %v142_v60 }
 0x37a   :  { %3789 = vst.msk [vmem:[%s7316_s9 + $0x150] sm:$0xff] %vm166_vm0, %v3490_v63  ;;  %v2602_v0 = vpop.f32.mrf.mxu2 }
 0x37b   :  { %v4871_v2 = vpop.eup %4870  ;;  %v2603_v3 = vadd.f32 %v6390_v1, %v2602_v0 }
 0x37c   :  { %4333 = vmatmul.msk.f32.gmra.mxu3 %vm1091_vm1, %v4871_v2 }
 0x37d   :  { %4876 = vtanh.f32 %v2603_v3  ;;  %v1730_v19 = vpop.f32.mrf.mxu1 }
 0x37e   :  { %v4873_v4 = vpop.eup %4872  ;;  %v1731_v5 = vadd.f32 %v6187_v27, %v1730_v19  ;;  %v859_v7 = vpop.f32.mrf.mxu0 }
 0x37f   :  { %v4875_v9 = vpop.eup %4874  ;;  %v860_v6 = vadd.f32 %v6096_v16, %v859_v7  ;;  %4217 = vmatmul.msk.f32.gmra.mxu2 %vm2014_vm2, %v4873_v4  ;;  %v3492_v26 = vpop.f32.mrf.mxu3 }
 0x380   :  { %4878 = vtanh.f32 %v1731_v5  ;;  %v3493_v10 = vadd.f32 %v6213_v47, %v3492_v26  ;;  %4104 = vmatmul.msk.f32.gmra.mxu1 %vm1091_vm1, %v4875_v9  ;;  %v148_v9 = vld [vmem:[%s7309_s0 + $0x3a0] sm:$0xff] }
 0x381   :  { %4880 = vtanh.f32 %v860_v6  ;;  %3992 = vmatmul.msk.f32.gmra.mxu0 %vm166_vm0, %v143_v8 }
 0x382   :  { %3790 = vst.msk [vmem:[%s7316_s9 + $0x158] sm:$0xff] %vm166_vm0, %v3493_v10  ;;  %v2605_v11 = vpop.f32.mrf.mxu2 }
 0x383   :  { %v4877_v13 = vpop.eup %4876  ;;  %v2606_v14 = vadd.f32 %v6390_v1, %v2605_v11 }
 0x384   :  { %4334 = vmatmul.msk.f32.gmra.mxu3 %vm1091_vm1, %v4877_v13 }
 0x385   :  { %4882 = vtanh.f32 %v2606_v14  ;;  %v1733_v15 = vpop.f32.mrf.mxu1 }
 0x386   :  { %v4879_v17 = vpop.eup %4878  ;;  %v1734_v18 = vadd.f32 %v6187_v27, %v1733_v15  ;;  %v862_v20 = vpop.f32.mrf.mxu0 }
 0x387   :  { %v4881_v12 = vpop.eup %4880  ;;  %v863_v22 = vadd.f32 %v6096_v16, %v862_v20  ;;  %4218 = vmatmul.msk.f32.gmra.mxu2 %vm2014_vm2, %v4879_v17  ;;  %v3495_v23 = vpop.f32.mrf.mxu3 }
 0x388   :  { %4884 = vtanh.f32 %v1734_v18  ;;  %v3496_v24 = vadd.f32 %v6213_v47, %v3495_v23  ;;  %4105 = vmatmul.msk.f32.gmra.mxu1 %vm1091_vm1, %v4881_v12  ;;  %v149_v12 = vld [vmem:[%s7309_s0 + $0x3a8] sm:$0xff] }
 0x389   :  { %4886 = vtanh.f32 %v863_v22  ;;  %3993 = vmatmul.msk.f32.gmra.mxu0 %vm166_vm0, %v144_v21 }
 0x38a   :  { %3791 = vst.msk [vmem:[%s7316_s9 + $0x160] sm:$0xff] %vm166_vm0, %v3496_v24  ;;  %v2608_v25 = vpop.f32.mrf.mxu2 }
 0x38b   :  { %v4883_v28 = vpop.eup %4882  ;;  %v2609_v16 = vadd.f32 %v6390_v1, %v2608_v25 }
 0x38c   :  { %4335 = vmatmul.msk.f32.gmra.mxu3 %vm1091_vm1, %v4883_v28 }
 0x38d   :  { %4888 = vtanh.f32 %v2609_v16  ;;  %v1736_v29 = vpop.f32.mrf.mxu1 }
 0x38e   :  { %v4885_v30 = vpop.eup %4884  ;;  %v1737_v31 = vadd.f32 %v6187_v27, %v1736_v29  ;;  %v865_v32 = vpop.f32.mrf.mxu0 }
 0x38f   :  { %v4887_v36 = vpop.eup %4886  ;;  %v866_v38 = vadd.f32 %v6506_v37, %v865_v32  ;;  %4219 = vmatmul.msk.f32.gmra.mxu2 %vm2014_vm2, %v4885_v30  ;;  %v3498_v39 = vpop.f32.mrf.mxu3 }
 0x390   :  { %4890 = vtanh.f32 %v1737_v31  ;;  %v3499_v40 = vadd.f32 %v6213_v47, %v3498_v39  ;;  %4106 = vmatmul.msk.f32.gmra.mxu1 %vm1091_vm1, %v4887_v36  ;;  %v150_v36 = vld [vmem:[%s7309_s0 + $0x3b0] sm:$0xff] }
 0x391   :  { %4892 = vtanh.f32 %v866_v38  ;;  %3994 = vmatmul.msk.f32.gmra.mxu0 %vm166_vm0, %v145_v35 }
 0x392   :  { %3792 = vst.msk [vmem:[%s7316_s9 + $0x168] sm:$0xff] %vm166_vm0, %v3499_v40  ;;  %v2611_v41 = vpop.f32.mrf.mxu2 }
 0x393   :  { %v4889_v33 = vpop.eup %4888  ;;  %v2612_v43 = vadd.f32 %v6390_v1, %v2611_v41 }
 0x394   :  { %4336 = vmatmul.msk.f32.gmra.mxu3 %vm1091_vm1, %v4889_v33 }
 0x395   :  { %4894 = vtanh.f32 %v2612_v43  ;;  %v1739_v44 = vpop.f32.mrf.mxu1 }
 0x396   :  { %v4891_v45 = vpop.eup %4890  ;;  %v1740_v42 = vadd.f32 %v6187_v27, %v1739_v44  ;;  %v868_v46 = vpop.f32.mrf.mxu0 }
 0x397   :  { %v4893_v50 = vpop.eup %4892  ;;  %v869_v51 = vadd.f32 %v6506_v37, %v868_v46  ;;  %4220 = vmatmul.msk.f32.gmra.mxu2 %vm2014_vm2, %v4891_v45  ;;  %v3501_v52 = vpop.f32.mrf.mxu3 }
 0x398   :  { %4896 = vtanh.f32 %v1740_v42  ;;  %v3502_v53 = vadd.f32 %v6213_v47, %v3501_v52  ;;  %4107 = vmatmul.msk.f32.gmra.mxu1 %vm1091_vm1, %v4893_v50  ;;  %v6597_v42 = vld [vmem:[%s7311_s4] ss:$0 sm:$0xff]  ;;  %v151_v50 = vld [vmem:[%s7309_s0 + $0x3b8] sm:$0xff] }
 0x399   :  { %4898 = vtanh.f32 %v869_v51  ;;  %3995 = vmatmul.msk.f32.gmra.mxu0 %vm166_vm0, %v146_v49 }
 0x39a   :  { %3793 = vst.msk [vmem:[%s7316_s9 + $0x170] sm:$0xff] %vm166_vm0, %v3502_v53  ;;  %v2614_v54 = vpop.f32.mrf.mxu2 }
 0x39b   :  { %v4895_v55 = vpop.eup %4894  ;;  %v2615_v56 = vadd.f32 %v6390_v1, %v2614_v54 }
 0x39c   :  { %4337 = vmatmul.msk.f32.gmra.mxu3 %vm1091_vm1, %v4895_v55 }
 0x39d   :  { %4900 = vtanh.f32 %v2615_v56  ;;  %v1742_v57 = vpop.f32.mrf.mxu1 }
 0x39e   :  { %v4897_v58 = vpop.eup %4896  ;;  %v1743_v59 = vadd.f32 %v6187_v27, %v1742_v57  ;;  %v871_v60 = vpop.f32.mrf.mxu0 }
 0x39f   :  { %v4899_v62 = vpop.eup %4898  ;;  %v872_v48 = vadd.f32 %v6506_v37, %v871_v60  ;;  %4221 = vmatmul.msk.f32.gmra.mxu2 %vm2014_vm2, %v4897_v58  ;;  %v3504_v63 = vpop.f32.mrf.mxu3 }
 0x3a0   :  { %4902 = vtanh.f32 %v1743_v59  ;;  %v3505_v0 = vadd.f32 %v6213_v47, %v3504_v63  ;;  %4108 = vmatmul.msk.f32.gmra.mxu1 %vm1091_vm1, %v4899_v62 }
 0x3a1   :  { %4904 = vtanh.f32 %v872_v48  ;;  %3996 = vmatmul.msk.f32.gmra.mxu0 %vm166_vm0, %v147_v61  ;;  %v152_v61 = vld [vmem:[%s7309_s0 + $0x3c0] sm:$0xff] }
 0x3a2   :  { %3794 = vst.msk [vmem:[%s7316_s9 + $0x178] sm:$0xff] %vm166_vm0, %v3505_v0  ;;  %v2617_v2 = vpop.f32.mrf.mxu2  ;;  %v6623_v0 = vld [vmem:[%s7315_s8] ss:$0 sm:$0xff] }
 0x3a3   :  { %v4901_v3 = vpop.eup %4900  ;;  %v2618_v19 = vadd.f32 %v6390_v1, %v2617_v2 }
 0x3a4   :  { %4338 = vmatmul.msk.f32.gmra.mxu3 %vm1091_vm1, %v4901_v3 }
 0x3a5   :  { %4906 = vtanh.f32 %v2618_v19  ;;  %v1745_v4 = vpop.f32.mrf.mxu1 }
 0x3a6   :  { %v4903_v5 = vpop.eup %4902  ;;  %v1746_v7 = vadd.f32 %v6187_v27, %v1745_v4  ;;  %v874_v8 = vpop.f32.mrf.mxu0 }
 0x3a7   :  { %v4905_v6 = vpop.eup %4904  ;;  %v875_v26 = vadd.f32 %v6506_v37, %v874_v8  ;;  %4222 = vmatmul.msk.f32.gmra.mxu2 %vm2014_vm2, %v4903_v5  ;;  %v3507_v10 = vpop.f32.mrf.mxu3 }
 0x3a8   :  { %4908 = vtanh.f32 %v1746_v7  ;;  %v3508_v11 = vadd.f32 %v6213_v47, %v3507_v10  ;;  %4109 = vmatmul.msk.f32.gmra.mxu1 %vm1091_vm1, %v4905_v6  ;;  %v153_v6 = vld [vmem:[%s7309_s0 + $0x3c8] sm:$0xff] }
 0x3a9   :  { %4910 = vtanh.f32 %v875_v26  ;;  %3997 = vmatmul.msk.f32.gmra.mxu0 %vm166_vm0, %v148_v9 }
 0x3aa   :  { %3795 = vst.msk [vmem:[%s7316_s9 + $0x180] sm:$0xff] %vm166_vm0, %v3508_v11  ;;  %v2620_v13 = vpop.f32.mrf.mxu2 }
 0x3ab   :  { %v4907_v14 = vpop.eup %4906  ;;  %v2621_v15 = vadd.f32 %v6390_v1, %v2620_v13 }
 0x3ac   :  { %4339 = vmatmul.msk.f32.gmra.mxu3 %vm1091_vm1, %v4907_v14 }
 0x3ad   :  { %4912 = vtanh.f32 %v2621_v15  ;;  %v1748_v17 = vpop.f32.mrf.mxu1 }
 0x3ae   :  { %v4909_v18 = vpop.eup %4908  ;;  %v1749_v20 = vadd.f32 %v6187_v27, %v1748_v17  ;;  %v877_v21 = vpop.f32.mrf.mxu0 }
 0x3af   :  { %v4911_v22 = vpop.eup %4910  ;;  %v878_v23 = vadd.f32 %v6506_v37, %v877_v21  ;;  %4223 = vmatmul.msk.f32.gmra.mxu2 %vm2014_vm2, %v4909_v18  ;;  %v3510_v24 = vpop.f32.mrf.mxu3 }
 0x3b0   :  { %4914 = vtanh.f32 %v1749_v20  ;;  %v3511_v25 = vadd.f32 %v6213_v47, %v3510_v24  ;;  %4110 = vmatmul.msk.f32.gmra.mxu1 %vm1091_vm1, %v4911_v22  ;;  %v154_v22 = vld [vmem:[%s7309_s0 + $0x3d0] sm:$0xff] }
 0x3b1   :  { %4916 = vtanh.f32 %v878_v23  ;;  %3998 = vmatmul.msk.f32.gmra.mxu0 %vm166_vm0, %v149_v12 }
 0x3b2   :  { %3796 = vst.msk [vmem:[%s7316_s9 + $0x188] sm:$0xff] %vm166_vm0, %v3511_v25  ;;  %v2623_v28 = vpop.f32.mrf.mxu2 }
 0x3b3   :  { %v4913_v16 = vpop.eup %4912  ;;  %v2624_v29 = vadd.f32 %v6390_v1, %v2623_v28 }
 0x3b4   :  { %4340 = vmatmul.msk.f32.gmra.mxu3 %vm1091_vm1, %v4913_v16 }
 0x3b5   :  { %4918 = vtanh.f32 %v2624_v29  ;;  %v1751_v30 = vpop.f32.mrf.mxu1 }
 0x3b6   :  { %v4915_v31 = vpop.eup %4914  ;;  %v1752_v32 = vadd.f32 %v6187_v27, %v1751_v30  ;;  %v880_v35 = vpop.f32.mrf.mxu0 }
 0x3b7   :  { %v4917_v38 = vpop.eup %4916  ;;  %v881_v39 = vadd.f32 %v6506_v37, %v880_v35  ;;  %4224 = vmatmul.msk.f32.gmra.mxu2 %vm2014_vm2, %v4915_v31  ;;  %v3513_v40 = vpop.f32.mrf.mxu3 }
 0x3b8   :  { %4920 = vtanh.f32 %v1752_v32  ;;  %v3514_v41 = vadd.f32 %v6213_v47, %v3513_v40  ;;  %4111 = vmatmul.msk.f32.gmra.mxu1 %vm1091_vm1, %v4917_v38  ;;  %v155_v38 = vld [vmem:[%s7309_s0 + $0x3d8] sm:$0xff] }
 0x3b9   :  { %4922 = vtanh.f32 %v881_v39  ;;  %3999 = vmatmul.msk.f32.gmra.mxu0 %vm166_vm0, %v150_v36 }
 0x3ba   :  { %3797 = vst.msk [vmem:[%s7316_s9 + $0x190] sm:$0xff] %vm166_vm0, %v3514_v41  ;;  %v2626_v27 = vpop.f32.mrf.mxu2 }
 0x3bb   :  { %v4919_v33 = vpop.eup %4918  ;;  %v2627_v43 = vadd.f32 %v6390_v1, %v2626_v27 }
 0x3bc   :  { %4341 = vmatmul.msk.f32.gmra.mxu3 %vm1091_vm1, %v4919_v33 }
 0x3bd   :  { %4924 = vtanh.f32 %v2627_v43  ;;  %v1754_v44 = vpop.f32.mrf.mxu1 }
 0x3be   :  { %v4921_v45 = vpop.eup %4920  ;;  %v1755_v46 = vadd.f32 %v6597_v42, %v1754_v44  ;;  %v883_v49 = vpop.f32.mrf.mxu0 }
 0x3bf   :  { %v4923_v51 = vpop.eup %4922  ;;  %v884_v52 = vadd.f32 %v6506_v37, %v883_v49  ;;  %4225 = vmatmul.msk.f32.gmra.mxu2 %vm2014_vm2, %v4921_v45  ;;  %v3516_v53 = vpop.f32.mrf.mxu3 }
 0x3c0   :  { %4926 = vtanh.f32 %v1755_v46  ;;  %v3517_v54 = vadd.f32 %v6213_v47, %v3516_v53  ;;  %4112 = vmatmul.msk.f32.gmra.mxu1 %vm1091_vm1, %v4923_v51  ;;  %v156_v51 = vld [vmem:[%s7309_s0 + $0x3e0] sm:$0xff] }
 0x3c1   :  { %4928 = vtanh.f32 %v884_v52  ;;  %4000 = vmatmul.msk.f32.gmra.mxu0 %vm166_vm0, %v151_v50 }
 0x3c2   :  { %3798 = vst.msk [vmem:[%s7316_s9 + $0x198] sm:$0xff] %vm166_vm0, %v3517_v54  ;;  %v2629_v55 = vpop.f32.mrf.mxu2 }
 0x3c3   :  { %v4925_v56 = vpop.eup %4924  ;;  %v2630_v57 = vadd.f32 %v6390_v1, %v2629_v55 }
 0x3c4   :  { %4342 = vmatmul.msk.f32.gmra.mxu3 %vm1091_vm1, %v4925_v56 }
 0x3c5   :  { %4930 = vtanh.f32 %v2630_v57  ;;  %v1757_v58 = vpop.f32.mrf.mxu1 }
 0x3c6   :  { %v4927_v59 = vpop.eup %4926  ;;  %v1758_v47 = vadd.f32 %v6597_v42, %v1757_v58  ;;  %v886_v60 = vpop.f32.mrf.mxu0 }
 0x3c7   :  { %v4929_v62 = vpop.eup %4928  ;;  %v887_v48 = vadd.f32 %v6506_v37, %v886_v60  ;;  %4226 = vmatmul.msk.f32.gmra.mxu2 %vm2014_vm2, %v4927_v59  ;;  %v3519_v63 = vpop.f32.mrf.mxu3 }
 0x3c8   :  { %4932 = vtanh.f32 %v1758_v47  ;;  %v3520_v2 = vadd.f32 %v6623_v0, %v3519_v63  ;;  %4113 = vmatmul.msk.f32.gmra.mxu1 %vm1091_vm1, %v4929_v62  ;;  %v157_v62 = vld [vmem:[%s7309_s0 + $0x3e8] sm:$0xff] }
 0x3c9   :  { %4934 = vtanh.f32 %v887_v48  ;;  %4001 = vmatmul.msk.f32.gmra.mxu0 %vm166_vm0, %v152_v61 }
 0x3ca   :  { %3799 = vst.msk [vmem:[%s7316_s9 + $0x1a0] sm:$0xff] %vm166_vm0, %v3520_v2  ;;  %v2632_v3 = vpop.f32.mrf.mxu2 }
 0x3cb   :  { %v4931_v19 = vpop.eup %4930  ;;  %v2633_v4 = vadd.f32 %v6390_v1, %v2632_v3 }
 0x3cc   :  { %4343 = vmatmul.msk.f32.gmra.mxu3 %vm1091_vm1, %v4931_v19 }
 0x3cd   :  { %4936 = vtanh.f32 %v2633_v4  ;;  %v1760_v5 = vpop.f32.mrf.mxu1 }
 0x3ce   :  { %v4933_v7 = vpop.eup %4932  ;;  %v1761_v8 = vadd.f32 %v6597_v42, %v1760_v5  ;;  %v889_v9 = vpop.f32.mrf.mxu0 }
 0x3cf   :  { %v4935_v26 = vpop.eup %4934  ;;  %v890_v10 = vadd.f32 %v6506_v37, %v889_v9  ;;  %4227 = vmatmul.msk.f32.gmra.mxu2 %vm2014_vm2, %v4933_v7  ;;  %v3522_v11 = vpop.f32.mrf.mxu3 }
 0x3d0   :  { %4938 = vtanh.f32 %v1761_v8  ;;  %v3523_v13 = vadd.f32 %v6623_v0, %v3522_v11  ;;  %4114 = vmatmul.msk.f32.gmra.mxu1 %vm1091_vm1, %v4935_v26  ;;  %v158_v26 = vld [vmem:[%s7309_s0 + $0x3f0] sm:$0xff] }
 0x3d1   :  { %4940 = vtanh.f32 %v890_v10  ;;  %4002 = vmatmul.msk.f32.gmra.mxu0 %vm166_vm0, %v153_v6 }
 0x3d2   :  { %3800 = vst.msk [vmem:[%s7316_s9 + $0x1a8] sm:$0xff] %vm166_vm0, %v3523_v13  ;;  %v2635_v14 = vpop.f32.mrf.mxu2 }
 0x3d3   :  { %v4937_v15 = vpop.eup %4936  ;;  %v2636_v17 = vadd.f32 %v6390_v1, %v2635_v14 }
 0x3d4   :  { %4344 = vmatmul.msk.f32.gmra.mxu3 %vm1091_vm1, %v4937_v15 }
 0x3d5   :  { %4942 = vtanh.f32 %v2636_v17  ;;  %v1763_v18 = vpop.f32.mrf.mxu1 }
 0x3d6   :  { %v4939_v20 = vpop.eup %4938  ;;  %v1764_v21 = vadd.f32 %v6597_v42, %v1763_v18  ;;  %v892_v12 = vpop.f32.mrf.mxu0 }
 0x3d7   :  { %v4941_v23 = vpop.eup %4940  ;;  %v893_v24 = vadd.f32 %v6506_v37, %v892_v12  ;;  %4228 = vmatmul.msk.f32.gmra.mxu2 %vm2014_vm2, %v4939_v20  ;;  %v3525_v25 = vpop.f32.mrf.mxu3 }
 0x3d8   :  { %4944 = vtanh.f32 %v1764_v21  ;;  %v3526_v28 = vadd.f32 %v6623_v0, %v3525_v25  ;;  %4115 = vmatmul.msk.f32.gmra.mxu1 %vm1091_vm1, %v4941_v23  ;;  %v159_v23 = vld [vmem:[%s7309_s0 + $0x3f8] sm:$0xff] }
 0x3d9   :  { %4946 = vtanh.f32 %v893_v24  ;;  %4003 = vmatmul.msk.f32.gmra.mxu0 %vm166_vm0, %v154_v22 }
 0x3da   :  { %3801 = vst.msk [vmem:[%s7316_s9 + $0x1b0] sm:$0xff] %vm166_vm0, %v3526_v28  ;;  %v2638_v16 = vpop.f32.mrf.mxu2 }
 0x3db   :  { %v4943_v29 = vpop.eup %4942  ;;  %v2639_v30 = vadd.f32 %v6390_v1, %v2638_v16 }
 0x3dc   :  { %4345 = vmatmul.msk.f32.gmra.mxu3 %vm1091_vm1, %v4943_v29 }
 0x3dd   :  { %4948 = vtanh.f32 %v2639_v30  ;;  %v1766_v31 = vpop.f32.mrf.mxu1 }
 0x3de   :  { %v4945_v32 = vpop.eup %4944  ;;  %v1767_v35 = vadd.f32 %v6597_v42, %v1766_v31  ;;  %v895_v36 = vpop.f32.mrf.mxu0 }
 0x3df   :  { %v4947_v39 = vpop.eup %4946  ;;  %v896_v40 = vadd.f32 %v6506_v37, %v895_v36  ;;  %4229 = vmatmul.msk.f32.gmra.mxu2 %vm2014_vm2, %v4945_v32  ;;  %v3528_v41 = vpop.f32.mrf.mxu3 }
 0x3e0   :  { %4950 = vtanh.f32 %v1767_v35  ;;  %v3529_v27 = vadd.f32 %v6623_v0, %v3528_v41  ;;  %4116 = vmatmul.msk.f32.gmra.mxu1 %vm1091_vm1, %v4947_v39 }
 0x3e1   :  { %4952 = vtanh.f32 %v896_v40  ;;  %4004 = vmatmul.msk.f32.gmra.mxu0 %vm166_vm0, %v155_v38 }
 0x3e2   :  { %3802 = vst.msk [vmem:[%s7316_s9 + $0x1b8] sm:$0xff] %vm166_vm0, %v3529_v27  ;;  %v2641_v33 = vpop.f32.mrf.mxu2 }
 0x3e3   :  { %v4949_v43 = vpop.eup %4948  ;;  %v2642_v44 = vadd.f32 %v6390_v1, %v2641_v33 }
 0x3e4   :  { %4346 = vmatmul.msk.f32.gmra.mxu3 %vm1091_vm1, %v4949_v43 }
 0x3e5   :  { %4954 = vtanh.f32 %v2642_v44  ;;  %v1769_v45 = vpop.f32.mrf.mxu1 }
 0x3e6   :  { %v4951_v46 = vpop.eup %4950  ;;  %v1770_v49 = vadd.f32 %v6597_v42, %v1769_v45  ;;  %v898_v50 = vpop.f32.mrf.mxu0 }
 0x3e7   :  { %v4953_v52 = vpop.eup %4952  ;;  %v899_v53 = vadd.f32 %v6506_v37, %v898_v50  ;;  %4230 = vmatmul.msk.f32.gmra.mxu2 %vm2014_vm2, %v4951_v46  ;;  %v3531_v54 = vpop.f32.mrf.mxu3 }
 0x3e8   :  { %4956 = vtanh.f32 %v1770_v49  ;;  %v3532_v55 = vadd.f32 %v6623_v0, %v3531_v54  ;;  %4117 = vmatmul.msk.f32.gmra.mxu1 %vm1091_vm1, %v4953_v52 }
 0x3e9   :  { %4958 = vtanh.f32 %v899_v53  ;;  %4005 = vmatmul.msk.f32.gmra.mxu0 %vm166_vm0, %v156_v51 }
 0x3ea   :  { %3803 = vst.msk [vmem:[%s7316_s9 + $0x1c0] sm:$0xff] %vm166_vm0, %v3532_v55  ;;  %v2644_v56 = vpop.f32.mrf.mxu2 }
 0x3eb   :  { %v4955_v57 = vpop.eup %4954  ;;  %v2645_v58 = vadd.f32 %v6390_v1, %v2644_v56 }
 0x3ec   :  { %4347 = vmatmul.msk.f32.gmra.mxu3 %vm1091_vm1, %v4955_v57 }
 0x3ed   :  { %4960 = vtanh.f32 %v2645_v58  ;;  %v1772_v59 = vpop.f32.mrf.mxu1 }
 0x3ee   :  { %v4957_v47 = vpop.eup %4956  ;;  %v1773_v60 = vadd.f32 %v6597_v42, %v1772_v59  ;;  %v901_v61 = vpop.f32.mrf.mxu0 }
 0x3ef   :  { %v4959_v48 = vpop.eup %4958  ;;  %v902_v63 = vadd.f32 %v6506_v37, %v901_v61  ;;  %4231 = vmatmul.msk.f32.gmra.mxu2 %vm2014_vm2, %v4957_v47  ;;  %v3534_v2 = vpop.f32.mrf.mxu3 }
 0x3f0   :  { %4962 = vtanh.f32 %v1773_v60  ;;  %v3535_v3 = vadd.f32 %v6623_v0, %v3534_v2  ;;  %4118 = vmatmul.msk.f32.gmra.mxu1 %vm1091_vm1, %v4959_v48 }
 0x3f1   :  { %4964 = vtanh.f32 %v902_v63  ;;  %4006 = vmatmul.msk.f32.gmra.mxu0 %vm166_vm0, %v157_v62 }
 0x3f2   :  { %3804 = vst.msk [vmem:[%s7316_s9 + $0x1c8] sm:$0xff] %vm166_vm0, %v3535_v3  ;;  %v2647_v19 = vpop.f32.mrf.mxu2 }
 0x3f3   :  { %v4961_v4 = vpop.eup %4960  ;;  %v2648_v5 = vadd.f32 %v6390_v1, %v2647_v19 }
 0x3f4   :  { %4348 = vmatmul.msk.f32.gmra.mxu3 %vm1091_vm1, %v4961_v4 }
 0x3f5   :  { %4966 = vtanh.f32 %v2648_v5  ;;  %v1775_v7 = vpop.f32.mrf.mxu1 }
 0x3f6   :  { %v4963_v8 = vpop.eup %4962  ;;  %v1776_v9 = vadd.f32 %v6597_v42, %v1775_v7  ;;  %v904_v6 = vpop.f32.mrf.mxu0 }
 0x3f7   :  { %v4965_v10 = vpop.eup %4964  ;;  %v905_v11 = vadd.f32 %v6506_v37, %v904_v6  ;;  %4232 = vmatmul.msk.f32.gmra.mxu2 %vm2014_vm2, %v4963_v8  ;;  %v3537_v13 = vpop.f32.mrf.mxu3 }
 0x3f8   :  { %4968 = vtanh.f32 %v1776_v9  ;;  %v3538_v14 = vadd.f32 %v6623_v0, %v3537_v13  ;;  %4119 = vmatmul.msk.f32.gmra.mxu1 %vm1091_vm1, %v4965_v10  ;;  %v6784_v13 = vld [vmem:[%s7313_s6] ss:$0 sm:$0xff] }
 0x3f9   :  { %4970 = vtanh.f32 %v905_v11  ;;  %4007 = vmatmul.msk.f32.gmra.mxu0 %vm166_vm0, %v158_v26 }
 0x3fa   :  { %3805 = vst.msk [vmem:[%s7316_s9 + $0x1d0] sm:$0xff] %vm166_vm0, %v3538_v14  ;;  %v2650_v15 = vpop.f32.mrf.mxu2 }
 0x3fb   :  { %v4967_v17 = vpop.eup %4966  ;;  %v2651_v18 = vadd.f32 %v6390_v1, %v2650_v15 }
 0x3fc   :  { %4349 = vmatmul.msk.f32.gmra.mxu3 %vm1091_vm1, %v4967_v17 }
 0x3fd   :  { %4972 = vtanh.f32 %v2651_v18  ;;  %v1778_v20 = vpop.f32.mrf.mxu1 }
 0x3fe   :  { %v4969_v21 = vpop.eup %4968  ;;  %v1779_v12 = vadd.f32 %v6597_v42, %v1778_v20  ;;  %v907_v22 = vpop.f32.mrf.mxu0 }
 0x3ff   :  { %v4971_v24 = vpop.eup %4970  ;;  %v908_v25 = vadd.f32 %v6506_v37, %v907_v22  ;;  %4233 = vmatmul.msk.f32.gmra.mxu2 %vm2014_vm2, %v4969_v21  ;;  %v3540_v28 = vpop.f32.mrf.mxu3 }
 0x400   :  { %4974 = vtanh.f32 %v1779_v12  ;;  %v3541_v16 = vadd.f32 %v6623_v0, %v3540_v28  ;;  %4120 = vmatmul.msk.f32.gmra.mxu1 %vm1091_vm1, %v4971_v24 }
 0x401   :  { %4976 = vtanh.f32 %v908_v25  ;;  %4008 = vmatmul.msk.f32.gmra.mxu0 %vm166_vm0, %v159_v23 }
 0x402   :  { %3806 = vst.msk [vmem:[%s7316_s9 + $0x1d8] sm:$0xff] %vm166_vm0, %v3541_v16  ;;  %v2653_v29 = vpop.f32.mrf.mxu2 }
 0x403   :  { %v4973_v30 = vpop.eup %4972  ;;  %v2654_v31 = vadd.f32 %v6390_v1, %v2653_v29 }
 0x404   :  { %4350 = vmatmul.msk.f32.gmra.mxu3 %vm1091_vm1, %v4973_v30 }
 0x405   :  { %4978 = vtanh.f32 %v2654_v31  ;;  %v1781_v32 = vpop.f32.mrf.mxu1 }
 0x406   :  { %v4975_v35 = vpop.eup %4974  ;;  %v1782_v36 = vadd.f32 %v6597_v42, %v1781_v32  ;;  %v910_v38 = vpop.f32.mrf.mxu0 }
 0x407   :  { %v4977_v39 = vpop.eup %4976  ;;  %v911_v40 = vadd.f32 %v6506_v37, %v910_v38  ;;  %4234 = vmatmul.msk.f32.gmra.mxu2 %vm2014_vm2, %v4975_v35  ;;  %v3543_v41 = vpop.f32.mrf.mxu3 }
 0x408   :  { %4980 = vtanh.f32 %v1782_v36  ;;  %v3544_v27 = vadd.f32 %v6623_v0, %v3543_v41  ;;  %4121 = vmatmul.msk.f32.gmra.mxu1 %vm1091_vm1, %v4977_v39 }
 0x409   :  { %4982 = vtanh.f32 %v911_v40 }
 0x40a   :  { %3807 = vst.msk [vmem:[%s7316_s9 + $0x1e0] sm:$0xff] %vm166_vm0, %v3544_v27  ;;  %v2656_v33 = vpop.f32.mrf.mxu2 }
 0x40b   :  { %v4979_v43 = vpop.eup %4978  ;;  %v2657_v44 = vadd.f32 %v6390_v1, %v2656_v33 }
 0x40c   :  { %4351 = vmatmul.msk.f32.gmra.mxu3 %vm1091_vm1, %v4979_v43 }
 0x40d   :  { %4984 = vtanh.f32 %v2657_v44  ;;  %v1784_v45 = vpop.f32.mrf.mxu1 }
 0x40e   :  { %v4981_v46 = vpop.eup %4980  ;;  %v1785_v49 = vadd.f32 %v6597_v42, %v1784_v45  ;;  %v913_v50 = vpop.f32.mrf.mxu0 }
 0x40f   :  { %v4983_v51 = vpop.eup %4982  ;;  %v914_v52 = vadd.f32 %v6506_v37, %v913_v50  ;;  %4235 = vmatmul.msk.f32.gmra.mxu2 %vm2014_vm2, %v4981_v46  ;;  %v3546_v53 = vpop.f32.mrf.mxu3 }
 0x410   :  { %4986 = vtanh.f32 %v1785_v49  ;;  %v3547_v54 = vadd.f32 %v6623_v0, %v3546_v53  ;;  %4122 = vmatmul.msk.f32.gmra.mxu1 %vm1091_vm1, %v4983_v51 }
 0x411   :  { %4988 = vtanh.f32 %v914_v52 }
 0x412   :  { %3808 = vst.msk [vmem:[%s7316_s9 + $0x1e8] sm:$0xff] %vm166_vm0, %v3547_v54  ;;  %v2659_v55 = vpop.f32.mrf.mxu2 }
 0x413   :  { %v4985_v56 = vpop.eup %4984  ;;  %v2660_v57 = vadd.f32 %v6390_v1, %v2659_v55 }
 0x414   :  { %4352 = vmatmul.msk.f32.gmra.mxu3 %vm1091_vm1, %v4985_v56 }
 0x415   :  { %4990 = vtanh.f32 %v2660_v57  ;;  %v1787_v58 = vpop.f32.mrf.mxu1 }
 0x416   :  { %v4987_v59 = vpop.eup %4986  ;;  %v1788_v47 = vadd.f32 %v6597_v42, %v1787_v58  ;;  %v916_v60 = vpop.f32.mrf.mxu0 }
 0x417   :  { %v4989_v61 = vpop.eup %4988  ;;  %v917_v62 = vadd.f32 %v6506_v37, %v916_v60  ;;  %4236 = vmatmul.msk.f32.gmra.mxu2 %vm2014_vm2, %v4987_v59  ;;  %v3549_v48 = vpop.f32.mrf.mxu3 }
 0x418   :  { %4992 = vtanh.f32 %v1788_v47  ;;  %v3550_v63 = vadd.f32 %v6623_v0, %v3549_v48  ;;  %4123 = vmatmul.msk.f32.gmra.mxu1 %vm1091_vm1, %v4989_v61 }
 0x419   :  { %4994 = vtanh.f32 %v917_v62 }
 0x41a   :  { %3809 = vst.msk [vmem:[%s7316_s9 + $0x1f0] sm:$0xff] %vm166_vm0, %v3550_v63  ;;  %v2662_v2 = vpop.f32.mrf.mxu2 }
 0x41b   :  { %v4991_v3 = vpop.eup %4990  ;;  %v2663_v19 = vadd.f32 %v6390_v1, %v2662_v2 }
 0x41c   :  { %4353 = vmatmul.msk.f32.gmra.mxu3 %vm1091_vm1, %v4991_v3 }
 0x41d   :  { %4996 = vtanh.f32 %v2663_v19  ;;  %v1790_v4 = vpop.f32.mrf.mxu1 }
 0x41e   :  { %v4993_v5 = vpop.eup %4992  ;;  %v1791_v7 = vadd.f32 %v6597_v42, %v1790_v4  ;;  %v919_v8 = vpop.f32.mrf.mxu0 }
 0x41f   :  { %v4995_v9 = vpop.eup %4994  ;;  %v920_v6 = vadd.f32 %v6506_v37, %v919_v8  ;;  %4237 = vmatmul.msk.f32.gmra.mxu2 %vm2014_vm2, %v4993_v5  ;;  %v3552_v26 = vpop.f32.mrf.mxu3 }
 0x420   :  { %4998 = vtanh.f32 %v1791_v7  ;;  %v3553_v10 = vadd.f32 %v6623_v0, %v3552_v26  ;;  %4124 = vmatmul.msk.f32.gmra.mxu1 %vm1091_vm1, %v4995_v9 }
 0x421   :  { %5000 = vtanh.f32 %v920_v6 }
 0x422   :  { %3810 = vst.msk [vmem:[%s7316_s9 + $0x1f8] sm:$0xff] %vm166_vm0, %v3553_v10  ;;  %v2665_v1 = vpop.f32.mrf.mxu2 }
 0x423   :  { %v4997_v11 = vpop.eup %4996  ;;  %v2666_v14 = vadd.f32 %v6784_v13, %v2665_v1 }
 0x424   :  { %4354 = vmatmul.msk.f32.gmra.mxu3 %vm1091_vm1, %v4997_v11 }
 0x425   :  { %5002 = vtanh.f32 %v2666_v14  ;;  %v1793_v15 = vpop.f32.mrf.mxu1 }
 0x426   :  { %v4999_v17 = vpop.eup %4998  ;;  %v1794_v18 = vadd.f32 %v6597_v42, %v1793_v15  ;;  %v922_v20 = vpop.f32.mrf.mxu0 }
 0x427   :  { %v5001_v21 = vpop.eup %5000  ;;  %v923_v12 = vadd.f32 %v6506_v37, %v922_v20  ;;  %4238 = vmatmul.msk.f32.gmra.mxu2 %vm2014_vm2, %v4999_v17  ;;  %v3555_v22 = vpop.f32.mrf.mxu3 }
 0x428   :  { %5004 = vtanh.f32 %v1794_v18  ;;  %v3556_v23 = vadd.f32 %v6623_v0, %v3555_v22  ;;  %4125 = vmatmul.msk.f32.gmra.mxu1 %vm1091_vm1, %v5001_v21 }
 0x429   :  { %5006 = vtanh.f32 %v923_v12 }
 0x42a   :  { %3811 = vst.msk [vmem:[%s7316_s9 + $0x200] sm:$0xff] %vm166_vm0, %v3556_v23  ;;  %v2668_v24 = vpop.f32.mrf.mxu2 }
 0x42b   :  { %v5003_v25 = vpop.eup %5002  ;;  %v2669_v28 = vadd.f32 %v6784_v13, %v2668_v24 }
 0x42c   :  { %4355 = vmatmul.msk.f32.gmra.mxu3 %vm1091_vm1, %v5003_v25 }
 0x42d   :  { %5008 = vtanh.f32 %v2669_v28  ;;  %v1796_v16 = vpop.f32.mrf.mxu1 }
 0x42e   :  { %v5005_v29 = vpop.eup %5004  ;;  %v1797_v30 = vadd.f32 %v6597_v42, %v1796_v16  ;;  %v925_v31 = vpop.f32.mrf.mxu0 }
 0x42f   :  { %v5007_v32 = vpop.eup %5006  ;;  %v926_v35 = vadd.f32 %v6506_v37, %v925_v31  ;;  %4239 = vmatmul.msk.f32.gmra.mxu2 %vm2014_vm2, %v5005_v29  ;;  %v3558_v36 = vpop.f32.mrf.mxu3 }
 0x430   :  { %5010 = vtanh.f32 %v1797_v30  ;;  %v3559_v38 = vadd.f32 %v6623_v0, %v3558_v36  ;;  %4126 = vmatmul.msk.f32.gmra.mxu1 %vm1091_vm1, %v5007_v32 }
 0x431   :  { %5012 = vtanh.f32 %v926_v35 }
 0x432   :  { %3812 = vst.msk [vmem:[%s7316_s9 + $0x208] sm:$0xff] %vm166_vm0, %v3559_v38  ;;  %v2671_v39 = vpop.f32.mrf.mxu2 }
 0x433   :  { %v5009_v40 = vpop.eup %5008  ;;  %v2672_v41 = vadd.f32 %v6784_v13, %v2671_v39 }
 0x434   :  { %4356 = vmatmul.msk.f32.gmra.mxu3 %vm1091_vm1, %v5009_v40 }
 0x435   :  { %5014 = vtanh.f32 %v2672_v41  ;;  %v1799_v27 = vpop.f32.mrf.mxu1 }
 0x436   :  { %v5011_v33 = vpop.eup %5010  ;;  %v1800_v43 = vadd.f32 %v6597_v42, %v1799_v27  ;;  %v928_v44 = vpop.f32.mrf.mxu0 }
 0x437   :  { %v5013_v45 = vpop.eup %5012  ;;  %v929_v46 = vadd.f32 %v6506_v37, %v928_v44  ;;  %4240 = vmatmul.msk.f32.gmra.mxu2 %vm2014_vm2, %v5011_v33  ;;  %v3561_v49 = vpop.f32.mrf.mxu3 }
 0x438   :  { %5016 = vtanh.f32 %v1800_v43  ;;  %v3562_v50 = vadd.f32 %v6623_v0, %v3561_v49  ;;  %4127 = vmatmul.msk.f32.gmra.mxu1 %vm1091_vm1, %v5013_v45 }
 0x439   :  { %5018 = vtanh.f32 %v929_v46 }
 0x43a   :  { %3813 = vst.msk [vmem:[%s7316_s9 + $0x210] sm:$0xff] %vm166_vm0, %v3562_v50  ;;  %v2674_v51 = vpop.f32.mrf.mxu2 }
 0x43b   :  { %v5015_v52 = vpop.eup %5014  ;;  %v2675_v53 = vadd.f32 %v6784_v13, %v2674_v51 }
 0x43c   :  { %4357 = vmatmul.msk.f32.gmra.mxu3 %vm1091_vm1, %v5015_v52 }
 0x43d   :  { %5020 = vtanh.f32 %v2675_v53  ;;  %v1802_v54 = vpop.f32.mrf.mxu1 }
 0x43e   :  { %v5017_v55 = vpop.eup %5016  ;;  %v1803_v56 = vadd.f32 %v6597_v42, %v1802_v54  ;;  %v931_v57 = vpop.f32.mrf.mxu0  ;;  %v5191_v54 = vld [vmem:[%s7308_s2] ss:$0 sm:$0xff] }
 0x43f   :  { %v5019_v58 = vpop.eup %5018  ;;  %v932_v59 = vadd.f32 %v6506_v37, %v931_v57  ;;  %4241 = vmatmul.msk.f32.gmra.mxu2 %vm2014_vm2, %v5017_v55  ;;  %v3564_v47 = vpop.f32.mrf.mxu3 }
 0x440   :  { %5022 = vtanh.f32 %v1803_v56  ;;  %v3565_v60 = vadd.f32 %v6623_v0, %v3564_v47  ;;  %4128 = vmatmul.msk.f32.gmra.mxu1 %vm1091_vm1, %v5019_v58 }
 0x441   :  { %5024 = vtanh.f32 %v932_v59 }
 0x442   :  { %3814 = vst.msk [vmem:[%s7316_s9 + $0x218] sm:$0xff] %vm166_vm0, %v3565_v60  ;;  %v2677_v61 = vpop.f32.mrf.mxu2 }
 0x443   :  { %v5021_v62 = vpop.eup %5020  ;;  %v2678_v48 = vadd.f32 %v6784_v13, %v2677_v61 }
 0x444   :  { %4358 = vmatmul.msk.f32.gmra.mxu3 %vm1091_vm1, %v5021_v62 }
 0x445   :  { %5026 = vtanh.f32 %v2678_v48  ;;  %v1805_v63 = vpop.f32.mrf.mxu1 }
 0x446   :  { %v5023_v2 = vpop.eup %5022  ;;  %v1806_v3 = vadd.f32 %v6597_v42, %v1805_v63  ;;  %v934_v19 = vpop.f32.mrf.mxu0 }
 0x447   :  { %v5025_v4 = vpop.eup %5024  ;;  %v935_v5 = vadd.f32 %v6506_v37, %v934_v19  ;;  %4242 = vmatmul.msk.f32.gmra.mxu2 %vm2014_vm2, %v5023_v2  ;;  %v3567_v7 = vpop.f32.mrf.mxu3 }
 0x448   :  { %5028 = vtanh.f32 %v1806_v3  ;;  %v3568_v8 = vadd.f32 %v6623_v0, %v3567_v7  ;;  %4129 = vmatmul.msk.f32.gmra.mxu1 %vm1091_vm1, %v5025_v4 }
 0x449   :  { %5030 = vtanh.f32 %v935_v5 }
 0x44a   :  { %3815 = vst.msk [vmem:[%s7316_s9 + $0x220] sm:$0xff] %vm166_vm0, %v3568_v8  ;;  %v2680_v9 = vpop.f32.mrf.mxu2 }
 0x44b   :  { %v5027_v6 = vpop.eup %5026  ;;  %v2681_v26 = vadd.f32 %v6784_v13, %v2680_v9 }
 0x44c   :  { %4359 = vmatmul.msk.f32.gmra.mxu3 %vm1091_vm1, %v5027_v6 }
 0x44d   :  { %5032 = vtanh.f32 %v2681_v26  ;;  %v1808_v10 = vpop.f32.mrf.mxu1 }
 0x44e   :  { %v5029_v1 = vpop.eup %5028  ;;  %v1809_v11 = vadd.f32 %v6597_v42, %v1808_v10  ;;  %v937_v14 = vpop.f32.mrf.mxu0 }
 0x44f   :  { %v5031_v15 = vpop.eup %5030  ;;  %v938_v17 = vadd.f32 %v6506_v37, %v937_v14  ;;  %4243 = vmatmul.msk.f32.gmra.mxu2 %vm2014_vm2, %v5029_v1  ;;  %v3570_v18 = vpop.f32.mrf.mxu3 }
 0x450   :  { %5034 = vtanh.f32 %v1809_v11  ;;  %v3571_v20 = vadd.f32 %v6623_v0, %v3570_v18  ;;  %4130 = vmatmul.msk.f32.gmra.mxu1 %vm1091_vm1, %v5031_v15 }
 0x451   :  { %5036 = vtanh.f32 %v938_v17 }
 0x452   :  { %3816 = vst.msk [vmem:[%s7316_s9 + $0x228] sm:$0xff] %vm166_vm0, %v3571_v20  ;;  %v2683_v21 = vpop.f32.mrf.mxu2 }
 0x453   :  { %v5033_v12 = vpop.eup %5032  ;;  %v2684_v22 = vadd.f32 %v6784_v13, %v2683_v21 }
 0x454   :  { %4360 = vmatmul.msk.f32.gmra.mxu3 %vm1091_vm1, %v5033_v12 }
 0x455   :  { %5038 = vtanh.f32 %v2684_v22  ;;  %v1811_v23 = vpop.f32.mrf.mxu1 }
 0x456   :  { %v5035_v24 = vpop.eup %5034  ;;  %v1812_v25 = vadd.f32 %v6597_v42, %v1811_v23  ;;  %v940_v28 = vpop.f32.mrf.mxu0 }
 0x457   :  { %v5037_v16 = vpop.eup %5036  ;;  %v941_v29 = vadd.f32 %v6506_v37, %v940_v28  ;;  %4244 = vmatmul.msk.f32.gmra.mxu2 %vm2014_vm2, %v5035_v24  ;;  %v3573_v30 = vpop.f32.mrf.mxu3 }
 0x458   :  { %5040 = vtanh.f32 %v1812_v25  ;;  %v3574_v31 = vadd.f32 %v6623_v0, %v3573_v30  ;;  %4131 = vmatmul.msk.f32.gmra.mxu1 %vm1091_vm1, %v5037_v16 }
 0x459   :  { %5042 = vtanh.f32 %v941_v29 }
 0x45a   :  { %3817 = vst.msk [vmem:[%s7316_s9 + $0x230] sm:$0xff] %vm166_vm0, %v3574_v31  ;;  %v2686_v32 = vpop.f32.mrf.mxu2  ;;  %v2423_v31 = vadd.f32 %v6784_v13, %v5613_v34 }
 0x45b   :  { %v5039_v35 = vpop.eup %5038  ;;  %v2687_v36 = vadd.f32 %v6784_v13, %v2686_v32 }
 0x45c   :  { %4361 = vmatmul.msk.f32.gmra.mxu3 %vm1091_vm1, %v5039_v35 }
 0x45d   :  { %5044 = vtanh.f32 %v2687_v36  ;;  %v1814_v38 = vpop.f32.mrf.mxu1 }
 0x45e   :  { %v5041_v39 = vpop.eup %5040  ;;  %v1815_v40 = vadd.f32 %v6597_v42, %v1814_v38  ;;  %v943_v41 = vpop.f32.mrf.mxu0 }
 0x45f   :  { %v5043_v27 = vpop.eup %5042  ;;  %v944_v33 = vadd.f32 %v6506_v37, %v943_v41  ;;  %4245 = vmatmul.msk.f32.gmra.mxu2 %vm2014_vm2, %v5041_v39  ;;  %v3576_v43 = vpop.f32.mrf.mxu3 }
 0x460   :  { %5046 = vtanh.f32 %v1815_v40  ;;  %v3577_v44 = vadd.f32 %v6623_v0, %v3576_v43  ;;  %4132 = vmatmul.msk.f32.gmra.mxu1 %vm1091_vm1, %v5043_v27 }
 0x461   :  { %5048 = vtanh.f32 %v944_v33 }
 0x462   :  { %3818 = vst.msk [vmem:[%s7316_s9 + $0x238] sm:$0xff] %vm166_vm0, %v3577_v44  ;;  %v2689_v45 = vpop.f32.mrf.mxu2 }
 0x463   :  { %v5045_v46 = vpop.eup %5044  ;;  %v2690_v49 = vadd.f32 %v6784_v13, %v2689_v45 }
 0x464   :  { %4362 = vmatmul.msk.f32.gmra.mxu3 %vm1091_vm1, %v5045_v46 }
 0x465   :  { %5050 = vtanh.f32 %v2690_v49  ;;  %v1817_v37 = vpop.f32.mrf.mxu1 }
 0x466   :  { %v5047_v50 = vpop.eup %5046  ;;  %v1818_v51 = vadd.f32 %v6597_v42, %v1817_v37  ;;  %v946_v52 = vpop.f32.mrf.mxu0 }
 0x467   :  { %v5049_v53 = vpop.eup %5048  ;;  %v947_v55 = vadd.f32 %v5191_v54, %v946_v52  ;;  %4246 = vmatmul.msk.f32.gmra.mxu2 %vm2014_vm2, %v5047_v50  ;;  %v3579_v56 = vpop.f32.mrf.mxu3 }
 0x468   :  { %5052 = vtanh.f32 %v1818_v51  ;;  %v3580_v57 = vadd.f32 %v6623_v0, %v3579_v56  ;;  %4133 = vmatmul.msk.f32.gmra.mxu1 %vm1091_vm1, %v5049_v53 }
 0x469   :  { %5054 = vtanh.f32 %v947_v55 }
 0x46a   :  { %3819 = vst.msk [vmem:[%s7316_s9 + $0x240] sm:$0xff] %vm166_vm0, %v3580_v57  ;;  %v2692_v58 = vpop.f32.mrf.mxu2 }
 0x46b   :  { %v5051_v59 = vpop.eup %5050  ;;  %v2693_v47 = vadd.f32 %v6784_v13, %v2692_v58 }
 0x46c   :  { %4363 = vmatmul.msk.f32.gmra.mxu3 %vm1091_vm1, %v5051_v59 }
 0x46d   :  { %5056 = vtanh.f32 %v2693_v47  ;;  %v1820_v60 = vpop.f32.mrf.mxu1 }
 0x46e   :  { %v5053_v61 = vpop.eup %5052  ;;  %v1821_v62 = vadd.f32 %v6597_v42, %v1820_v60  ;;  %v949_v48 = vpop.f32.mrf.mxu0  ;;  %v6953_v60 = vld [vmem:[%s7311_s4] ss:$0 sm:$0xff] }
 0x46f   :  { %v5055_v63 = vpop.eup %5054  ;;  %v950_v2 = vadd.f32 %v5191_v54, %v949_v48  ;;  %4247 = vmatmul.msk.f32.gmra.mxu2 %vm2014_vm2, %v5053_v61  ;;  %v3582_v3 = vpop.f32.mrf.mxu3 }
 0x470   :  { %5058 = vtanh.f32 %v1821_v62  ;;  %v3583_v19 = vadd.f32 %v6623_v0, %v3582_v3  ;;  %4134 = vmatmul.msk.f32.gmra.mxu1 %vm1091_vm1, %v5055_v63 }
 0x471   :  { %5060 = vtanh.f32 %v950_v2 }
 0x472   :  { %3820 = vst.msk [vmem:[%s7316_s9 + $0x248] sm:$0xff] %vm166_vm0, %v3583_v19  ;;  %v2695_v4 = vpop.f32.mrf.mxu2 }
 0x473   :  { %v5057_v5 = vpop.eup %5056  ;;  %v2696_v7 = vadd.f32 %v6784_v13, %v2695_v4 }
 0x474   :  { %4364 = vmatmul.msk.f32.gmra.mxu3 %vm1091_vm1, %v5057_v5 }
 0x475   :  { %5062 = vtanh.f32 %v2696_v7  ;;  %v1823_v8 = vpop.f32.mrf.mxu1 }
 0x476   :  { %v5059_v9 = vpop.eup %5058  ;;  %v1824_v6 = vadd.f32 %v6597_v42, %v1823_v8  ;;  %v952_v26 = vpop.f32.mrf.mxu0 }
 0x477   :  { %v5061_v10 = vpop.eup %5060  ;;  %v953_v1 = vadd.f32 %v5191_v54, %v952_v26  ;;  %4248 = vmatmul.msk.f32.gmra.mxu2 %vm2014_vm2, %v5059_v9  ;;  %v3585_v11 = vpop.f32.mrf.mxu3 }
 0x478   :  { %5064 = vtanh.f32 %v1824_v6  ;;  %v3586_v14 = vadd.f32 %v6623_v0, %v3585_v11  ;;  %4135 = vmatmul.msk.f32.gmra.mxu1 %vm1091_vm1, %v5061_v10 }
 0x479   :  { %5066 = vtanh.f32 %v953_v1 }
 0x47a   :  { %3821 = vst.msk [vmem:[%s7316_s9 + $0x250] sm:$0xff] %vm166_vm0, %v3586_v14  ;;  %v2698_v15 = vpop.f32.mrf.mxu2 }
 0x47b   :  { %v5063_v17 = vpop.eup %5062  ;;  %v2699_v18 = vadd.f32 %v6784_v13, %v2698_v15 }
 0x47c   :  { %4365 = vmatmul.msk.f32.gmra.mxu3 %vm1091_vm1, %v5063_v17 }
 0x47d   :  { %5068 = vtanh.f32 %v2699_v18  ;;  %v1826_v20 = vpop.f32.mrf.mxu1 }
 0x47e   :  { %v5065_v21 = vpop.eup %5064  ;;  %v1827_v12 = vadd.f32 %v6597_v42, %v1826_v20  ;;  %v955_v22 = vpop.f32.mrf.mxu0 }
 0x47f   :  { %v5067_v23 = vpop.eup %5066  ;;  %v956_v24 = vadd.f32 %v5191_v54, %v955_v22  ;;  %4249 = vmatmul.msk.f32.gmra.mxu2 %vm2014_vm2, %v5065_v21  ;;  %v3588_v25 = vpop.f32.mrf.mxu3 }
 0x480   :  { %5070 = vtanh.f32 %v1827_v12  ;;  %v3589_v28 = vadd.f32 %v6623_v0, %v3588_v25  ;;  %4136 = vmatmul.msk.f32.gmra.mxu1 %vm1091_vm1, %v5067_v23 }
 0x481   :  { %5072 = vtanh.f32 %v956_v24 }
 0x482   :  { %3822 = vst.msk [vmem:[%s7316_s9 + $0x258] sm:$0xff] %vm166_vm0, %v3589_v28  ;;  %v2701_v16 = vpop.f32.mrf.mxu2 }
 0x483   :  { %v5069_v29 = vpop.eup %5068  ;;  %v2702_v30 = vadd.f32 %v6784_v13, %v2701_v16 }
 0x484   :  { %4366 = vmatmul.msk.f32.gmra.mxu3 %vm1091_vm1, %v5069_v29 }
 0x485   :  { %5074 = vtanh.f32 %v2702_v30  ;;  %v1829_v32 = vpop.f32.mrf.mxu1 }
 0x486   :  { %v5071_v35 = vpop.eup %5070  ;;  %v1830_v36 = vadd.f32 %v6597_v42, %v1829_v32 }
 0x487   :  { %v5073_v38 = vpop.eup %5072  ;;  %4250 = vmatmul.msk.f32.gmra.mxu2 %vm2014_vm2, %v5071_v35  ;;  %v3591_v39 = vpop.f32.mrf.mxu3 }
 0x488   :  { %5076 = vtanh.f32 %v1830_v36  ;;  %v3592_v40 = vadd.f32 %v6623_v0, %v3591_v39  ;;  %4137 = vmatmul.msk.f32.gmra.mxu1 %vm1091_vm1, %v5073_v38 }
 0x489   :  { %5078 = vtanh.f32 %v2423_v31 }
 0x48a   :  { %3823 = vst.msk [vmem:[%s7316_s9 + $0x260] sm:$0xff] %vm166_vm0, %v3592_v40  ;;  %v2704_v34 = vpop.f32.mrf.mxu2 }
 0x48b   :  { %v5075_v41 = vpop.eup %5074  ;;  %v2705_v27 = vadd.f32 %v6784_v13, %v2704_v34 }
 0x48c   :  { %4367 = vmatmul.msk.f32.gmra.mxu3 %vm1091_vm1, %v5075_v41 }
 0x48d   :  { %5080 = vtanh.f32 %v2705_v27  ;;  %v1832_v33 = vpop.f32.mrf.mxu1 }
 0x48e   :  { %v5077_v43 = vpop.eup %5076  ;;  %v1833_v44 = vadd.f32 %v6597_v42, %v1832_v33 }
 0x48f   :  { %v5079_v45 = vpop.eup %5078  ;;  %4251 = vmatmul.msk.f32.gmra.mxu2 %vm2014_vm2, %v5077_v43  ;;  %v3594_v46 = vpop.f32.mrf.mxu3 }
 0x490   :  { %5082 = vtanh.f32 %v1833_v44  ;;  %v3595_v49 = vadd.f32 %v6623_v0, %v3594_v46  ;;  %4274 = vmatmul.msk.f32.vlgmr.msrb.gmra.mxu1 %vm1091_vm1, %v5079_v45 }
 0x492   :  { %3824 = vst.msk [vmem:[%s7316_s9 + $0x268] sm:$0xff] %vm166_vm0, %v3595_v49  ;;  %v2707_v37 = vpop.f32.mrf.mxu2 }
 0x493   :  { %v5081_v50 = vpop.eup %5080  ;;  %v2708_v51 = vadd.f32 %v6784_v13, %v2707_v37 }
 0x494   :  { %4368 = vmatmul.msk.f32.gmra.mxu3 %vm1091_vm1, %v5081_v50 }
 0x495   :  { %5084 = vtanh.f32 %v2708_v51  ;;  %v1835_v52 = vpop.f32.mrf.mxu1 }
 0x496   :  { %v5083_v53 = vpop.eup %5082  ;;  %v1836_v54 = vadd.f32 %v6597_v42, %v1835_v52 }
 0x497   :  { %4252 = vmatmul.msk.f32.gmra.mxu2 %vm2014_vm2, %v5083_v53  ;;  %v3597_v55 = vpop.f32.mrf.mxu3 }
 0x498   :  { %5086 = vtanh.f32 %v1836_v54  ;;  %v3598_v56 = vadd.f32 %v6623_v0, %v3597_v55 }
 0x49a   :  { %3825 = vst.msk [vmem:[%s7316_s9 + $0x270] sm:$0xff] %vm166_vm0, %v3598_v56  ;;  %v2710_v57 = vpop.f32.mrf.mxu2 }
 0x49b   :  { %v5085_v58 = vpop.eup %5084  ;;  %v2711_v59 = vadd.f32 %v6784_v13, %v2710_v57 }
 0x49c   :  { %4369 = vmatmul.msk.f32.gmra.mxu3 %vm1091_vm1, %v5085_v58 }
 0x49d   :  { %5088 = vtanh.f32 %v2711_v59  ;;  %v1838_v47 = vpop.f32.mrf.mxu1 }
 0x49e   :  { %v5087_v42 = vpop.eup %5086  ;;  %v1839_v61 = vadd.f32 %v6953_v60, %v1838_v47 }
 0x49f   :  { %4253 = vmatmul.msk.f32.gmra.mxu2 %vm2014_vm2, %v5087_v42  ;;  %v3600_v62 = vpop.f32.mrf.mxu3 }
 0x4a0   :  { %5090 = vtanh.f32 %v1839_v61  ;;  %v3601_v48 = vadd.f32 %v6623_v0, %v3600_v62 }
 0x4a2   :  { %3826 = vst.msk [vmem:[%s7316_s9 + $0x278] sm:$0xff] %vm166_vm0, %v3601_v48  ;;  %v2713_v63 = vpop.f32.mrf.mxu2 }
 0x4a3   :  { %v5089_v2 = vpop.eup %5088  ;;  %v2714_v3 = vadd.f32 %v6784_v13, %v2713_v63 }
 0x4a4   :  { %4370 = vmatmul.msk.f32.gmra.mxu3 %vm1091_vm1, %v5089_v2 }
 0x4a5   :  { %5092 = vtanh.f32 %v2714_v3  ;;  %v1841_v19 = vpop.f32.mrf.mxu1 }
 0x4a6   :  { %v5091_v4 = vpop.eup %5090  ;;  %v1842_v5 = vadd.f32 %v6953_v60, %v1841_v19 }
 0x4a7   :  { %4254 = vmatmul.msk.f32.gmra.mxu2 %vm2014_vm2, %v5091_v4  ;;  %v3603_v7 = vpop.f32.mrf.mxu3 }
 0x4a8   :  { %5094 = vtanh.f32 %v1842_v5  ;;  %v3604_v8 = vadd.f32 %v6623_v0, %v3603_v7  ;;  %v6978_v0 = vld [vmem:[%s7315_s8] ss:$0 sm:$0xff] }
 0x4aa   :  { %3827 = vst.msk [vmem:[%s7316_s9 + $0x280] sm:$0xff] %vm166_vm0, %v3604_v8  ;;  %v2716_v9 = vpop.f32.mrf.mxu2 }
 0x4ab   :  { %v5093_v6 = vpop.eup %5092  ;;  %v2717_v26 = vadd.f32 %v6784_v13, %v2716_v9 }
 0x4ac   :  { %4371 = vmatmul.msk.f32.gmra.mxu3 %vm1091_vm1, %v5093_v6 }
 0x4ad   :  { %5096 = vtanh.f32 %v2717_v26  ;;  %v1844_v10 = vpop.f32.mrf.mxu1 }
 0x4ae   :  { %v5095_v1 = vpop.eup %5094  ;;  %v1845_v11 = vadd.f32 %v6953_v60, %v1844_v10 }
 0x4af   :  { %4255 = vmatmul.msk.f32.gmra.mxu2 %vm2014_vm2, %v5095_v1  ;;  %v3606_v14 = vpop.f32.mrf.mxu3 }
 0x4b0   :  { %5098 = vtanh.f32 %v1845_v11  ;;  %v3607_v15 = vadd.f32 %v6978_v0, %v3606_v14 }
 0x4b2   :  { %3828 = vst.msk [vmem:[%s7316_s9 + $0x288] sm:$0xff] %vm166_vm0, %v3607_v15  ;;  %v2719_v17 = vpop.f32.mrf.mxu2 }
 0x4b3   :  { %v5097_v18 = vpop.eup %5096  ;;  %v2720_v20 = vadd.f32 %v6784_v13, %v2719_v17 }
 0x4b4   :  { %4372 = vmatmul.msk.f32.gmra.mxu3 %vm1091_vm1, %v5097_v18 }
 0x4b5   :  { %5100 = vtanh.f32 %v2720_v20  ;;  %v1847_v21 = vpop.f32.mrf.mxu1 }
 0x4b6   :  { %v5099_v12 = vpop.eup %5098  ;;  %v1848_v22 = vadd.f32 %v6953_v60, %v1847_v21 }
 0x4b7   :  { %4256 = vmatmul.msk.f32.gmra.mxu2 %vm2014_vm2, %v5099_v12  ;;  %v3609_v23 = vpop.f32.mrf.mxu3 }
 0x4b8   :  { %5102 = vtanh.f32 %v1848_v22  ;;  %v3610_v24 = vadd.f32 %v6978_v0, %v3609_v23 }
 0x4ba   :  { %3829 = vst.msk [vmem:[%s7316_s9 + $0x290] sm:$0xff] %vm166_vm0, %v3610_v24  ;;  %v2722_v25 = vpop.f32.mrf.mxu2 }
 0x4bb   :  { %v5101_v28 = vpop.eup %5100  ;;  %v2723_v16 = vadd.f32 %v6784_v13, %v2722_v25 }
 0x4bc   :  { %4373 = vmatmul.msk.f32.gmra.mxu3 %vm1091_vm1, %v5101_v28 }
 0x4bd   :  { %5104 = vtanh.f32 %v2723_v16  ;;  %v1850_v29 = vpop.f32.mrf.mxu1 }
 0x4be   :  { %v5103_v30 = vpop.eup %5102  ;;  %v1851_v31 = vadd.f32 %v6953_v60, %v1850_v29 }
 0x4bf   :  { %4257 = vmatmul.msk.f32.gmra.mxu2 %vm2014_vm2, %v5103_v30  ;;  %v3612_v32 = vpop.f32.mrf.mxu3 }
 0x4c0   :  { %5106 = vtanh.f32 %v1851_v31  ;;  %v3613_v35 = vadd.f32 %v6978_v0, %v3612_v32 }
 0x4c2   :  { %3830 = vst.msk [vmem:[%s7316_s9 + $0x298] sm:$0xff] %vm166_vm0, %v3613_v35  ;;  %v2725_v36 = vpop.f32.mrf.mxu2 }
 0x4c3   :  { %v5105_v38 = vpop.eup %5104  ;;  %v2726_v39 = vadd.f32 %v6784_v13, %v2725_v36 }
 0x4c4   :  { %4374 = vmatmul.msk.f32.gmra.mxu3 %vm1091_vm1, %v5105_v38 }
 0x4c5   :  { %5108 = vtanh.f32 %v2726_v39  ;;  %v1853_v40 = vpop.f32.mrf.mxu1 }
 0x4c6   :  { %v5107_v34 = vpop.eup %5106  ;;  %v1854_v41 = vadd.f32 %v6953_v60, %v1853_v40 }
 0x4c7   :  { %4258 = vmatmul.msk.f32.gmra.mxu2 %vm2014_vm2, %v5107_v34  ;;  %v3615_v27 = vpop.f32.mrf.mxu3 }
 0x4c8   :  { %5110 = vtanh.f32 %v1854_v41  ;;  %v3616_v33 = vadd.f32 %v6978_v0, %v3615_v27 }
 0x4ca   :  { %3831 = vst.msk [vmem:[%s7316_s9 + $0x2a0] sm:$0xff] %vm166_vm0, %v3616_v33  ;;  %v2728_v43 = vpop.f32.mrf.mxu2 }
 0x4cb   :  { %v5109_v44 = vpop.eup %5108  ;;  %v2729_v45 = vadd.f32 %v6784_v13, %v2728_v43 }
 0x4cc   :  { %4375 = vmatmul.msk.f32.gmra.mxu3 %vm1091_vm1, %v5109_v44 }
 0x4cd   :  { %5112 = vtanh.f32 %v2729_v45  ;;  %v1856_v46 = vpop.f32.mrf.mxu1 }
 0x4ce   :  { %v5111_v49 = vpop.eup %5110  ;;  %v1857_v37 = vadd.f32 %v6953_v60, %v1856_v46 }
 0x4cf   :  { %4259 = vmatmul.msk.f32.gmra.mxu2 %vm2014_vm2, %v5111_v49  ;;  %v3618_v50 = vpop.f32.mrf.mxu3 }
 0x4d0   :  { %5114 = vtanh.f32 %v1857_v37  ;;  %v3619_v51 = vadd.f32 %v6978_v0, %v3618_v50 }
 0x4d2   :  { %3832 = vst.msk [vmem:[%s7316_s9 + $0x2a8] sm:$0xff] %vm166_vm0, %v3619_v51  ;;  %v2731_v52 = vpop.f32.mrf.mxu2 }
 0x4d3   :  { %v5113_v53 = vpop.eup %5112  ;;  %v2732_v54 = vadd.f32 %v6784_v13, %v2731_v52 }
 0x4d4   :  { %4376 = vmatmul.msk.f32.gmra.mxu3 %vm1091_vm1, %v5113_v53 }
 0x4d5   :  { %5116 = vtanh.f32 %v2732_v54  ;;  %v1859_v55 = vpop.f32.mrf.mxu1 }
 0x4d6   :  { %v5115_v56 = vpop.eup %5114  ;;  %v1860_v57 = vadd.f32 %v6953_v60, %v1859_v55 }
 0x4d7   :  { %4260 = vmatmul.msk.f32.gmra.mxu2 %vm2014_vm2, %v5115_v56  ;;  %v3621_v58 = vpop.f32.mrf.mxu3 }
 0x4d8   :  { %5118 = vtanh.f32 %v1860_v57  ;;  %v3622_v59 = vadd.f32 %v6978_v0, %v3621_v58 }
 0x4da   :  { %3833 = vst.msk [vmem:[%s7316_s9 + $0x2b0] sm:$0xff] %vm166_vm0, %v3622_v59  ;;  %v2734_v47 = vpop.f32.mrf.mxu2 }
 0x4db   :  { %v5117_v42 = vpop.eup %5116  ;;  %v2735_v61 = vadd.f32 %v6784_v13, %v2734_v47 }
 0x4dc   :  { %4377 = vmatmul.msk.f32.gmra.mxu3 %vm1091_vm1, %v5117_v42 }
 0x4dd   :  { %5120 = vtanh.f32 %v2735_v61  ;;  %v1862_v62 = vpop.f32.mrf.mxu1 }
 0x4de   :  { %v5119_v48 = vpop.eup %5118  ;;  %v1863_v63 = vadd.f32 %v6953_v60, %v1862_v62 }
 0x4df   :  { %4261 = vmatmul.msk.f32.gmra.mxu2 %vm2014_vm2, %v5119_v48  ;;  %v3624_v2 = vpop.f32.mrf.mxu3 }
 0x4e0   :  { %5122 = vtanh.f32 %v1863_v63  ;;  %v3625_v3 = vadd.f32 %v6978_v0, %v3624_v2 }
 0x4e2   :  { %3834 = vst.msk [vmem:[%s7316_s9 + $0x2b8] sm:$0xff] %vm166_vm0, %v3625_v3  ;;  %v2737_v19 = vpop.f32.mrf.mxu2 }
 0x4e3   :  { %v5121_v4 = vpop.eup %5120  ;;  %v2738_v5 = vadd.f32 %v6784_v13, %v2737_v19 }
 0x4e4   :  { %4378 = vmatmul.msk.f32.gmra.mxu3 %vm1091_vm1, %v5121_v4 }
 0x4e5   :  { %5124 = vtanh.f32 %v2738_v5  ;;  %v1865_v7 = vpop.f32.mrf.mxu1 }
 0x4e6   :  { %v5123_v8 = vpop.eup %5122  ;;  %v1866_v9 = vadd.f32 %v6953_v60, %v1865_v7 }
 0x4e7   :  { %4262 = vmatmul.msk.f32.gmra.mxu2 %vm2014_vm2, %v5123_v8  ;;  %v3627_v6 = vpop.f32.mrf.mxu3 }
 0x4e8   :  { %5126 = vtanh.f32 %v1866_v9  ;;  %v3628_v26 = vadd.f32 %v6978_v0, %v3627_v6 }
 0x4ea   :  { %3835 = vst.msk [vmem:[%s7316_s9 + $0x2c0] sm:$0xff] %vm166_vm0, %v3628_v26  ;;  %v2740_v10 = vpop.f32.mrf.mxu2 }
 0x4eb   :  { %v5125_v1 = vpop.eup %5124  ;;  %v2741_v11 = vadd.f32 %v6784_v13, %v2740_v10 }
 0x4ec   :  { %4379 = vmatmul.msk.f32.gmra.mxu3 %vm1091_vm1, %v5125_v1 }
 0x4ed   :  { %5128 = vtanh.f32 %v2741_v11  ;;  %v1868_v14 = vpop.f32.mrf.mxu1 }
 0x4ee   :  { %v5127_v15 = vpop.eup %5126  ;;  %v1869_v17 = vadd.f32 %v6953_v60, %v1868_v14 }
 0x4ef   :  { %4263 = vmatmul.msk.f32.gmra.mxu2 %vm2014_vm2, %v5127_v15  ;;  %v3630_v18 = vpop.f32.mrf.mxu3 }
 0x4f0   :  { %5130 = vtanh.f32 %v1869_v17  ;;  %v3631_v20 = vadd.f32 %v6978_v0, %v3630_v18 }
 0x4f2   :  { %3836 = vst.msk [vmem:[%s7316_s9 + $0x2c8] sm:$0xff] %vm166_vm0, %v3631_v20  ;;  %v2743_v21 = vpop.f32.mrf.mxu2 }
 0x4f3   :  { %v5129_v12 = vpop.eup %5128  ;;  %v2744_v22 = vadd.f32 %v6784_v13, %v2743_v21 }
 0x4f4   :  { %4380 = vmatmul.msk.f32.gmra.mxu3 %vm1091_vm1, %v5129_v12 }
 0x4f5   :  { %5132 = vtanh.f32 %v2744_v22  ;;  %v1871_v23 = vpop.f32.mrf.mxu1 }
 0x4f6   :  { %v5131_v24 = vpop.eup %5130  ;;  %v1872_v25 = vadd.f32 %v6953_v60, %v1871_v23 }
 0x4f7   :  { %4264 = vmatmul.msk.f32.gmra.mxu2 %vm2014_vm2, %v5131_v24  ;;  %v3633_v28 = vpop.f32.mrf.mxu3 }
 0x4f8   :  { %5134 = vtanh.f32 %v1872_v25  ;;  %v3634_v16 = vadd.f32 %v6978_v0, %v3633_v28 }
 0x4fa   :  { %3837 = vst.msk [vmem:[%s7316_s9 + $0x2d0] sm:$0xff] %vm166_vm0, %v3634_v16  ;;  %v2746_v29 = vpop.f32.mrf.mxu2  ;;  %v7149_v16 = vld [vmem:[%s7313_s6] ss:$0 sm:$0xff] }
 0x4fb   :  { %v5133_v30 = vpop.eup %5132  ;;  %v2747_v31 = vadd.f32 %v6784_v13, %v2746_v29 }
 0x4fc   :  { %4381 = vmatmul.msk.f32.gmra.mxu3 %vm1091_vm1, %v5133_v30 }
 0x4fd   :  { %5136 = vtanh.f32 %v2747_v31  ;;  %v1874_v32 = vpop.f32.mrf.mxu1 }
 0x4fe   :  { %v5135_v35 = vpop.eup %5134  ;;  %v1875_v36 = vadd.f32 %v6953_v60, %v1874_v32 }
 0x4ff   :  { %4265 = vmatmul.msk.f32.gmra.mxu2 %vm2014_vm2, %v5135_v35  ;;  %v3636_v38 = vpop.f32.mrf.mxu3 }
 0x500   :  { %5138 = vtanh.f32 %v1875_v36  ;;  %v3637_v39 = vadd.f32 %v6978_v0, %v3636_v38 }
 0x502   :  { %3838 = vst.msk [vmem:[%s7316_s9 + $0x2d8] sm:$0xff] %vm166_vm0, %v3637_v39  ;;  %v2749_v40 = vpop.f32.mrf.mxu2 }
 0x503   :  { %v5137_v34 = vpop.eup %5136  ;;  %v2750_v41 = vadd.f32 %v6784_v13, %v2749_v40 }
 0x504   :  { %4382 = vmatmul.msk.f32.gmra.mxu3 %vm1091_vm1, %v5137_v34 }
 0x505   :  { %5140 = vtanh.f32 %v2750_v41  ;;  %v1877_v27 = vpop.f32.mrf.mxu1 }
 0x506   :  { %v5139_v33 = vpop.eup %5138  ;;  %v1878_v43 = vadd.f32 %v6953_v60, %v1877_v27 }
 0x507   :  { %4266 = vmatmul.msk.f32.gmra.mxu2 %vm2014_vm2, %v5139_v33  ;;  %v3639_v44 = vpop.f32.mrf.mxu3 }
 0x508   :  { %5142 = vtanh.f32 %v1878_v43  ;;  %v3640_v45 = vadd.f32 %v6978_v0, %v3639_v44 }
 0x50a   :  { %3839 = vst.msk [vmem:[%s7316_s9 + $0x2e0] sm:$0xff] %vm166_vm0, %v3640_v45  ;;  %v2752_v46 = vpop.f32.mrf.mxu2 }
 0x50b   :  { %v5141_v49 = vpop.eup %5140  ;;  %v2753_v37 = vadd.f32 %v6784_v13, %v2752_v46 }
 0x50c   :  { %4383 = vmatmul.msk.f32.gmra.mxu3 %vm1091_vm1, %v5141_v49 }
 0x50d   :  { %5144 = vtanh.f32 %v2753_v37  ;;  %v3363_v50 = vpop.f32.mrf.mxu1 }
 0x50e   :  { %v5143_v60 = vpop.eup %5142  ;;  %v3364_v51 = vadd.f32 %v6978_v0, %v3363_v50 }
 0x50f   :  { %4267 = vmatmul.msk.f32.gmra.mxu2 %vm2014_vm2, %v5143_v60  ;;  %v3642_v52 = vpop.f32.mrf.mxu3 }
 0x510   :  { %3747 = vst.msk [vmem:[%s7316_s9] sm:$0xff] %vm166_vm0, %v3364_v51  ;;  %v3643_v53 = vadd.f32 %v6978_v0, %v3642_v52 }
 0x512   :  { %3840 = vst.msk [vmem:[%s7316_s9 + $0x2e8] sm:$0xff] %vm166_vm0, %v3643_v53  ;;  %v2755_v54 = vpop.f32.mrf.mxu2 }
 0x513   :  { %v5145_v55 = vpop.eup %5144  ;;  %v2756_v56 = vadd.f32 %v6784_v13, %v2755_v54 }
 0x514   :  { %4384 = vmatmul.msk.f32.gmra.mxu3 %vm1091_vm1, %v5145_v55 }
 0x515   :  { %5146 = vtanh.f32 %v2756_v56 }
 0x517   :  { %v3645_v57 = vpop.f32.mrf.mxu3 }
 0x518   :  { %v3646_v58 = vadd.f32 %v6978_v0, %v3645_v57 }
 0x51a   :  { %3841 = vst.msk [vmem:[%s7316_s9 + $0x2f0] sm:$0xff] %vm166_vm0, %v3646_v58  ;;  %v2758_v59 = vpop.f32.mrf.mxu2 }
 0x51b   :  { %v5147_v47 = vpop.eup %5146  ;;  %v2759_v42 = vadd.f32 %v6784_v13, %v2758_v59 }
 0x51c   :  { %4385 = vmatmul.msk.f32.gmra.mxu3 %vm1091_vm1, %v5147_v47 }
 0x51d   :  { %5148 = vtanh.f32 %v2759_v42 }
 0x51f   :  { %v3648_v61 = vpop.f32.mrf.mxu3 }
 0x520   :  { %v3649_v62 = vadd.f32 %v6978_v0, %v3648_v61 }
 0x522   :  { %3842 = vst.msk [vmem:[%s7316_s9 + $0x2f8] sm:$0xff] %vm166_vm0, %v3649_v62  ;;  %v2761_v48 = vpop.f32.mrf.mxu2 }
 0x523   :  { %v5149_v63 = vpop.eup %5148  ;;  %v2762_v2 = vadd.f32 %v6784_v13, %v2761_v48 }
 0x524   :  { %4386 = vmatmul.msk.f32.gmra.mxu3 %vm1091_vm1, %v5149_v63 }
 0x525   :  { %5150 = vtanh.f32 %v2762_v2 }
 0x527   :  { %v3651_v3 = vpop.f32.mrf.mxu3 }
 0x528   :  { %v3652_v19 = vadd.f32 %v6978_v0, %v3651_v3 }
 0x52a   :  { %3843 = vst.msk [vmem:[%s7316_s9 + $0x300] sm:$0xff] %vm166_vm0, %v3652_v19  ;;  %v2764_v4 = vpop.f32.mrf.mxu2 }
 0x52b   :  { %v5151_v5 = vpop.eup %5150  ;;  %v2765_v7 = vadd.f32 %v6784_v13, %v2764_v4 }
 0x52c   :  { %4387 = vmatmul.msk.f32.gmra.mxu3 %vm1091_vm1, %v5151_v5 }
 0x52d   :  { %5152 = vtanh.f32 %v2765_v7 }
 0x52f   :  { %v3654_v8 = vpop.f32.mrf.mxu3 }
 0x530   :  { %v3655_v9 = vadd.f32 %v6978_v0, %v3654_v8 }
 0x532   :  { %3844 = vst.msk [vmem:[%s7316_s9 + $0x308] sm:$0xff] %vm166_vm0, %v3655_v9  ;;  %v2767_v6 = vpop.f32.mrf.mxu2 }
 0x533   :  { %v5153_v26 = vpop.eup %5152  ;;  %v2768_v10 = vadd.f32 %v6784_v13, %v2767_v6 }
 0x534   :  { %4388 = vmatmul.msk.f32.gmra.mxu3 %vm1091_vm1, %v5153_v26 }
 0x535   :  { %5154 = vtanh.f32 %v2768_v10 }
 0x537   :  { %v3657_v1 = vpop.f32.mrf.mxu3 }
 0x538   :  { %v3658_v11 = vadd.f32 %v6978_v0, %v3657_v1 }
 0x53a   :  { %3845 = vst.msk [vmem:[%s7316_s9 + $0x310] sm:$0xff] %vm166_vm0, %v3658_v11  ;;  %v2770_v14 = vpop.f32.mrf.mxu2 }
 0x53b   :  { %v5155_v15 = vpop.eup %5154  ;;  %v2771_v17 = vadd.f32 %v6784_v13, %v2770_v14 }
 0x53c   :  { %4389 = vmatmul.msk.f32.gmra.mxu3 %vm1091_vm1, %v5155_v15 }
 0x53d   :  { %5156 = vtanh.f32 %v2771_v17 }
 0x53f   :  { %v3660_v18 = vpop.f32.mrf.mxu3 }
 0x540   :  { %v3661_v20 = vadd.f32 %v6978_v0, %v3660_v18 }
 0x542   :  { %3846 = vst.msk [vmem:[%s7316_s9 + $0x318] sm:$0xff] %vm166_vm0, %v3661_v20  ;;  %v2773_v21 = vpop.f32.mrf.mxu2 }
 0x543   :  { %v5157_v12 = vpop.eup %5156  ;;  %v2774_v22 = vadd.f32 %v6784_v13, %v2773_v21 }
 0x544   :  { %4390 = vmatmul.msk.f32.gmra.mxu3 %vm1091_vm1, %v5157_v12 }
 0x545   :  { %5158 = vtanh.f32 %v2774_v22 }
 0x547   :  { %v3663_v23 = vpop.f32.mrf.mxu3 }
 0x548   :  { %v3664_v24 = vadd.f32 %v6978_v0, %v3663_v23 }
 0x54a   :  { %3847 = vst.msk [vmem:[%s7316_s9 + $0x320] sm:$0xff] %vm166_vm0, %v3664_v24  ;;  %v2776_v25 = vpop.f32.mrf.mxu2 }
 0x54b   :  { %v5159_v28 = vpop.eup %5158  ;;  %v2777_v13 = vadd.f32 %v7149_v16, %v2776_v25 }
 0x54c   :  { %4391 = vmatmul.msk.f32.gmra.mxu3 %vm1091_vm1, %v5159_v28 }
 0x54d   :  { %5160 = vtanh.f32 %v2777_v13 }
 0x54f   :  { %v3666_v29 = vpop.f32.mrf.mxu3 }
 0x550   :  { %v3667_v30 = vadd.f32 %v6978_v0, %v3666_v29 }
 0x552   :  { %3848 = vst.msk [vmem:[%s7316_s9 + $0x328] sm:$0xff] %vm166_vm0, %v3667_v30  ;;  %v2779_v31 = vpop.f32.mrf.mxu2 }
 0x553   :  { %v5161_v32 = vpop.eup %5160  ;;  %v2780_v35 = vadd.f32 %v7149_v16, %v2779_v31 }
 0x554   :  { %4392 = vmatmul.msk.f32.gmra.mxu3 %vm1091_vm1, %v5161_v32 }
 0x555   :  { %5162 = vtanh.f32 %v2780_v35 }
 0x557   :  { %v3669_v36 = vpop.f32.mrf.mxu3 }
 0x558   :  { %v3670_v38 = vadd.f32 %v6978_v0, %v3669_v36 }
 0x55a   :  { %3849 = vst.msk [vmem:[%s7316_s9 + $0x330] sm:$0xff] %vm166_vm0, %v3670_v38  ;;  %v2782_v39 = vpop.f32.mrf.mxu2 }
 0x55b   :  { %v5163_v40 = vpop.eup %5162  ;;  %v2783_v34 = vadd.f32 %v7149_v16, %v2782_v39 }
 0x55c   :  { %4393 = vmatmul.msk.f32.gmra.mxu3 %vm1091_vm1, %v5163_v40 }
 0x55d   :  { %5164 = vtanh.f32 %v2783_v34 }
 0x55f   :  { %v3672_v41 = vpop.f32.mrf.mxu3 }
 0x560   :  { %v3673_v27 = vadd.f32 %v6978_v0, %v3672_v41 }
 0x562   :  { %3850 = vst.msk [vmem:[%s7316_s9 + $0x338] sm:$0xff] %vm166_vm0, %v3673_v27  ;;  %v2785_v33 = vpop.f32.mrf.mxu2 }
 0x563   :  { %v5165_v43 = vpop.eup %5164  ;;  %v2786_v44 = vadd.f32 %v7149_v16, %v2785_v33 }
 0x564   :  { %4394 = vmatmul.msk.f32.gmra.mxu3 %vm1091_vm1, %v5165_v43 }
 0x565   :  { %5166 = vtanh.f32 %v2786_v44 }
 0x567   :  { %v3675_v45 = vpop.f32.mrf.mxu3 }
 0x568   :  { %v3676_v46 = vadd.f32 %v6978_v0, %v3675_v45 }
 0x56a   :  { %3851 = vst.msk [vmem:[%s7316_s9 + $0x340] sm:$0xff] %vm166_vm0, %v3676_v46  ;;  %v2788_v49 = vpop.f32.mrf.mxu2 }
 0x56b   :  { %v5167_v37 = vpop.eup %5166  ;;  %v2789_v50 = vadd.f32 %v7149_v16, %v2788_v49 }
 0x56c   :  { %4395 = vmatmul.msk.f32.gmra.mxu3 %vm1091_vm1, %v5167_v37 }
 0x56d   :  { %5168 = vtanh.f32 %v2789_v50 }
 0x56f   :  { %v3678_v60 = vpop.f32.mrf.mxu3 }
 0x570   :  { %v3679_v51 = vadd.f32 %v6978_v0, %v3678_v60 }
 0x572   :  { %3852 = vst.msk [vmem:[%s7316_s9 + $0x348] sm:$0xff] %vm166_vm0, %v3679_v51  ;;  %v2791_v52 = vpop.f32.mrf.mxu2 }
 0x573   :  { %v5169_v53 = vpop.eup %5168  ;;  %v2792_v54 = vadd.f32 %v7149_v16, %v2791_v52 }
 0x574   :  { %4396 = vmatmul.msk.f32.gmra.mxu3 %vm1091_vm1, %v5169_v53 }
 0x575   :  { %5170 = vtanh.f32 %v2792_v54 }
 0x577   :  { %v3681_v55 = vpop.f32.mrf.mxu3 }
 0x578   :  { %v3682_v56 = vadd.f32 %v6978_v0, %v3681_v55 }
 0x57a   :  { %3853 = vst.msk [vmem:[%s7316_s9 + $0x350] sm:$0xff] %vm166_vm0, %v3682_v56  ;;  %v2794_v57 = vpop.f32.mrf.mxu2 }
 0x57b   :  { %v5171_v58 = vpop.eup %5170  ;;  %v2795_v59 = vadd.f32 %v7149_v16, %v2794_v57 }
 0x57c   :  { %4397 = vmatmul.msk.f32.gmra.mxu3 %vm1091_vm1, %v5171_v58 }
 0x57d   :  { %5172 = vtanh.f32 %v2795_v59 }
 0x57f   :  { %v3684_v47 = vpop.f32.mrf.mxu3 }
 0x580   :  { %v3685_v42 = vadd.f32 %v6978_v0, %v3684_v47 }
 0x582   :  { %3854 = vst.msk [vmem:[%s7316_s9 + $0x358] sm:$0xff] %vm166_vm0, %v3685_v42  ;;  %v2797_v61 = vpop.f32.mrf.mxu2 }
 0x583   :  { %v5173_v62 = vpop.eup %5172  ;;  %v2798_v48 = vadd.f32 %v7149_v16, %v2797_v61 }
 0x584   :  { %4398 = vmatmul.msk.f32.gmra.mxu3 %vm1091_vm1, %v5173_v62 }
 0x585   :  { %5174 = vtanh.f32 %v2798_v48 }
 0x587   :  { %v3687_v63 = vpop.f32.mrf.mxu3 }
 0x588   :  { %v3688_v2 = vadd.f32 %v6978_v0, %v3687_v63 }
 0x58a   :  { %3855 = vst.msk [vmem:[%s7316_s9 + $0x360] sm:$0xff] %vm166_vm0, %v3688_v2  ;;  %v2800_v3 = vpop.f32.mrf.mxu2 }
 0x58b   :  { %v5175_v19 = vpop.eup %5174  ;;  %v2801_v4 = vadd.f32 %v7149_v16, %v2800_v3 }
 0x58c   :  { %4399 = vmatmul.msk.f32.gmra.mxu3 %vm1091_vm1, %v5175_v19 }
 0x58d   :  { %5176 = vtanh.f32 %v2801_v4 }
 0x58f   :  { %v3690_v5 = vpop.f32.mrf.mxu3 }
 0x590   :  { %v3691_v7 = vadd.f32 %v6978_v0, %v3690_v5 }
 0x592   :  { %3856 = vst.msk [vmem:[%s7316_s9 + $0x368] sm:$0xff] %vm166_vm0, %v3691_v7  ;;  %v2803_v8 = vpop.f32.mrf.mxu2 }
 0x593   :  { %v5177_v9 = vpop.eup %5176  ;;  %v2804_v6 = vadd.f32 %v7149_v16, %v2803_v8 }
 0x594   :  { %4400 = vmatmul.msk.f32.gmra.mxu3 %vm1091_vm1, %v5177_v9 }
 0x595   :  { %5178 = vtanh.f32 %v2804_v6 }
 0x597   :  { %v3693_v26 = vpop.f32.mrf.mxu3 }
 0x598   :  { %v3694_v10 = vadd.f32 %v6978_v0, %v3693_v26 }
 0x59a   :  { %3857 = vst.msk [vmem:[%s7316_s9 + $0x370] sm:$0xff] %vm166_vm0, %v3694_v10 }
 0x59b   :  { %v5179_v1 = vpop.eup %5178 }
 0x59c   :  { %4401 = vmatmul.msk.f32.gmra.mxu3 %vm1091_vm1, %v5179_v1 }
 0x59f   :  { %v3696_v11 = vpop.f32.mrf.mxu3 }
 0x5a0   :  { %v3697_v14 = vadd.f32 %v6978_v0, %v3696_v11 }
 0x5a2   :  { %3858 = vst.msk [vmem:[%s7316_s9 + $0x378] sm:$0xff] %vm166_vm0, %v3697_v14 }
 0x5a7   :  { %v3699_v15 = vpop.f32.mrf.mxu3 }
 0x5a8   :  { %v3700_v17 = vadd.f32 %v6978_v0, %v3699_v15 }
 0x5aa   :  { %3859 = vst.msk [vmem:[%s7316_s9 + $0x380] sm:$0xff] %vm166_vm0, %v3700_v17 }
 0x5af   :  { %v3702_v18 = vpop.f32.mrf.mxu3 }
 0x5b0   :  { %v3703_v20 = vadd.f32 %v6978_v0, %v3702_v18 }
 0x5b2   :  { %3860 = vst.msk [vmem:[%s7316_s9 + $0x388] sm:$0xff] %vm166_vm0, %v3703_v20 }
 0x5b7   :  { %v3705_v21 = vpop.f32.mrf.mxu3 }
 0x5b8   :  { %v3706_v12 = vadd.f32 %v6978_v0, %v3705_v21 }
 0x5ba   :  { %3861 = vst.msk [vmem:[%s7316_s9 + $0x390] sm:$0xff] %vm166_vm0, %v3706_v12 }
 0x5bf   :  { %v3708_v22 = vpop.f32.mrf.mxu3 }
 0x5c0   :  { %v3709_v23 = vadd.f32 %v6978_v0, %v3708_v22 }
 0x5c2   :  { %3862 = vst.msk [vmem:[%s7316_s9 + $0x398] sm:$0xff] %vm166_vm0, %v3709_v23 }
 0x5c7   :  { %v3711_v24 = vpop.f32.mrf.mxu3 }
 0x5c8   :  { %v3712_v25 = vadd.f32 %v6978_v0, %v3711_v24 }
 0x5ca   :  { %3863 = vst.msk [vmem:[%s7316_s9 + $0x3a0] sm:$0xff] %vm166_vm0, %v3712_v25 }
 0x5cf   :  { %v3714_v28 = vpop.f32.mrf.mxu3 }
 0x5d0   :  { %v3715_v16 = vadd.f32 %v6978_v0, %v3714_v28 }
 0x5d2   :  { %3864 = vst.msk [vmem:[%s7316_s9 + $0x3a8] sm:$0xff] %vm166_vm0, %v3715_v16 }
 0x5d7   :  { %v3717_v13 = vpop.f32.mrf.mxu3 }
 0x5d8   :  { %v3718_v29 = vadd.f32 %v6978_v0, %v3717_v13 }
 0x5da   :  { %3865 = vst.msk [vmem:[%s7316_s9 + $0x3b0] sm:$0xff] %vm166_vm0, %v3718_v29 }
 0x5df   :  { %v3720_v30 = vpop.f32.mrf.mxu3 }
 0x5e0   :  { %v3721_v31 = vadd.f32 %v6978_v0, %v3720_v30 }
 0x5e2   :  { %3866 = vst.msk [vmem:[%s7316_s9 + $0x3b8] sm:$0xff] %vm166_vm0, %v3721_v31 }
 0x5e7   :  { %v3723_v32 = vpop.f32.mrf.mxu3 }
 0x5e8   :  { %v3724_v35 = vadd.f32 %v6978_v0, %v3723_v32 }
 0x5ea   :  { %3867 = vst.msk [vmem:[%s7316_s9 + $0x3c0] sm:$0xff] %vm166_vm0, %v3724_v35 }
 0x5ef   :  { %v3726_v36 = vpop.f32.mrf.mxu3 }
 0x5f0   :  { %v3727_v38 = vadd.f32 %v6978_v0, %v3726_v36 }
 0x5f2   :  { %3868 = vst.msk [vmem:[%s7316_s9 + $0x3c8] sm:$0xff] %vm166_vm0, %v3727_v38 }
 0x5f7   :  { %v3729_v39 = vpop.f32.mrf.mxu3 }
 0x5f8   :  { %v3730_v40 = vadd.f32 %v6978_v0, %v3729_v39 }
 0x5fa   :  { %3869 = vst.msk [vmem:[%s7316_s9 + $0x3d0] sm:$0xff] %vm166_vm0, %v3730_v40 }
 0x5ff   :  { %v3732_v34 = vpop.f32.mrf.mxu3 }
 0x600   :  { %v3733_v41 = vadd.f32 %v6978_v0, %v3732_v34 }
 0x602   :  { %3870 = vst.msk [vmem:[%s7316_s9 + $0x3d8] sm:$0xff] %vm166_vm0, %v3733_v41 }
 0x607   :  { %v3735_v27 = vpop.f32.mrf.mxu3 }
 0x608   :  { %v3736_v33 = vadd.f32 %v6978_v0, %v3735_v27 }
 0x60a   :  { %3871 = vst.msk [vmem:[%s7316_s9 + $0x3e0] sm:$0xff] %vm166_vm0, %v3736_v33 }
 0x60f   :  { %v3738_v43 = vpop.f32.mrf.mxu3 }
 0x610   :  { %v3739_v44 = vadd.f32 %v6978_v0, %v3738_v43 }
 0x612   :  { %3872 = vst.msk [vmem:[%s7316_s9 + $0x3e8] sm:$0xff] %vm166_vm0, %v3739_v44 }
 0x617   :  { %v3741_v45 = vpop.f32.mrf.mxu3 }
 0x618   :  { %v3742_v46 = vadd.f32 %v6978_v0, %v3741_v45 }
 0x61a   :  { %3873 = vst.msk [vmem:[%s7316_s9 + $0x3f0] sm:$0xff] %vm166_vm0, %v3742_v46 }
 0x61f   :  { %v3744_v49 = vpop.f32.mrf.mxu3 }
 0x620   :  { %v3745_v37 = vadd.f32 %v6978_v0, %v3744_v49 }
 0x622   :  { %3874 = vst.msk [vmem:[%s7316_s9 + $0x3f8] sm:$0xff] %vm166_vm0, %v3745_v37 }

</bundles_post_ra>
